<compile_context>
chip_gen: v6e
topology: v6e:2x2x1
jax: 0.10.0
libtpu: 0.0.40
codegen_flags: <defaults>
</compile_context>

<pallas_src>
import numpy as np
import jax
import jax.numpy as jnp
from jax.experimental import pallas as pl
from jax.experimental.pallas import tpu as pltpu

# ----------------------------- configuration --------------------------------
B, T, INPUT_DIM = 2, 16, 8
PROJ_DIM = 32
HIDDEN_DIM = 32
LEVEL = 3
CLAMP_VAL = 10.0
ODE_STEPS = 10           # step_size = 0.1 over t in [0, 1]
DT = 0.1
SLAB_COLS = 32           # lane width of the packed parameter slab
BATCH_PAD = 8            # f32 sublane tile: pad batch rows to a multiple of 8
OUT_LANES = 128          # lane-dense output tile width

# db4 analysis filters (pywt dec_lo; dec_hi from the QMF relation)
_DB4_DEC_LO = np.array([
    -0.010597401784997278, 0.032883011666982945, 0.030841381835986965,
    -0.18703481171888114, -0.02798376941698385, 0.6308807679295904,
    0.7148465705525415, 0.23037781330885523], dtype=np.float64)
_L = len(_DB4_DEC_LO)
_DB4_DEC_HI = np.array(
    [(-1.0) ** (k + 1) * _DB4_DEC_LO[_L - 1 - k] for k in range(_L)],
    dtype=np.float64)


# ----------------------- DWT analysis matrices (host) ------------------------
def _dwt_analysis_matrices(n_in, dec_lo, dec_hi):
    """Single-level db4 analysis (zero mode, pytorch_wavelets afb1d) as matrices."""
    L = len(dec_lo)
    outsize = (n_in + L - 1) // 2
    p = 2 * (outsize - 1) - n_in + L
    front = p // 2
    g0 = dec_lo[::-1]
    g1 = dec_hi[::-1]
    a_lo = np.zeros((outsize, n_in), dtype=np.float64)
    a_hi = np.zeros((outsize, n_in), dtype=np.float64)
    for n in range(outsize):
        for i in range(L):
            idx = 2 * n + i - front
            if 0 <= idx < n_in:
                a_lo[n, idx] += g0[i]
                a_hi[n, idx] += g1[i]
    return a_lo, a_hi


# ------------------------------ parameters -----------------------------------
def _linear_params(key, fan_in, fan_out):
    kw, kb = jax.random.split(key)
    bound = 1.0 / np.sqrt(fan_in)
    w = jax.random.uniform(kw, (fan_in, fan_out), jnp.float32, -bound, bound)
    b = jax.random.uniform(kb, (1, fan_out), jnp.float32, -bound, bound)
    return w, b


def _pack_slab(named_arrays):
    """Pack small 2D params into one (rows, SLAB_COLS) f32 slab (rows 8-aligned)."""
    blocks, offsets, cur = [], {}, 0
    for name, arr in named_arrays:
        arr = np.asarray(arr, np.float32)
        r, c = arr.shape
        blk = np.pad(arr, ((0, 0), (0, SLAB_COLS - c)))
        offsets[name] = (cur, r, c)
        blocks.append(blk)
        cur += r
        pad_r = (-cur) % 8                      # keep every param 8-sublane aligned
        if pad_r:
            blocks.append(np.zeros((pad_r, SLAB_COLS), np.float32))
            cur += pad_r
    slab = np.concatenate(blocks, axis=0).astype(np.float32)
    return jnp.asarray(slab), offsets


def init_params(key):
    keys = jax.random.split(key, 6)
    wp, bp = _linear_params(keys[0], INPUT_DIM, PROJ_DIM)
    wf, bf = _linear_params(keys[1], (LEVEL + 2) * PROJ_DIM, HIDDEN_DIM)
    w1, b1 = _linear_params(keys[2], HIDDEN_DIM, HIDDEN_DIM)
    w2, b2 = _linear_params(keys[3], HIDDEN_DIM, HIDDEN_DIM)
    wr1, br1 = _linear_params(keys[4], HIDDEN_DIM, HIDDEN_DIM // 2)
    wr2, br2 = _linear_params(keys[5], HIDDEN_DIM // 2, 1)

    # spectral_norm on the ODEFunc linears (eval-mode semantics: W / sigma_max)
    # TODO(synk): PyTorch's spectral_norm divides by the power-iteration estimate
    # (buffered u,v), which is slightly below the exact sigma_max used here.
    w1n = np.asarray(w1, np.float64)
    w2n = np.asarray(w2, np.float64)
    w1n = w1n / np.linalg.svd(w1n, compute_uv=False)[0]
    w2n = w2n / np.linalg.svd(w2n, compute_uv=False)[0]

    # ---- fold input_proj + level-3 db4 DWT + time-means + fusion Linear ----
    # The stage x -> h0 is affine:  h0 = x_flat @ Wx + bf'
    mats, n = [], T
    for _ in range(LEVEL):
        alo, ahi = _dwt_analysis_matrices(n, _DB4_DEC_LO, _DB4_DEC_HI)
        mats.append((alo, ahi))
        n = alo.shape[0]
    a1lo, a1hi = mats[0]
    a2lo, a2hi = mats[1]
    a3lo, a3hi = mats[2]
    chain2 = a2lo @ a1lo                 # (n2, T)
    chain3 = a3lo @ chain2               # (n3, T)
    # One row per fusion branch, mean weights folded in.
    # Row order MUST match wf chunk order: [low, d1, d2, d3, time].
    Mrows = np.stack([
        chain3.mean(axis=0),             # approx level 3, time-mean
        a1hi.mean(axis=0),               # detail 1, time-mean
        (a2hi @ a1lo).mean(axis=0),      # detail 2, time-mean
        (a3hi @ chain2).mean(axis=0),    # detail 3, time-mean
        np.full((T,), 1.0 / T),          # raw proj time-mean
    ], axis=0)                           # (5, T)

    wp64 = np.asarray(wp, np.float64)                                  # (Din, P)
    bp64 = np.asarray(bp, np.float64)[0]                               # (P,)
    wf64 = np.asarray(wf, np.float64).reshape(LEVEL + 2, PROJ_DIM, HIDDEN_DIM)
    bf64 = np.asarray(bf, np.float64)[0]                               # (H,)

    wcomb = np.einsum('st,sph->tph', Mrows, wf64)                      # (T, P, H)
    wx = np.einsum('dp,tph->tdh', wp64, wcomb).reshape(T * INPUT_DIM, HIDDEN_DIM)
    bfp = bf64 + np.einsum('p,tph->h', bp64, wcomb)                    # (H,)

    slab, offsets = _pack_slab([
        ("wx",  wx),
        ("bf",  bfp[None, :]),
        ("w1",  w1n),
        ("b1",  np.asarray(b1)),
        ("w2",  w2n),
        ("b2",  np.asarray(b2)),
        ("wr1", np.asarray(wr1)),
        ("br1", np.asarray(br1)),
        ("wr2", np.asarray(wr2)),
        ("br2", np.asarray(br2)),
    ])
    return slab, offsets


# ------------------------------ Pallas kernel --------------------------------
def _make_kernel(offsets):
    def kernel(x_ref, slab_ref, out_ref):
        f32 = jnp.float32

        def p(name):
            off, r, c = offsets[name]
            return slab_ref[off:off + r, 0:c]      # static slices of the param slab

        x = x_ref[...]                              # (Bpad, T*Din), Bpad % 8 == 0
        bsz = x.shape[0]

        wx, bfp = p("wx"), p("bf")
        w1, b1 = p("w1"), p("b1")
        w2, b2 = p("w2"), p("b2")
        wr1, br1 = p("wr1"), p("br1")
        wr2, br2 = p("wr2"), p("br2")

        # ---- folded (proj + DWT + means + fusion): one matmul ----
        # Matmul precision decided explicitly: default one-pass (bf16-truncated
        # inputs) is used throughout; the kernel is latency-bound on a serial
        # chain of ~82 tiny matmuls and HIGHEST would triple every MXU pass.
        h = jnp.dot(x, wx, preferred_element_type=f32) + bfp           # (Bpad, H)

        # hoist bias broadcasts out of the unrolled loop
        b1b = jnp.broadcast_to(b1, (bsz, HIDDEN_DIM))
        b2b = jnp.broadcast_to(b2, (bsz, HIDDEN_DIM))

        # TODO(synk): weight-stationary MXU driving (pltpu.matmul_push_rhs with
        # w1 on mxu_index=0 / w2 on mxu_index=1, then matmul_acc_lhs+matmul_pop
        # inside odefunc) would remove ~80 RHS re-stagings from the serial RK4
        # chain; not emitted here because it cannot be validated without a
        # bundle dump and a lowering failure would cost the whole kernel.
        def odefunc(hh):
            # ODEFunc: spectral-norm Linear -> SiLU -> spectral-norm Linear -> clamp
            z = jnp.dot(hh, w1, preferred_element_type=f32) + b1b
            # SiLU with sigmoid kept on the EUP slot: exp + approx reciprocal
            # (no full-precision VPU divide on the critical path).
            z = z * pl.reciprocal(1.0 + jnp.exp(-z), approx=True)
            dh = jnp.dot(z, w2, preferred_element_type=f32) + b2b
            return jnp.clip(dh, -CLAMP_VAL, CLAMP_VAL)

        ONE_THIRD = 1.0 / 3.0
        DT3 = DT * ONE_THIRD
        DT8 = DT * 0.125

        # torchdiffeq fixed-grid 'rk4' = 3/8-rule step; fully unrolled (10 steps).
        # Live values per iteration are tiny ((Bpad,H) f32 = 1 KiB), so the full
        # unroll keeps LLO scheduling visibility without vreg-spill risk.
        for _ in range(ODE_STEPS):
            k1 = odefunc(h)
            k2 = odefunc(h + DT3 * k1)
            k3 = odefunc(h + DT * (k2 - ONE_THIRD * k1))
            k4 = odefunc(h + DT * (k1 - k2 + k3))
            h = h + DT8 * (k1 + 3.0 * (k2 + k3) + k4)

        # ---- readout MLP ----
        r = jnp.maximum(jnp.dot(h, wr1, preferred_element_type=f32) + br1, 0.0)
        y = jnp.dot(r, wr2, preferred_element_type=f32) + br2          # (Bpad, 1)

        # lane-dense full-tile store (single unmasked vst); host slices [:B, 0].
        out_ref[...] = jnp.broadcast_to(y, (bsz, OUT_LANES))

    return kernel


# ------------------------------ wrapper --------------------------------------
def hybrid_neural_ode_forward(x, slab, offsets):
    bsz = x.shape[0]
    x2d = x.reshape(bsz, -1).astype(jnp.float32)        # (B, T*Din) = (B, 128)
    bpad = max(BATCH_PAD, ((bsz + 7) // 8) * 8)         # full f32 sublane tiles
    if bpad != bsz:
        x2d = jnp.pad(x2d, ((0, bpad - bsz), (0, 0)))
    kernel = _make_kernel(offsets)
    cost = pl.CostEstimate(flops=1_500_000, transcendentals=20_480,
                           bytes_accessed=64_000)
    vmem_spec = pl.BlockSpec(memory_space=pltpu.MemorySpace.VMEM)
    out = pl.pallas_call(
        kernel,
        out_shape=jax.ShapeDtypeStruct((bpad, OUT_LANES), jnp.float32),
        in_specs=[vmem_spec, vmem_spec],
        out_specs=vmem_spec,
        compiler_params=pltpu.CompilerParams(vmem_limit_bytes=4 * 1024 * 1024),
        cost_estimate=cost,
    )(x2d, slab)
    return out[:bsz, 0]                                  # matches torch .squeeze(-1) -> (B,)


# ------------------------------ main ------------------------------------------
if __name__ == "__main__":
    key = jax.random.PRNGKey(0)
    k_param, k_x = jax.random.split(key)
    slab, offsets = init_params(k_param)
    x = jax.random.normal(k_x, (B, T, INPUT_DIM), dtype=jnp.float32)

    # TODO(synk): EventEncoder branch omitted (event_dim=0 default => unused in forward).
    out = hybrid_neural_ode_forward(x, slab, offsets)
    out = jax.block_until_ready(out)
    assert out.shape == (B,) and out.dtype == jnp.float32
    assert bool(jnp.all(jnp.isfinite(out)))
    print("KERNEL_OK")
</pallas_src>

<mosaic_0001>
module attributes {stable_mosaic.version = 11 : i64} {
  func.func @kernel(%arg0: memref<8x128xf32, #tpu.memory_space<vmem>>, %arg1: memref<280x32xf32, #tpu.memory_space<vmem>>, %arg2: memref<8x128xf32, #tpu.memory_space<vmem>>) attributes {dimension_semantics = [], scalar_prefetch = 0 : i64, scratch_operands = 0 : i64, tpu.core_type = #tpu.core_type<tc>} {
    %c0 = arith.constant 0 : index
    %c0_0 = arith.constant 0 : index
    %0 = vector.load %arg0[%c0, %c0_0] : memref<8x128xf32, #tpu.memory_space<vmem>>, vector<8x128xf32>
    %c0_1 = arith.constant 0 : index
    %c0_2 = arith.constant 0 : index
    %1 = vector.load %arg1[%c0_1, %c0_2] : memref<280x32xf32, #tpu.memory_space<vmem>>, vector<128x32xf32>
    %c128 = arith.constant 128 : index
    %c0_3 = arith.constant 0 : index
    %2 = vector.load %arg1[%c128, %c0_3] : memref<280x32xf32, #tpu.memory_space<vmem>>, vector<1x32xf32>
    %c136 = arith.constant 136 : index
    %c0_4 = arith.constant 0 : index
    %3 = vector.load %arg1[%c136, %c0_4] : memref<280x32xf32, #tpu.memory_space<vmem>>, vector<32x32xf32>
    %c168 = arith.constant 168 : index
    %c0_5 = arith.constant 0 : index
    %4 = vector.load %arg1[%c168, %c0_5] : memref<280x32xf32, #tpu.memory_space<vmem>>, vector<1x32xf32>
    %c176 = arith.constant 176 : index
    %c0_6 = arith.constant 0 : index
    %5 = vector.load %arg1[%c176, %c0_6] : memref<280x32xf32, #tpu.memory_space<vmem>>, vector<32x32xf32>
    %c208 = arith.constant 208 : index
    %c0_7 = arith.constant 0 : index
    %6 = vector.load %arg1[%c208, %c0_7] : memref<280x32xf32, #tpu.memory_space<vmem>>, vector<1x32xf32>
    %c216 = arith.constant 216 : index
    %c0_8 = arith.constant 0 : index
    %7 = vector.load %arg1[%c216, %c0_8] : memref<280x32xf32, #tpu.memory_space<vmem>>, vector<32x16xf32>
    %c248 = arith.constant 248 : index
    %c0_9 = arith.constant 0 : index
    %8 = vector.load %arg1[%c248, %c0_9] : memref<280x32xf32, #tpu.memory_space<vmem>>, vector<1x16xf32>
    %c256 = arith.constant 256 : index
    %c0_10 = arith.constant 0 : index
    %9 = vector.load %arg1[%c256, %c0_10] : memref<280x32xf32, #tpu.memory_space<vmem>>, vector<16x1xf32>
    %c272 = arith.constant 272 : index
    %c0_11 = arith.constant 0 : index
    %10 = vector.load %arg1[%c272, %c0_11] : memref<280x32xf32, #tpu.memory_space<vmem>>, vector<1x1xf32>
    %cst = arith.constant dense<0.000000e+00> : vector<8x32xf32>
    %11 = tpu.matmul %0, %1, %cst {dimension_numbers = #tpu.dot_dimension_numbers<[1], [0], [0], [1], [0, 0, 1, 1], [], []>} : vector<8x128xf32>, vector<128x32xf32>, vector<8x32xf32> -> vector<8x32xf32>
    %12 = vector.broadcast %2 : vector<1x32xf32> to vector<8x32xf32>
    %13 = arith.addf %11, %12 : vector<8x32xf32>
    %14 = vector.shape_cast %4 : vector<1x32xf32> to vector<1x32xf32>
    %15 = vector.broadcast %14 : vector<1x32xf32> to vector<8x32xf32>
    %16 = vector.shape_cast %6 : vector<1x32xf32> to vector<1x32xf32>
    %17 = vector.broadcast %16 : vector<1x32xf32> to vector<8x32xf32>
    %cst_12 = arith.constant dense<0.000000e+00> : vector<8x32xf32>
    %18 = tpu.matmul %13, %3, %cst_12 {dimension_numbers = #tpu.dot_dimension_numbers<[1], [0], [0], [1], [0, 0, 1, 1], [], []>} : vector<8x32xf32>, vector<32x32xf32>, vector<8x32xf32> -> vector<8x32xf32>
    %19 = arith.addf %18, %15 : vector<8x32xf32>
    %cst_13 = arith.constant 0.000000e+00 : f32
    %20 = vector.broadcast %cst_13 : f32 to vector<8x32xf32>
    %21 = arith.subf %20, %19 : vector<8x32xf32>
    %22 = math.exp %21 : vector<8x32xf32>
    %cst_14 = arith.constant 1.000000e+00 : f32
    %23 = vector.broadcast %cst_14 : f32 to vector<8x32xf32>
    %24 = arith.addf %23, %22 : vector<8x32xf32>
    %25 = tpu.reciprocal %24 {approx = true} : vector<8x32xf32> -> vector<8x32xf32>
    %26 = arith.mulf %19, %25 : vector<8x32xf32>
    %cst_15 = arith.constant dense<0.000000e+00> : vector<8x32xf32>
    %27 = tpu.matmul %26, %5, %cst_15 {dimension_numbers = #tpu.dot_dimension_numbers<[1], [0], [0], [1], [0, 0, 1, 1], [], []>} : vector<8x32xf32>, vector<32x32xf32>, vector<8x32xf32> -> vector<8x32xf32>
    %28 = arith.addf %27, %17 : vector<8x32xf32>
    %cst_16 = arith.constant -1.000000e+01 : f32
    %cst_17 = arith.constant 1.000000e+01 : f32
    %29 = vector.broadcast %cst_16 : f32 to vector<8x32xf32>
    %30 = arith.maximumf %29, %28 : vector<8x32xf32>
    %31 = vector.broadcast %cst_17 : f32 to vector<8x32xf32>
    %32 = arith.minimumf %31, %30 : vector<8x32xf32>
    %cst_18 = arith.constant 0.0333333351 : f32
    %33 = vector.broadcast %cst_18 : f32 to vector<8x32xf32>
    %34 = arith.mulf %33, %32 : vector<8x32xf32>
    %35 = arith.addf %13, %34 : vector<8x32xf32>
    %cst_19 = arith.constant dense<0.000000e+00> : vector<8x32xf32>
    %36 = tpu.matmul %35, %3, %cst_19 {dimension_numbers = #tpu.dot_dimension_numbers<[1], [0], [0], [1], [0, 0, 1, 1], [], []>} : vector<8x32xf32>, vector<32x32xf32>, vector<8x32xf32> -> vector<8x32xf32>
    %37 = arith.addf %36, %15 : vector<8x32xf32>
    %cst_20 = arith.constant 0.000000e+00 : f32
    %38 = vector.broadcast %cst_20 : f32 to vector<8x32xf32>
    %39 = arith.subf %38, %37 : vector<8x32xf32>
    %40 = math.exp %39 : vector<8x32xf32>
    %cst_21 = arith.constant 1.000000e+00 : f32
    %41 = vector.broadcast %cst_21 : f32 to vector<8x32xf32>
    %42 = arith.addf %41, %40 : vector<8x32xf32>
    %43 = tpu.reciprocal %42 {approx = true} : vector<8x32xf32> -> vector<8x32xf32>
    %44 = arith.mulf %37, %43 : vector<8x32xf32>
    %cst_22 = arith.constant dense<0.000000e+00> : vector<8x32xf32>
    %45 = tpu.matmul %44, %5, %cst_22 {dimension_numbers = #tpu.dot_dimension_numbers<[1], [0], [0], [1], [0, 0, 1, 1], [], []>} : vector<8x32xf32>, vector<32x32xf32>, vector<8x32xf32> -> vector<8x32xf32>
    %46 = arith.addf %45, %17 : vector<8x32xf32>
    %cst_23 = arith.constant -1.000000e+01 : f32
    %cst_24 = arith.constant 1.000000e+01 : f32
    %47 = vector.broadcast %cst_23 : f32 to vector<8x32xf32>
    %48 = arith.maximumf %47, %46 : vector<8x32xf32>
    %49 = vector.broadcast %cst_24 : f32 to vector<8x32xf32>
    %50 = arith.minimumf %49, %48 : vector<8x32xf32>
    %cst_25 = arith.constant 0.333333343 : f32
    %51 = vector.broadcast %cst_25 : f32 to vector<8x32xf32>
    %52 = arith.mulf %51, %32 : vector<8x32xf32>
    %53 = arith.subf %50, %52 : vector<8x32xf32>
    %cst_26 = arith.constant 1.000000e-01 : f32
    %54 = vector.broadcast %cst_26 : f32 to vector<8x32xf32>
    %55 = arith.mulf %54, %53 : vector<8x32xf32>
    %56 = arith.addf %13, %55 : vector<8x32xf32>
    %cst_27 = arith.constant dense<0.000000e+00> : vector<8x32xf32>
    %57 = tpu.matmul %56, %3, %cst_27 {dimension_numbers = #tpu.dot_dimension_numbers<[1], [0], [0], [1], [0, 0, 1, 1], [], []>} : vector<8x32xf32>, vector<32x32xf32>, vector<8x32xf32> -> vector<8x32xf32>
    %58 = arith.addf %57, %15 : vector<8x32xf32>
    %cst_28 = arith.constant 0.000000e+00 : f32
    %59 = vector.broadcast %cst_28 : f32 to vector<8x32xf32>
    %60 = arith.subf %59, %58 : vector<8x32xf32>
    %61 = math.exp %60 : vector<8x32xf32>
    %cst_29 = arith.constant 1.000000e+00 : f32
    %62 = vector.broadcast %cst_29 : f32 to vector<8x32xf32>
    %63 = arith.addf %62, %61 : vector<8x32xf32>
    %64 = tpu.reciprocal %63 {approx = true} : vector<8x32xf32> -> vector<8x32xf32>
    %65 = arith.mulf %58, %64 : vector<8x32xf32>
    %cst_30 = arith.constant dense<0.000000e+00> : vector<8x32xf32>
    %66 = tpu.matmul %65, %5, %cst_30 {dimension_numbers = #tpu.dot_dimension_numbers<[1], [0], [0], [1], [0, 0, 1, 1], [], []>} : vector<8x32xf32>, vector<32x32xf32>, vector<8x32xf32> -> vector<8x32xf32>
    %67 = arith.addf %66, %17 : vector<8x32xf32>
    %cst_31 = arith.constant -1.000000e+01 : f32
    %cst_32 = arith.constant 1.000000e+01 : f32
    %68 = vector.broadcast %cst_31 : f32 to vector<8x32xf32>
    %69 = arith.maximumf %68, %67 : vector<8x32xf32>
    %70 = vector.broadcast %cst_32 : f32 to vector<8x32xf32>
    %71 = arith.minimumf %70, %69 : vector<8x32xf32>
    %72 = arith.subf %32, %50 : vector<8x32xf32>
    %73 = arith.addf %72, %71 : vector<8x32xf32>
    %cst_33 = arith.constant 1.000000e-01 : f32
    %74 = vector.broadcast %cst_33 : f32 to vector<8x32xf32>
    %75 = arith.mulf %74, %73 : vector<8x32xf32>
    %76 = arith.addf %13, %75 : vector<8x32xf32>
    %cst_34 = arith.constant dense<0.000000e+00> : vector<8x32xf32>
    %77 = tpu.matmul %76, %3, %cst_34 {dimension_numbers = #tpu.dot_dimension_numbers<[1], [0], [0], [1], [0, 0, 1, 1], [], []>} : vector<8x32xf32>, vector<32x32xf32>, vector<8x32xf32> -> vector<8x32xf32>
    %78 = arith.addf %77, %15 : vector<8x32xf32>
    %cst_35 = arith.constant 0.000000e+00 : f32
    %79 = vector.broadcast %cst_35 : f32 to vector<8x32xf32>
    %80 = arith.subf %79, %78 : vector<8x32xf32>
    %81 = math.exp %80 : vector<8x32xf32>
    %cst_36 = arith.constant 1.000000e+00 : f32
    %82 = vector.broadcast %cst_36 : f32 to vector<8x32xf32>
    %83 = arith.addf %82, %81 : vector<8x32xf32>
    %84 = tpu.reciprocal %83 {approx = true} : vector<8x32xf32> -> vector<8x32xf32>
    %85 = arith.mulf %78, %84 : vector<8x32xf32>
    %cst_37 = arith.constant dense<0.000000e+00> : vector<8x32xf32>
    %86 = tpu.matmul %85, %5, %cst_37 {dimension_numbers = #tpu.dot_dimension_numbers<[1], [0], [0], [1], [0, 0, 1, 1], [], []>} : vector<8x32xf32>, vector<32x32xf32>, vector<8x32xf32> -> vector<8x32xf32>
    %87 = arith.addf %86, %17 : vector<8x32xf32>
    %cst_38 = arith.constant -1.000000e+01 : f32
    %cst_39 = arith.constant 1.000000e+01 : f32
    %88 = vector.broadcast %cst_38 : f32 to vector<8x32xf32>
    %89 = arith.maximumf %88, %87 : vector<8x32xf32>
    %90 = vector.broadcast %cst_39 : f32 to vector<8x32xf32>
    %91 = arith.minimumf %90, %89 : vector<8x32xf32>
    %92 = arith.addf %50, %71 : vector<8x32xf32>
    %cst_40 = arith.constant 3.000000e+00 : f32
    %93 = vector.broadcast %cst_40 : f32 to vector<8x32xf32>
    %94 = arith.mulf %93, %92 : vector<8x32xf32>
    %95 = arith.addf %32, %94 : vector<8x32xf32>
    %96 = arith.addf %95, %91 : vector<8x32xf32>
    %cst_41 = arith.constant 1.250000e-02 : f32
    %97 = vector.broadcast %cst_41 : f32 to vector<8x32xf32>
    %98 = arith.mulf %97, %96 : vector<8x32xf32>
    %99 = arith.addf %13, %98 : vector<8x32xf32>
    %cst_42 = arith.constant dense<0.000000e+00> : vector<8x32xf32>
    %100 = tpu.matmul %99, %3, %cst_42 {dimension_numbers = #tpu.dot_dimension_numbers<[1], [0], [0], [1], [0, 0, 1, 1], [], []>} : vector<8x32xf32>, vector<32x32xf32>, vector<8x32xf32> -> vector<8x32xf32>
    %101 = arith.addf %100, %15 : vector<8x32xf32>
    %cst_43 = arith.constant 0.000000e+00 : f32
    %102 = vector.broadcast %cst_43 : f32 to vector<8x32xf32>
    %103 = arith.subf %102, %101 : vector<8x32xf32>
    %104 = math.exp %103 : vector<8x32xf32>
    %cst_44 = arith.constant 1.000000e+00 : f32
    %105 = vector.broadcast %cst_44 : f32 to vector<8x32xf32>
    %106 = arith.addf %105, %104 : vector<8x32xf32>
    %107 = tpu.reciprocal %106 {approx = true} : vector<8x32xf32> -> vector<8x32xf32>
    %108 = arith.mulf %101, %107 : vector<8x32xf32>
    %cst_45 = arith.constant dense<0.000000e+00> : vector<8x32xf32>
    %109 = tpu.matmul %108, %5, %cst_45 {dimension_numbers = #tpu.dot_dimension_numbers<[1], [0], [0], [1], [0, 0, 1, 1], [], []>} : vector<8x32xf32>, vector<32x32xf32>, vector<8x32xf32> -> vector<8x32xf32>
    %110 = arith.addf %109, %17 : vector<8x32xf32>
    %cst_46 = arith.constant -1.000000e+01 : f32
    %cst_47 = arith.constant 1.000000e+01 : f32
    %111 = vector.broadcast %cst_46 : f32 to vector<8x32xf32>
    %112 = arith.maximumf %111, %110 : vector<8x32xf32>
    %113 = vector.broadcast %cst_47 : f32 to vector<8x32xf32>
    %114 = arith.minimumf %113, %112 : vector<8x32xf32>
    %cst_48 = arith.constant 0.0333333351 : f32
    %115 = vector.broadcast %cst_48 : f32 to vector<8x32xf32>
    %116 = arith.mulf %115, %114 : vector<8x32xf32>
    %117 = arith.addf %99, %116 : vector<8x32xf32>
    %cst_49 = arith.constant dense<0.000000e+00> : vector<8x32xf32>
    %118 = tpu.matmul %117, %3, %cst_49 {dimension_numbers = #tpu.dot_dimension_numbers<[1], [0], [0], [1], [0, 0, 1, 1], [], []>} : vector<8x32xf32>, vector<32x32xf32>, vector<8x32xf32> -> vector<8x32xf32>
    %119 = arith.addf %118, %15 : vector<8x32xf32>
    %cst_50 = arith.constant 0.000000e+00 : f32
    %120 = vector.broadcast %cst_50 : f32 to vector<8x32xf32>
    %121 = arith.subf %120, %119 : vector<8x32xf32>
    %122 = math.exp %121 : vector<8x32xf32>
    %cst_51 = arith.constant 1.000000e+00 : f32
    %123 = vector.broadcast %cst_51 : f32 to vector<8x32xf32>
    %124 = arith.addf %123, %122 : vector<8x32xf32>
    %125 = tpu.reciprocal %124 {approx = true} : vector<8x32xf32> -> vector<8x32xf32>
    %126 = arith.mulf %119, %125 : vector<8x32xf32>
    %cst_52 = arith.constant dense<0.000000e+00> : vector<8x32xf32>
    %127 = tpu.matmul %126, %5, %cst_52 {dimension_numbers = #tpu.dot_dimension_numbers<[1], [0], [0], [1], [0, 0, 1, 1], [], []>} : vector<8x32xf32>, vector<32x32xf32>, vector<8x32xf32> -> vector<8x32xf32>
    %128 = arith.addf %127, %17 : vector<8x32xf32>
    %cst_53 = arith.constant -1.000000e+01 : f32
    %cst_54 = arith.constant 1.000000e+01 : f32
    %129 = vector.broadcast %cst_53 : f32 to vector<8x32xf32>
    %130 = arith.maximumf %129, %128 : vector<8x32xf32>
    %131 = vector.broadcast %cst_54 : f32 to vector<8x32xf32>
    %132 = arith.minimumf %131, %130 : vector<8x32xf32>
    %cst_55 = arith.constant 0.333333343 : f32
    %133 = vector.broadcast %cst_55 : f32 to vector<8x32xf32>
    %134 = arith.mulf %133, %114 : vector<8x32xf32>
    %135 = arith.subf %132, %134 : vector<8x32xf32>
    %cst_56 = arith.constant 1.000000e-01 : f32
    %136 = vector.broadcast %cst_56 : f32 to vector<8x32xf32>
    %137 = arith.mulf %136, %135 : vector<8x32xf32>
    %138 = arith.addf %99, %137 : vector<8x32xf32>
    %cst_57 = arith.constant dense<0.000000e+00> : vector<8x32xf32>
    %139 = tpu.matmul %138, %3, %cst_57 {dimension_numbers = #tpu.dot_dimension_numbers<[1], [0], [0], [1], [0, 0, 1, 1], [], []>} : vector<8x32xf32>, vector<32x32xf32>, vector<8x32xf32> -> vector<8x32xf32>
    %140 = arith.addf %139, %15 : vector<8x32xf32>
    %cst_58 = arith.constant 0.000000e+00 : f32
    %141 = vector.broadcast %cst_58 : f32 to vector<8x32xf32>
    %142 = arith.subf %141, %140 : vector<8x32xf32>
    %143 = math.exp %142 : vector<8x32xf32>
    %cst_59 = arith.constant 1.000000e+00 : f32
    %144 = vector.broadcast %cst_59 : f32 to vector<8x32xf32>
    %145 = arith.addf %144, %143 : vector<8x32xf32>
    %146 = tpu.reciprocal %145 {approx = true} : vector<8x32xf32> -> vector<8x32xf32>
    %147 = arith.mulf %140, %146 : vector<8x32xf32>
    %cst_60 = arith.constant dense<0.000000e+00> : vector<8x32xf32>
    %148 = tpu.matmul %147, %5, %cst_60 {dimension_numbers = #tpu.dot_dimension_numbers<[1], [0], [0], [1], [0, 0, 1, 1], [], []>} : vector<8x32xf32>, vector<32x32xf32>, vector<8x32xf32> -> vector<8x32xf32>
    %149 = arith.addf %148, %17 : vector<8x32xf32>
    %cst_61 = arith.constant -1.000000e+01 : f32
    %cst_62 = arith.constant 1.000000e+01 : f32
    %150 = vector.broadcast %cst_61 : f32 to vector<8x32xf32>
    %151 = arith.maximumf %150, %149 : vector<8x32xf32>
    %152 = vector.broadcast %cst_62 : f32 to vector<8x32xf32>
    %153 = arith.minimumf %152, %151 : vector<8x32xf32>
    %154 = arith.subf %114, %132 : vector<8x32xf32>
    %155 = arith.addf %154, %153 : vector<8x32xf32>
    %cst_63 = arith.constant 1.000000e-01 : f32
    %156 = vector.broadcast %cst_63 : f32 to vector<8x32xf32>
    %157 = arith.mulf %156, %155 : vector<8x32xf32>
    %158 = arith.addf %99, %157 : vector<8x32xf32>
    %cst_64 = arith.constant dense<0.000000e+00> : vector<8x32xf32>
    %159 = tpu.matmul %158, %3, %cst_64 {dimension_numbers = #tpu.dot_dimension_numbers<[1], [0], [0], [1], [0, 0, 1, 1], [], []>} : vector<8x32xf32>, vector<32x32xf32>, vector<8x32xf32> -> vector<8x32xf32>
    %160 = arith.addf %159, %15 : vector<8x32xf32>
    %cst_65 = arith.constant 0.000000e+00 : f32
    %161 = vector.broadcast %cst_65 : f32 to vector<8x32xf32>
    %162 = arith.subf %161, %160 : vector<8x32xf32>
    %163 = math.exp %162 : vector<8x32xf32>
    %cst_66 = arith.constant 1.000000e+00 : f32
    %164 = vector.broadcast %cst_66 : f32 to vector<8x32xf32>
    %165 = arith.addf %164, %163 : vector<8x32xf32>
    %166 = tpu.reciprocal %165 {approx = true} : vector<8x32xf32> -> vector<8x32xf32>
    %167 = arith.mulf %160, %166 : vector<8x32xf32>
    %cst_67 = arith.constant dense<0.000000e+00> : vector<8x32xf32>
    %168 = tpu.matmul %167, %5, %cst_67 {dimension_numbers = #tpu.dot_dimension_numbers<[1], [0], [0], [1], [0, 0, 1, 1], [], []>} : vector<8x32xf32>, vector<32x32xf32>, vector<8x32xf32> -> vector<8x32xf32>
    %169 = arith.addf %168, %17 : vector<8x32xf32>
    %cst_68 = arith.constant -1.000000e+01 : f32
    %cst_69 = arith.constant 1.000000e+01 : f32
    %170 = vector.broadcast %cst_68 : f32 to vector<8x32xf32>
    %171 = arith.maximumf %170, %169 : vector<8x32xf32>
    %172 = vector.broadcast %cst_69 : f32 to vector<8x32xf32>
    %173 = arith.minimumf %172, %171 : vector<8x32xf32>
    %174 = arith.addf %132, %153 : vector<8x32xf32>
    %cst_70 = arith.constant 3.000000e+00 : f32
    %175 = vector.broadcast %cst_70 : f32 to vector<8x32xf32>
    %176 = arith.mulf %175, %174 : vector<8x32xf32>
    %177 = arith.addf %114, %176 : vector<8x32xf32>
    %178 = arith.addf %177, %173 : vector<8x32xf32>
    %cst_71 = arith.constant 1.250000e-02 : f32
    %179 = vector.broadcast %cst_71 : f32 to vector<8x32xf32>
    %180 = arith.mulf %179, %178 : vector<8x32xf32>
    %181 = arith.addf %99, %180 : vector<8x32xf32>
    %cst_72 = arith.constant dense<0.000000e+00> : vector<8x32xf32>
    %182 = tpu.matmul %181, %3, %cst_72 {dimension_numbers = #tpu.dot_dimension_numbers<[1], [0], [0], [1], [0, 0, 1, 1], [], []>} : vector<8x32xf32>, vector<32x32xf32>, vector<8x32xf32> -> vector<8x32xf32>
    %183 = arith.addf %182, %15 : vector<8x32xf32>
    %cst_73 = arith.constant 0.000000e+00 : f32
    %184 = vector.broadcast %cst_73 : f32 to vector<8x32xf32>
    %185 = arith.subf %184, %183 : vector<8x32xf32>
    %186 = math.exp %185 : vector<8x32xf32>
    %cst_74 = arith.constant 1.000000e+00 : f32
    %187 = vector.broadcast %cst_74 : f32 to vector<8x32xf32>
    %188 = arith.addf %187, %186 : vector<8x32xf32>
    %189 = tpu.reciprocal %188 {approx = true} : vector<8x32xf32> -> vector<8x32xf32>
    %190 = arith.mulf %183, %189 : vector<8x32xf32>
    %cst_75 = arith.constant dense<0.000000e+00> : vector<8x32xf32>
    %191 = tpu.matmul %190, %5, %cst_75 {dimension_numbers = #tpu.dot_dimension_numbers<[1], [0], [0], [1], [0, 0, 1, 1], [], []>} : vector<8x32xf32>, vector<32x32xf32>, vector<8x32xf32> -> vector<8x32xf32>
    %192 = arith.addf %191, %17 : vector<8x32xf32>
    %cst_76 = arith.constant -1.000000e+01 : f32
    %cst_77 = arith.constant 1.000000e+01 : f32
    %193 = vector.broadcast %cst_76 : f32 to vector<8x32xf32>
    %194 = arith.maximumf %193, %192 : vector<8x32xf32>
    %195 = vector.broadcast %cst_77 : f32 to vector<8x32xf32>
    %196 = arith.minimumf %195, %194 : vector<8x32xf32>
    %cst_78 = arith.constant 0.0333333351 : f32
    %197 = vector.broadcast %cst_78 : f32 to vector<8x32xf32>
    %198 = arith.mulf %197, %196 : vector<8x32xf32>
    %199 = arith.addf %181, %198 : vector<8x32xf32>
    %cst_79 = arith.constant dense<0.000000e+00> : vector<8x32xf32>
    %200 = tpu.matmul %199, %3, %cst_79 {dimension_numbers = #tpu.dot_dimension_numbers<[1], [0], [0], [1], [0, 0, 1, 1], [], []>} : vector<8x32xf32>, vector<32x32xf32>, vector<8x32xf32> -> vector<8x32xf32>
    %201 = arith.addf %200, %15 : vector<8x32xf32>
    %cst_80 = arith.constant 0.000000e+00 : f32
    %202 = vector.broadcast %cst_80 : f32 to vector<8x32xf32>
    %203 = arith.subf %202, %201 : vector<8x32xf32>
    %204 = math.exp %203 : vector<8x32xf32>
    %cst_81 = arith.constant 1.000000e+00 : f32
    %205 = vector.broadcast %cst_81 : f32 to vector<8x32xf32>
    %206 = arith.addf %205, %204 : vector<8x32xf32>
    %207 = tpu.reciprocal %206 {approx = true} : vector<8x32xf32> -> vector<8x32xf32>
    %208 = arith.mulf %201, %207 : vector<8x32xf32>
    %cst_82 = arith.constant dense<0.000000e+00> : vector<8x32xf32>
    %209 = tpu.matmul %208, %5, %cst_82 {dimension_numbers = #tpu.dot_dimension_numbers<[1], [0], [0], [1], [0, 0, 1, 1], [], []>} : vector<8x32xf32>, vector<32x32xf32>, vector<8x32xf32> -> vector<8x32xf32>
    %210 = arith.addf %209, %17 : vector<8x32xf32>
    %cst_83 = arith.constant -1.000000e+01 : f32
    %cst_84 = arith.constant 1.000000e+01 : f32
    %211 = vector.broadcast %cst_83 : f32 to vector<8x32xf32>
    %212 = arith.maximumf %211, %210 : vector<8x32xf32>
    %213 = vector.broadcast %cst_84 : f32 to vector<8x32xf32>
    %214 = arith.minimumf %213, %212 : vector<8x32xf32>
    %cst_85 = arith.constant 0.333333343 : f32
    %215 = vector.broadcast %cst_85 : f32 to vector<8x32xf32>
    %216 = arith.mulf %215, %196 : vector<8x32xf32>
    %217 = arith.subf %214, %216 : vector<8x32xf32>
    %cst_86 = arith.constant 1.000000e-01 : f32
    %218 = vector.broadcast %cst_86 : f32 to vector<8x32xf32>
    %219 = arith.mulf %218, %217 : vector<8x32xf32>
    %220 = arith.addf %181, %219 : vector<8x32xf32>
    %cst_87 = arith.constant dense<0.000000e+00> : vector<8x32xf32>
    %221 = tpu.matmul %220, %3, %cst_87 {dimension_numbers = #tpu.dot_dimension_numbers<[1], [0], [0], [1], [0, 0, 1, 1], [], []>} : vector<8x32xf32>, vector<32x32xf32>, vector<8x32xf32> -> vector<8x32xf32>
    %222 = arith.addf %221, %15 : vector<8x32xf32>
    %cst_88 = arith.constant 0.000000e+00 : f32
    %223 = vector.broadcast %cst_88 : f32 to vector<8x32xf32>
    %224 = arith.subf %223, %222 : vector<8x32xf32>
    %225 = math.exp %224 : vector<8x32xf32>
    %cst_89 = arith.constant 1.000000e+00 : f32
    %226 = vector.broadcast %cst_89 : f32 to vector<8x32xf32>
    %227 = arith.addf %226, %225 : vector<8x32xf32>
    %228 = tpu.reciprocal %227 {approx = true} : vector<8x32xf32> -> vector<8x32xf32>
    %229 = arith.mulf %222, %228 : vector<8x32xf32>
    %cst_90 = arith.constant dense<0.000000e+00> : vector<8x32xf32>
    %230 = tpu.matmul %229, %5, %cst_90 {dimension_numbers = #tpu.dot_dimension_numbers<[1], [0], [0], [1], [0, 0, 1, 1], [], []>} : vector<8x32xf32>, vector<32x32xf32>, vector<8x32xf32> -> vector<8x32xf32>
    %231 = arith.addf %230, %17 : vector<8x32xf32>
    %cst_91 = arith.constant -1.000000e+01 : f32
    %cst_92 = arith.constant 1.000000e+01 : f32
    %232 = vector.broadcast %cst_91 : f32 to vector<8x32xf32>
    %233 = arith.maximumf %232, %231 : vector<8x32xf32>
    %234 = vector.broadcast %cst_92 : f32 to vector<8x32xf32>
    %235 = arith.minimumf %234, %233 : vector<8x32xf32>
    %236 = arith.subf %196, %214 : vector<8x32xf32>
    %237 = arith.addf %236, %235 : vector<8x32xf32>
    %cst_93 = arith.constant 1.000000e-01 : f32
    %238 = vector.broadcast %cst_93 : f32 to vector<8x32xf32>
    %239 = arith.mulf %238, %237 : vector<8x32xf32>
    %240 = arith.addf %181, %239 : vector<8x32xf32>
    %cst_94 = arith.constant dense<0.000000e+00> : vector<8x32xf32>
    %241 = tpu.matmul %240, %3, %cst_94 {dimension_numbers = #tpu.dot_dimension_numbers<[1], [0], [0], [1], [0, 0, 1, 1], [], []>} : vector<8x32xf32>, vector<32x32xf32>, vector<8x32xf32> -> vector<8x32xf32>
    %242 = arith.addf %241, %15 : vector<8x32xf32>
    %cst_95 = arith.constant 0.000000e+00 : f32
    %243 = vector.broadcast %cst_95 : f32 to vector<8x32xf32>
    %244 = arith.subf %243, %242 : vector<8x32xf32>
    %245 = math.exp %244 : vector<8x32xf32>
    %cst_96 = arith.constant 1.000000e+00 : f32
    %246 = vector.broadcast %cst_96 : f32 to vector<8x32xf32>
    %247 = arith.addf %246, %245 : vector<8x32xf32>
    %248 = tpu.reciprocal %247 {approx = true} : vector<8x32xf32> -> vector<8x32xf32>
    %249 = arith.mulf %242, %248 : vector<8x32xf32>
    %cst_97 = arith.constant dense<0.000000e+00> : vector<8x32xf32>
    %250 = tpu.matmul %249, %5, %cst_97 {dimension_numbers = #tpu.dot_dimension_numbers<[1], [0], [0], [1], [0, 0, 1, 1], [], []>} : vector<8x32xf32>, vector<32x32xf32>, vector<8x32xf32> -> vector<8x32xf32>
    %251 = arith.addf %250, %17 : vector<8x32xf32>
    %cst_98 = arith.constant -1.000000e+01 : f32
    %cst_99 = arith.constant 1.000000e+01 : f32
    %252 = vector.broadcast %cst_98 : f32 to vector<8x32xf32>
    %253 = arith.maximumf %252, %251 : vector<8x32xf32>
    %254 = vector.broadcast %cst_99 : f32 to vector<8x32xf32>
    %255 = arith.minimumf %254, %253 : vector<8x32xf32>
    %256 = arith.addf %214, %235 : vector<8x32xf32>
    %cst_100 = arith.constant 3.000000e+00 : f32
    %257 = vector.broadcast %cst_100 : f32 to vector<8x32xf32>
    %258 = arith.mulf %257, %256 : vector<8x32xf32>
    %259 = arith.addf %196, %258 : vector<8x32xf32>
    %260 = arith.addf %259, %255 : vector<8x32xf32>
    %cst_101 = arith.constant 1.250000e-02 : f32
    %261 = vector.broadcast %cst_101 : f32 to vector<8x32xf32>
    %262 = arith.mulf %261, %260 : vector<8x32xf32>
    %263 = arith.addf %181, %262 : vector<8x32xf32>
    %cst_102 = arith.constant dense<0.000000e+00> : vector<8x32xf32>
    %264 = tpu.matmul %263, %3, %cst_102 {dimension_numbers = #tpu.dot_dimension_numbers<[1], [0], [0], [1], [0, 0, 1, 1], [], []>} : vector<8x32xf32>, vector<32x32xf32>, vector<8x32xf32> -> vector<8x32xf32>
    %265 = arith.addf %264, %15 : vector<8x32xf32>
    %cst_103 = arith.constant 0.000000e+00 : f32
    %266 = vector.broadcast %cst_103 : f32 to vector<8x32xf32>
    %267 = arith.subf %266, %265 : vector<8x32xf32>
    %268 = math.exp %267 : vector<8x32xf32>
    %cst_104 = arith.constant 1.000000e+00 : f32
    %269 = vector.broadcast %cst_104 : f32 to vector<8x32xf32>
    %270 = arith.addf %269, %268 : vector<8x32xf32>
    %271 = tpu.reciprocal %270 {approx = true} : vector<8x32xf32> -> vector<8x32xf32>
    %272 = arith.mulf %265, %271 : vector<8x32xf32>
    %cst_105 = arith.constant dense<0.000000e+00> : vector<8x32xf32>
    %273 = tpu.matmul %272, %5, %cst_105 {dimension_numbers = #tpu.dot_dimension_numbers<[1], [0], [0], [1], [0, 0, 1, 1], [], []>} : vector<8x32xf32>, vector<32x32xf32>, vector<8x32xf32> -> vector<8x32xf32>
    %274 = arith.addf %273, %17 : vector<8x32xf32>
    %cst_106 = arith.constant -1.000000e+01 : f32
    %cst_107 = arith.constant 1.000000e+01 : f32
    %275 = vector.broadcast %cst_106 : f32 to vector<8x32xf32>
    %276 = arith.maximumf %275, %274 : vector<8x32xf32>
    %277 = vector.broadcast %cst_107 : f32 to vector<8x32xf32>
    %278 = arith.minimumf %277, %276 : vector<8x32xf32>
    %cst_108 = arith.constant 0.0333333351 : f32
    %279 = vector.broadcast %cst_108 : f32 to vector<8x32xf32>
    %280 = arith.mulf %279, %278 : vector<8x32xf32>
    %281 = arith.addf %263, %280 : vector<8x32xf32>
    %cst_109 = arith.constant dense<0.000000e+00> : vector<8x32xf32>
    %282 = tpu.matmul %281, %3, %cst_109 {dimension_numbers = #tpu.dot_dimension_numbers<[1], [0], [0], [1], [0, 0, 1, 1], [], []>} : vector<8x32xf32>, vector<32x32xf32>, vector<8x32xf32> -> vector<8x32xf32>
    %283 = arith.addf %282, %15 : vector<8x32xf32>
    %cst_110 = arith.constant 0.000000e+00 : f32
    %284 = vector.broadcast %cst_110 : f32 to vector<8x32xf32>
    %285 = arith.subf %284, %283 : vector<8x32xf32>
    %286 = math.exp %285 : vector<8x32xf32>
    %cst_111 = arith.constant 1.000000e+00 : f32
    %287 = vector.broadcast %cst_111 : f32 to vector<8x32xf32>
    %288 = arith.addf %287, %286 : vector<8x32xf32>
    %289 = tpu.reciprocal %288 {approx = true} : vector<8x32xf32> -> vector<8x32xf32>
    %290 = arith.mulf %283, %289 : vector<8x32xf32>
    %cst_112 = arith.constant dense<0.000000e+00> : vector<8x32xf32>
    %291 = tpu.matmul %290, %5, %cst_112 {dimension_numbers = #tpu.dot_dimension_numbers<[1], [0], [0], [1], [0, 0, 1, 1], [], []>} : vector<8x32xf32>, vector<32x32xf32>, vector<8x32xf32> -> vector<8x32xf32>
    %292 = arith.addf %291, %17 : vector<8x32xf32>
    %cst_113 = arith.constant -1.000000e+01 : f32
    %cst_114 = arith.constant 1.000000e+01 : f32
    %293 = vector.broadcast %cst_113 : f32 to vector<8x32xf32>
    %294 = arith.maximumf %293, %292 : vector<8x32xf32>
    %295 = vector.broadcast %cst_114 : f32 to vector<8x32xf32>
    %296 = arith.minimumf %295, %294 : vector<8x32xf32>
    %cst_115 = arith.constant 0.333333343 : f32
    %297 = vector.broadcast %cst_115 : f32 to vector<8x32xf32>
    %298 = arith.mulf %297, %278 : vector<8x32xf32>
    %299 = arith.subf %296, %298 : vector<8x32xf32>
    %cst_116 = arith.constant 1.000000e-01 : f32
    %300 = vector.broadcast %cst_116 : f32 to vector<8x32xf32>
    %301 = arith.mulf %300, %299 : vector<8x32xf32>
    %302 = arith.addf %263, %301 : vector<8x32xf32>
    %cst_117 = arith.constant dense<0.000000e+00> : vector<8x32xf32>
    %303 = tpu.matmul %302, %3, %cst_117 {dimension_numbers = #tpu.dot_dimension_numbers<[1], [0], [0], [1], [0, 0, 1, 1], [], []>} : vector<8x32xf32>, vector<32x32xf32>, vector<8x32xf32> -> vector<8x32xf32>
    %304 = arith.addf %303, %15 : vector<8x32xf32>
    %cst_118 = arith.constant 0.000000e+00 : f32
    %305 = vector.broadcast %cst_118 : f32 to vector<8x32xf32>
    %306 = arith.subf %305, %304 : vector<8x32xf32>
    %307 = math.exp %306 : vector<8x32xf32>
    %cst_119 = arith.constant 1.000000e+00 : f32
    %308 = vector.broadcast %cst_119 : f32 to vector<8x32xf32>
    %309 = arith.addf %308, %307 : vector<8x32xf32>
    %310 = tpu.reciprocal %309 {approx = true} : vector<8x32xf32> -> vector<8x32xf32>
    %311 = arith.mulf %304, %310 : vector<8x32xf32>
    %cst_120 = arith.constant dense<0.000000e+00> : vector<8x32xf32>
    %312 = tpu.matmul %311, %5, %cst_120 {dimension_numbers = #tpu.dot_dimension_numbers<[1], [0], [0], [1], [0, 0, 1, 1], [], []>} : vector<8x32xf32>, vector<32x32xf32>, vector<8x32xf32> -> vector<8x32xf32>
    %313 = arith.addf %312, %17 : vector<8x32xf32>
    %cst_121 = arith.constant -1.000000e+01 : f32
    %cst_122 = arith.constant 1.000000e+01 : f32
    %314 = vector.broadcast %cst_121 : f32 to vector<8x32xf32>
    %315 = arith.maximumf %314, %313 : vector<8x32xf32>
    %316 = vector.broadcast %cst_122 : f32 to vector<8x32xf32>
    %317 = arith.minimumf %316, %315 : vector<8x32xf32>
    %318 = arith.subf %278, %296 : vector<8x32xf32>
    %319 = arith.addf %318, %317 : vector<8x32xf32>
    %cst_123 = arith.constant 1.000000e-01 : f32
    %320 = vector.broadcast %cst_123 : f32 to vector<8x32xf32>
    %321 = arith.mulf %320, %319 : vector<8x32xf32>
    %322 = arith.addf %263, %321 : vector<8x32xf32>
    %cst_124 = arith.constant dense<0.000000e+00> : vector<8x32xf32>
    %323 = tpu.matmul %322, %3, %cst_124 {dimension_numbers = #tpu.dot_dimension_numbers<[1], [0], [0], [1], [0, 0, 1, 1], [], []>} : vector<8x32xf32>, vector<32x32xf32>, vector<8x32xf32> -> vector<8x32xf32>
    %324 = arith.addf %323, %15 : vector<8x32xf32>
    %cst_125 = arith.constant 0.000000e+00 : f32
    %325 = vector.broadcast %cst_125 : f32 to vector<8x32xf32>
    %326 = arith.subf %325, %324 : vector<8x32xf32>
    %327 = math.exp %326 : vector<8x32xf32>
    %cst_126 = arith.constant 1.000000e+00 : f32
    %328 = vector.broadcast %cst_126 : f32 to vector<8x32xf32>
    %329 = arith.addf %328, %327 : vector<8x32xf32>
    %330 = tpu.reciprocal %329 {approx = true} : vector<8x32xf32> -> vector<8x32xf32>
    %331 = arith.mulf %324, %330 : vector<8x32xf32>
    %cst_127 = arith.constant dense<0.000000e+00> : vector<8x32xf32>
    %332 = tpu.matmul %331, %5, %cst_127 {dimension_numbers = #tpu.dot_dimension_numbers<[1], [0], [0], [1], [0, 0, 1, 1], [], []>} : vector<8x32xf32>, vector<32x32xf32>, vector<8x32xf32> -> vector<8x32xf32>
    %333 = arith.addf %332, %17 : vector<8x32xf32>
    %cst_128 = arith.constant -1.000000e+01 : f32
    %cst_129 = arith.constant 1.000000e+01 : f32
    %334 = vector.broadcast %cst_128 : f32 to vector<8x32xf32>
    %335 = arith.maximumf %334, %333 : vector<8x32xf32>
    %336 = vector.broadcast %cst_129 : f32 to vector<8x32xf32>
    %337 = arith.minimumf %336, %335 : vector<8x32xf32>
    %338 = arith.addf %296, %317 : vector<8x32xf32>
    %cst_130 = arith.constant 3.000000e+00 : f32
    %339 = vector.broadcast %cst_130 : f32 to vector<8x32xf32>
    %340 = arith.mulf %339, %338 : vector<8x32xf32>
    %341 = arith.addf %278, %340 : vector<8x32xf32>
    %342 = arith.addf %341, %337 : vector<8x32xf32>
    %cst_131 = arith.constant 1.250000e-02 : f32
    %343 = vector.broadcast %cst_131 : f32 to vector<8x32xf32>
    %344 = arith.mulf %343, %342 : vector<8x32xf32>
    %345 = arith.addf %263, %344 : vector<8x32xf32>
    %cst_132 = arith.constant dense<0.000000e+00> : vector<8x32xf32>
    %346 = tpu.matmul %345, %3, %cst_132 {dimension_numbers = #tpu.dot_dimension_numbers<[1], [0], [0], [1], [0, 0, 1, 1], [], []>} : vector<8x32xf32>, vector<32x32xf32>, vector<8x32xf32> -> vector<8x32xf32>
    %347 = arith.addf %346, %15 : vector<8x32xf32>
    %cst_133 = arith.constant 0.000000e+00 : f32
    %348 = vector.broadcast %cst_133 : f32 to vector<8x32xf32>
    %349 = arith.subf %348, %347 : vector<8x32xf32>
    %350 = math.exp %349 : vector<8x32xf32>
    %cst_134 = arith.constant 1.000000e+00 : f32
    %351 = vector.broadcast %cst_134 : f32 to vector<8x32xf32>
    %352 = arith.addf %351, %350 : vector<8x32xf32>
    %353 = tpu.reciprocal %352 {approx = true} : vector<8x32xf32> -> vector<8x32xf32>
    %354 = arith.mulf %347, %353 : vector<8x32xf32>
    %cst_135 = arith.constant dense<0.000000e+00> : vector<8x32xf32>
    %355 = tpu.matmul %354, %5, %cst_135 {dimension_numbers = #tpu.dot_dimension_numbers<[1], [0], [0], [1], [0, 0, 1, 1], [], []>} : vector<8x32xf32>, vector<32x32xf32>, vector<8x32xf32> -> vector<8x32xf32>
    %356 = arith.addf %355, %17 : vector<8x32xf32>
    %cst_136 = arith.constant -1.000000e+01 : f32
    %cst_137 = arith.constant 1.000000e+01 : f32
    %357 = vector.broadcast %cst_136 : f32 to vector<8x32xf32>
    %358 = arith.maximumf %357, %356 : vector<8x32xf32>
    %359 = vector.broadcast %cst_137 : f32 to vector<8x32xf32>
    %360 = arith.minimumf %359, %358 : vector<8x32xf32>
    %cst_138 = arith.constant 0.0333333351 : f32
    %361 = vector.broadcast %cst_138 : f32 to vector<8x32xf32>
    %362 = arith.mulf %361, %360 : vector<8x32xf32>
    %363 = arith.addf %345, %362 : vector<8x32xf32>
    %cst_139 = arith.constant dense<0.000000e+00> : vector<8x32xf32>
    %364 = tpu.matmul %363, %3, %cst_139 {dimension_numbers = #tpu.dot_dimension_numbers<[1], [0], [0], [1], [0, 0, 1, 1], [], []>} : vector<8x32xf32>, vector<32x32xf32>, vector<8x32xf32> -> vector<8x32xf32>
    %365 = arith.addf %364, %15 : vector<8x32xf32>
    %cst_140 = arith.constant 0.000000e+00 : f32
    %366 = vector.broadcast %cst_140 : f32 to vector<8x32xf32>
    %367 = arith.subf %366, %365 : vector<8x32xf32>
    %368 = math.exp %367 : vector<8x32xf32>
    %cst_141 = arith.constant 1.000000e+00 : f32
    %369 = vector.broadcast %cst_141 : f32 to vector<8x32xf32>
    %370 = arith.addf %369, %368 : vector<8x32xf32>
    %371 = tpu.reciprocal %370 {approx = true} : vector<8x32xf32> -> vector<8x32xf32>
    %372 = arith.mulf %365, %371 : vector<8x32xf32>
    %cst_142 = arith.constant dense<0.000000e+00> : vector<8x32xf32>
    %373 = tpu.matmul %372, %5, %cst_142 {dimension_numbers = #tpu.dot_dimension_numbers<[1], [0], [0], [1], [0, 0, 1, 1], [], []>} : vector<8x32xf32>, vector<32x32xf32>, vector<8x32xf32> -> vector<8x32xf32>
    %374 = arith.addf %373, %17 : vector<8x32xf32>
    %cst_143 = arith.constant -1.000000e+01 : f32
    %cst_144 = arith.constant 1.000000e+01 : f32
    %375 = vector.broadcast %cst_143 : f32 to vector<8x32xf32>
    %376 = arith.maximumf %375, %374 : vector<8x32xf32>
    %377 = vector.broadcast %cst_144 : f32 to vector<8x32xf32>
    %378 = arith.minimumf %377, %376 : vector<8x32xf32>
    %cst_145 = arith.constant 0.333333343 : f32
    %379 = vector.broadcast %cst_145 : f32 to vector<8x32xf32>
    %380 = arith.mulf %379, %360 : vector<8x32xf32>
    %381 = arith.subf %378, %380 : vector<8x32xf32>
    %cst_146 = arith.constant 1.000000e-01 : f32
    %382 = vector.broadcast %cst_146 : f32 to vector<8x32xf32>
    %383 = arith.mulf %382, %381 : vector<8x32xf32>
    %384 = arith.addf %345, %383 : vector<8x32xf32>
    %cst_147 = arith.constant dense<0.000000e+00> : vector<8x32xf32>
    %385 = tpu.matmul %384, %3, %cst_147 {dimension_numbers = #tpu.dot_dimension_numbers<[1], [0], [0], [1], [0, 0, 1, 1], [], []>} : vector<8x32xf32>, vector<32x32xf32>, vector<8x32xf32> -> vector<8x32xf32>
    %386 = arith.addf %385, %15 : vector<8x32xf32>
    %cst_148 = arith.constant 0.000000e+00 : f32
    %387 = vector.broadcast %cst_148 : f32 to vector<8x32xf32>
    %388 = arith.subf %387, %386 : vector<8x32xf32>
    %389 = math.exp %388 : vector<8x32xf32>
    %cst_149 = arith.constant 1.000000e+00 : f32
    %390 = vector.broadcast %cst_149 : f32 to vector<8x32xf32>
    %391 = arith.addf %390, %389 : vector<8x32xf32>
    %392 = tpu.reciprocal %391 {approx = true} : vector<8x32xf32> -> vector<8x32xf32>
    %393 = arith.mulf %386, %392 : vector<8x32xf32>
    %cst_150 = arith.constant dense<0.000000e+00> : vector<8x32xf32>
    %394 = tpu.matmul %393, %5, %cst_150 {dimension_numbers = #tpu.dot_dimension_numbers<[1], [0], [0], [1], [0, 0, 1, 1], [], []>} : vector<8x32xf32>, vector<32x32xf32>, vector<8x32xf32> -> vector<8x32xf32>
    %395 = arith.addf %394, %17 : vector<8x32xf32>
    %cst_151 = arith.constant -1.000000e+01 : f32
    %cst_152 = arith.constant 1.000000e+01 : f32
    %396 = vector.broadcast %cst_151 : f32 to vector<8x32xf32>
    %397 = arith.maximumf %396, %395 : vector<8x32xf32>
    %398 = vector.broadcast %cst_152 : f32 to vector<8x32xf32>
    %399 = arith.minimumf %398, %397 : vector<8x32xf32>
    %400 = arith.subf %360, %378 : vector<8x32xf32>
    %401 = arith.addf %400, %399 : vector<8x32xf32>
    %cst_153 = arith.constant 1.000000e-01 : f32
    %402 = vector.broadcast %cst_153 : f32 to vector<8x32xf32>
    %403 = arith.mulf %402, %401 : vector<8x32xf32>
    %404 = arith.addf %345, %403 : vector<8x32xf32>
    %cst_154 = arith.constant dense<0.000000e+00> : vector<8x32xf32>
    %405 = tpu.matmul %404, %3, %cst_154 {dimension_numbers = #tpu.dot_dimension_numbers<[1], [0], [0], [1], [0, 0, 1, 1], [], []>} : vector<8x32xf32>, vector<32x32xf32>, vector<8x32xf32> -> vector<8x32xf32>
    %406 = arith.addf %405, %15 : vector<8x32xf32>
    %cst_155 = arith.constant 0.000000e+00 : f32
    %407 = vector.broadcast %cst_155 : f32 to vector<8x32xf32>
    %408 = arith.subf %407, %406 : vector<8x32xf32>
    %409 = math.exp %408 : vector<8x32xf32>
    %cst_156 = arith.constant 1.000000e+00 : f32
    %410 = vector.broadcast %cst_156 : f32 to vector<8x32xf32>
    %411 = arith.addf %410, %409 : vector<8x32xf32>
    %412 = tpu.reciprocal %411 {approx = true} : vector<8x32xf32> -> vector<8x32xf32>
    %413 = arith.mulf %406, %412 : vector<8x32xf32>
    %cst_157 = arith.constant dense<0.000000e+00> : vector<8x32xf32>
    %414 = tpu.matmul %413, %5, %cst_157 {dimension_numbers = #tpu.dot_dimension_numbers<[1], [0], [0], [1], [0, 0, 1, 1], [], []>} : vector<8x32xf32>, vector<32x32xf32>, vector<8x32xf32> -> vector<8x32xf32>
    %415 = arith.addf %414, %17 : vector<8x32xf32>
    %cst_158 = arith.constant -1.000000e+01 : f32
    %cst_159 = arith.constant 1.000000e+01 : f32
    %416 = vector.broadcast %cst_158 : f32 to vector<8x32xf32>
    %417 = arith.maximumf %416, %415 : vector<8x32xf32>
    %418 = vector.broadcast %cst_159 : f32 to vector<8x32xf32>
    %419 = arith.minimumf %418, %417 : vector<8x32xf32>
    %420 = arith.addf %378, %399 : vector<8x32xf32>
    %cst_160 = arith.constant 3.000000e+00 : f32
    %421 = vector.broadcast %cst_160 : f32 to vector<8x32xf32>
    %422 = arith.mulf %421, %420 : vector<8x32xf32>
    %423 = arith.addf %360, %422 : vector<8x32xf32>
    %424 = arith.addf %423, %419 : vector<8x32xf32>
    %cst_161 = arith.constant 1.250000e-02 : f32
    %425 = vector.broadcast %cst_161 : f32 to vector<8x32xf32>
    %426 = arith.mulf %425, %424 : vector<8x32xf32>
    %427 = arith.addf %345, %426 : vector<8x32xf32>
    %cst_162 = arith.constant dense<0.000000e+00> : vector<8x32xf32>
    %428 = tpu.matmul %427, %3, %cst_162 {dimension_numbers = #tpu.dot_dimension_numbers<[1], [0], [0], [1], [0, 0, 1, 1], [], []>} : vector<8x32xf32>, vector<32x32xf32>, vector<8x32xf32> -> vector<8x32xf32>
    %429 = arith.addf %428, %15 : vector<8x32xf32>
    %cst_163 = arith.constant 0.000000e+00 : f32
    %430 = vector.broadcast %cst_163 : f32 to vector<8x32xf32>
    %431 = arith.subf %430, %429 : vector<8x32xf32>
    %432 = math.exp %431 : vector<8x32xf32>
    %cst_164 = arith.constant 1.000000e+00 : f32
    %433 = vector.broadcast %cst_164 : f32 to vector<8x32xf32>
    %434 = arith.addf %433, %432 : vector<8x32xf32>
    %435 = tpu.reciprocal %434 {approx = true} : vector<8x32xf32> -> vector<8x32xf32>
    %436 = arith.mulf %429, %435 : vector<8x32xf32>
    %cst_165 = arith.constant dense<0.000000e+00> : vector<8x32xf32>
    %437 = tpu.matmul %436, %5, %cst_165 {dimension_numbers = #tpu.dot_dimension_numbers<[1], [0], [0], [1], [0, 0, 1, 1], [], []>} : vector<8x32xf32>, vector<32x32xf32>, vector<8x32xf32> -> vector<8x32xf32>
    %438 = arith.addf %437, %17 : vector<8x32xf32>
    %cst_166 = arith.constant -1.000000e+01 : f32
    %cst_167 = arith.constant 1.000000e+01 : f32
    %439 = vector.broadcast %cst_166 : f32 to vector<8x32xf32>
    %440 = arith.maximumf %439, %438 : vector<8x32xf32>
    %441 = vector.broadcast %cst_167 : f32 to vector<8x32xf32>
    %442 = arith.minimumf %441, %440 : vector<8x32xf32>
    %cst_168 = arith.constant 0.0333333351 : f32
    %443 = vector.broadcast %cst_168 : f32 to vector<8x32xf32>
    %444 = arith.mulf %443, %442 : vector<8x32xf32>
    %445 = arith.addf %427, %444 : vector<8x32xf32>
    %cst_169 = arith.constant dense<0.000000e+00> : vector<8x32xf32>
    %446 = tpu.matmul %445, %3, %cst_169 {dimension_numbers = #tpu.dot_dimension_numbers<[1], [0], [0], [1], [0, 0, 1, 1], [], []>} : vector<8x32xf32>, vector<32x32xf32>, vector<8x32xf32> -> vector<8x32xf32>
    %447 = arith.addf %446, %15 : vector<8x32xf32>
    %cst_170 = arith.constant 0.000000e+00 : f32
    %448 = vector.broadcast %cst_170 : f32 to vector<8x32xf32>
    %449 = arith.subf %448, %447 : vector<8x32xf32>
    %450 = math.exp %449 : vector<8x32xf32>
    %cst_171 = arith.constant 1.000000e+00 : f32
    %451 = vector.broadcast %cst_171 : f32 to vector<8x32xf32>
    %452 = arith.addf %451, %450 : vector<8x32xf32>
    %453 = tpu.reciprocal %452 {approx = true} : vector<8x32xf32> -> vector<8x32xf32>
    %454 = arith.mulf %447, %453 : vector<8x32xf32>
    %cst_172 = arith.constant dense<0.000000e+00> : vector<8x32xf32>
    %455 = tpu.matmul %454, %5, %cst_172 {dimension_numbers = #tpu.dot_dimension_numbers<[1], [0], [0], [1], [0, 0, 1, 1], [], []>} : vector<8x32xf32>, vector<32x32xf32>, vector<8x32xf32> -> vector<8x32xf32>
    %456 = arith.addf %455, %17 : vector<8x32xf32>
    %cst_173 = arith.constant -1.000000e+01 : f32
    %cst_174 = arith.constant 1.000000e+01 : f32
    %457 = vector.broadcast %cst_173 : f32 to vector<8x32xf32>
    %458 = arith.maximumf %457, %456 : vector<8x32xf32>
    %459 = vector.broadcast %cst_174 : f32 to vector<8x32xf32>
    %460 = arith.minimumf %459, %458 : vector<8x32xf32>
    %cst_175 = arith.constant 0.333333343 : f32
    %461 = vector.broadcast %cst_175 : f32 to vector<8x32xf32>
    %462 = arith.mulf %461, %442 : vector<8x32xf32>
    %463 = arith.subf %460, %462 : vector<8x32xf32>
    %cst_176 = arith.constant 1.000000e-01 : f32
    %464 = vector.broadcast %cst_176 : f32 to vector<8x32xf32>
    %465 = arith.mulf %464, %463 : vector<8x32xf32>
    %466 = arith.addf %427, %465 : vector<8x32xf32>
    %cst_177 = arith.constant dense<0.000000e+00> : vector<8x32xf32>
    %467 = tpu.matmul %466, %3, %cst_177 {dimension_numbers = #tpu.dot_dimension_numbers<[1], [0], [0], [1], [0, 0, 1, 1], [], []>} : vector<8x32xf32>, vector<32x32xf32>, vector<8x32xf32> -> vector<8x32xf32>
    %468 = arith.addf %467, %15 : vector<8x32xf32>
    %cst_178 = arith.constant 0.000000e+00 : f32
    %469 = vector.broadcast %cst_178 : f32 to vector<8x32xf32>
    %470 = arith.subf %469, %468 : vector<8x32xf32>
    %471 = math.exp %470 : vector<8x32xf32>
    %cst_179 = arith.constant 1.000000e+00 : f32
    %472 = vector.broadcast %cst_179 : f32 to vector<8x32xf32>
    %473 = arith.addf %472, %471 : vector<8x32xf32>
    %474 = tpu.reciprocal %473 {approx = true} : vector<8x32xf32> -> vector<8x32xf32>
    %475 = arith.mulf %468, %474 : vector<8x32xf32>
    %cst_180 = arith.constant dense<0.000000e+00> : vector<8x32xf32>
    %476 = tpu.matmul %475, %5, %cst_180 {dimension_numbers = #tpu.dot_dimension_numbers<[1], [0], [0], [1], [0, 0, 1, 1], [], []>} : vector<8x32xf32>, vector<32x32xf32>, vector<8x32xf32> -> vector<8x32xf32>
    %477 = arith.addf %476, %17 : vector<8x32xf32>
    %cst_181 = arith.constant -1.000000e+01 : f32
    %cst_182 = arith.constant 1.000000e+01 : f32
    %478 = vector.broadcast %cst_181 : f32 to vector<8x32xf32>
    %479 = arith.maximumf %478, %477 : vector<8x32xf32>
    %480 = vector.broadcast %cst_182 : f32 to vector<8x32xf32>
    %481 = arith.minimumf %480, %479 : vector<8x32xf32>
    %482 = arith.subf %442, %460 : vector<8x32xf32>
    %483 = arith.addf %482, %481 : vector<8x32xf32>
    %cst_183 = arith.constant 1.000000e-01 : f32
    %484 = vector.broadcast %cst_183 : f32 to vector<8x32xf32>
    %485 = arith.mulf %484, %483 : vector<8x32xf32>
    %486 = arith.addf %427, %485 : vector<8x32xf32>
    %cst_184 = arith.constant dense<0.000000e+00> : vector<8x32xf32>
    %487 = tpu.matmul %486, %3, %cst_184 {dimension_numbers = #tpu.dot_dimension_numbers<[1], [0], [0], [1], [0, 0, 1, 1], [], []>} : vector<8x32xf32>, vector<32x32xf32>, vector<8x32xf32> -> vector<8x32xf32>
    %488 = arith.addf %487, %15 : vector<8x32xf32>
    %cst_185 = arith.constant 0.000000e+00 : f32
    %489 = vector.broadcast %cst_185 : f32 to vector<8x32xf32>
    %490 = arith.subf %489, %488 : vector<8x32xf32>
    %491 = math.exp %490 : vector<8x32xf32>
    %cst_186 = arith.constant 1.000000e+00 : f32
    %492 = vector.broadcast %cst_186 : f32 to vector<8x32xf32>
    %493 = arith.addf %492, %491 : vector<8x32xf32>
    %494 = tpu.reciprocal %493 {approx = true} : vector<8x32xf32> -> vector<8x32xf32>
    %495 = arith.mulf %488, %494 : vector<8x32xf32>
    %cst_187 = arith.constant dense<0.000000e+00> : vector<8x32xf32>
    %496 = tpu.matmul %495, %5, %cst_187 {dimension_numbers = #tpu.dot_dimension_numbers<[1], [0], [0], [1], [0, 0, 1, 1], [], []>} : vector<8x32xf32>, vector<32x32xf32>, vector<8x32xf32> -> vector<8x32xf32>
    %497 = arith.addf %496, %17 : vector<8x32xf32>
    %cst_188 = arith.constant -1.000000e+01 : f32
    %cst_189 = arith.constant 1.000000e+01 : f32
    %498 = vector.broadcast %cst_188 : f32 to vector<8x32xf32>
    %499 = arith.maximumf %498, %497 : vector<8x32xf32>
    %500 = vector.broadcast %cst_189 : f32 to vector<8x32xf32>
    %501 = arith.minimumf %500, %499 : vector<8x32xf32>
    %502 = arith.addf %460, %481 : vector<8x32xf32>
    %cst_190 = arith.constant 3.000000e+00 : f32
    %503 = vector.broadcast %cst_190 : f32 to vector<8x32xf32>
    %504 = arith.mulf %503, %502 : vector<8x32xf32>
    %505 = arith.addf %442, %504 : vector<8x32xf32>
    %506 = arith.addf %505, %501 : vector<8x32xf32>
    %cst_191 = arith.constant 1.250000e-02 : f32
    %507 = vector.broadcast %cst_191 : f32 to vector<8x32xf32>
    %508 = arith.mulf %507, %506 : vector<8x32xf32>
    %509 = arith.addf %427, %508 : vector<8x32xf32>
    %cst_192 = arith.constant dense<0.000000e+00> : vector<8x32xf32>
    %510 = tpu.matmul %509, %3, %cst_192 {dimension_numbers = #tpu.dot_dimension_numbers<[1], [0], [0], [1], [0, 0, 1, 1], [], []>} : vector<8x32xf32>, vector<32x32xf32>, vector<8x32xf32> -> vector<8x32xf32>
    %511 = arith.addf %510, %15 : vector<8x32xf32>
    %cst_193 = arith.constant 0.000000e+00 : f32
    %512 = vector.broadcast %cst_193 : f32 to vector<8x32xf32>
    %513 = arith.subf %512, %511 : vector<8x32xf32>
    %514 = math.exp %513 : vector<8x32xf32>
    %cst_194 = arith.constant 1.000000e+00 : f32
    %515 = vector.broadcast %cst_194 : f32 to vector<8x32xf32>
    %516 = arith.addf %515, %514 : vector<8x32xf32>
    %517 = tpu.reciprocal %516 {approx = true} : vector<8x32xf32> -> vector<8x32xf32>
    %518 = arith.mulf %511, %517 : vector<8x32xf32>
    %cst_195 = arith.constant dense<0.000000e+00> : vector<8x32xf32>
    %519 = tpu.matmul %518, %5, %cst_195 {dimension_numbers = #tpu.dot_dimension_numbers<[1], [0], [0], [1], [0, 0, 1, 1], [], []>} : vector<8x32xf32>, vector<32x32xf32>, vector<8x32xf32> -> vector<8x32xf32>
    %520 = arith.addf %519, %17 : vector<8x32xf32>
    %cst_196 = arith.constant -1.000000e+01 : f32
    %cst_197 = arith.constant 1.000000e+01 : f32
    %521 = vector.broadcast %cst_196 : f32 to vector<8x32xf32>
    %522 = arith.maximumf %521, %520 : vector<8x32xf32>
    %523 = vector.broadcast %cst_197 : f32 to vector<8x32xf32>
    %524 = arith.minimumf %523, %522 : vector<8x32xf32>
    %cst_198 = arith.constant 0.0333333351 : f32
    %525 = vector.broadcast %cst_198 : f32 to vector<8x32xf32>
    %526 = arith.mulf %525, %524 : vector<8x32xf32>
    %527 = arith.addf %509, %526 : vector<8x32xf32>
    %cst_199 = arith.constant dense<0.000000e+00> : vector<8x32xf32>
    %528 = tpu.matmul %527, %3, %cst_199 {dimension_numbers = #tpu.dot_dimension_numbers<[1], [0], [0], [1], [0, 0, 1, 1], [], []>} : vector<8x32xf32>, vector<32x32xf32>, vector<8x32xf32> -> vector<8x32xf32>
    %529 = arith.addf %528, %15 : vector<8x32xf32>
    %cst_200 = arith.constant 0.000000e+00 : f32
    %530 = vector.broadcast %cst_200 : f32 to vector<8x32xf32>
    %531 = arith.subf %530, %529 : vector<8x32xf32>
    %532 = math.exp %531 : vector<8x32xf32>
    %cst_201 = arith.constant 1.000000e+00 : f32
    %533 = vector.broadcast %cst_201 : f32 to vector<8x32xf32>
    %534 = arith.addf %533, %532 : vector<8x32xf32>
    %535 = tpu.reciprocal %534 {approx = true} : vector<8x32xf32> -> vector<8x32xf32>
    %536 = arith.mulf %529, %535 : vector<8x32xf32>
    %cst_202 = arith.constant dense<0.000000e+00> : vector<8x32xf32>
    %537 = tpu.matmul %536, %5, %cst_202 {dimension_numbers = #tpu.dot_dimension_numbers<[1], [0], [0], [1], [0, 0, 1, 1], [], []>} : vector<8x32xf32>, vector<32x32xf32>, vector<8x32xf32> -> vector<8x32xf32>
    %538 = arith.addf %537, %17 : vector<8x32xf32>
    %cst_203 = arith.constant -1.000000e+01 : f32
    %cst_204 = arith.constant 1.000000e+01 : f32
    %539 = vector.broadcast %cst_203 : f32 to vector<8x32xf32>
    %540 = arith.maximumf %539, %538 : vector<8x32xf32>
    %541 = vector.broadcast %cst_204 : f32 to vector<8x32xf32>
    %542 = arith.minimumf %541, %540 : vector<8x32xf32>
    %cst_205 = arith.constant 0.333333343 : f32
    %543 = vector.broadcast %cst_205 : f32 to vector<8x32xf32>
    %544 = arith.mulf %543, %524 : vector<8x32xf32>
    %545 = arith.subf %542, %544 : vector<8x32xf32>
    %cst_206 = arith.constant 1.000000e-01 : f32
    %546 = vector.broadcast %cst_206 : f32 to vector<8x32xf32>
    %547 = arith.mulf %546, %545 : vector<8x32xf32>
    %548 = arith.addf %509, %547 : vector<8x32xf32>
    %cst_207 = arith.constant dense<0.000000e+00> : vector<8x32xf32>
    %549 = tpu.matmul %548, %3, %cst_207 {dimension_numbers = #tpu.dot_dimension_numbers<[1], [0], [0], [1], [0, 0, 1, 1], [], []>} : vector<8x32xf32>, vector<32x32xf32>, vector<8x32xf32> -> vector<8x32xf32>
    %550 = arith.addf %549, %15 : vector<8x32xf32>
    %cst_208 = arith.constant 0.000000e+00 : f32
    %551 = vector.broadcast %cst_208 : f32 to vector<8x32xf32>
    %552 = arith.subf %551, %550 : vector<8x32xf32>
    %553 = math.exp %552 : vector<8x32xf32>
    %cst_209 = arith.constant 1.000000e+00 : f32
    %554 = vector.broadcast %cst_209 : f32 to vector<8x32xf32>
    %555 = arith.addf %554, %553 : vector<8x32xf32>
    %556 = tpu.reciprocal %555 {approx = true} : vector<8x32xf32> -> vector<8x32xf32>
    %557 = arith.mulf %550, %556 : vector<8x32xf32>
    %cst_210 = arith.constant dense<0.000000e+00> : vector<8x32xf32>
    %558 = tpu.matmul %557, %5, %cst_210 {dimension_numbers = #tpu.dot_dimension_numbers<[1], [0], [0], [1], [0, 0, 1, 1], [], []>} : vector<8x32xf32>, vector<32x32xf32>, vector<8x32xf32> -> vector<8x32xf32>
    %559 = arith.addf %558, %17 : vector<8x32xf32>
    %cst_211 = arith.constant -1.000000e+01 : f32
    %cst_212 = arith.constant 1.000000e+01 : f32
    %560 = vector.broadcast %cst_211 : f32 to vector<8x32xf32>
    %561 = arith.maximumf %560, %559 : vector<8x32xf32>
    %562 = vector.broadcast %cst_212 : f32 to vector<8x32xf32>
    %563 = arith.minimumf %562, %561 : vector<8x32xf32>
    %564 = arith.subf %524, %542 : vector<8x32xf32>
    %565 = arith.addf %564, %563 : vector<8x32xf32>
    %cst_213 = arith.constant 1.000000e-01 : f32
    %566 = vector.broadcast %cst_213 : f32 to vector<8x32xf32>
    %567 = arith.mulf %566, %565 : vector<8x32xf32>
    %568 = arith.addf %509, %567 : vector<8x32xf32>
    %cst_214 = arith.constant dense<0.000000e+00> : vector<8x32xf32>
    %569 = tpu.matmul %568, %3, %cst_214 {dimension_numbers = #tpu.dot_dimension_numbers<[1], [0], [0], [1], [0, 0, 1, 1], [], []>} : vector<8x32xf32>, vector<32x32xf32>, vector<8x32xf32> -> vector<8x32xf32>
    %570 = arith.addf %569, %15 : vector<8x32xf32>
    %cst_215 = arith.constant 0.000000e+00 : f32
    %571 = vector.broadcast %cst_215 : f32 to vector<8x32xf32>
    %572 = arith.subf %571, %570 : vector<8x32xf32>
    %573 = math.exp %572 : vector<8x32xf32>
    %cst_216 = arith.constant 1.000000e+00 : f32
    %574 = vector.broadcast %cst_216 : f32 to vector<8x32xf32>
    %575 = arith.addf %574, %573 : vector<8x32xf32>
    %576 = tpu.reciprocal %575 {approx = true} : vector<8x32xf32> -> vector<8x32xf32>
    %577 = arith.mulf %570, %576 : vector<8x32xf32>
    %cst_217 = arith.constant dense<0.000000e+00> : vector<8x32xf32>
    %578 = tpu.matmul %577, %5, %cst_217 {dimension_numbers = #tpu.dot_dimension_numbers<[1], [0], [0], [1], [0, 0, 1, 1], [], []>} : vector<8x32xf32>, vector<32x32xf32>, vector<8x32xf32> -> vector<8x32xf32>
    %579 = arith.addf %578, %17 : vector<8x32xf32>
    %cst_218 = arith.constant -1.000000e+01 : f32
    %cst_219 = arith.constant 1.000000e+01 : f32
    %580 = vector.broadcast %cst_218 : f32 to vector<8x32xf32>
    %581 = arith.maximumf %580, %579 : vector<8x32xf32>
    %582 = vector.broadcast %cst_219 : f32 to vector<8x32xf32>
    %583 = arith.minimumf %582, %581 : vector<8x32xf32>
    %584 = arith.addf %542, %563 : vector<8x32xf32>
    %cst_220 = arith.constant 3.000000e+00 : f32
    %585 = vector.broadcast %cst_220 : f32 to vector<8x32xf32>
    %586 = arith.mulf %585, %584 : vector<8x32xf32>
    %587 = arith.addf %524, %586 : vector<8x32xf32>
    %588 = arith.addf %587, %583 : vector<8x32xf32>
    %cst_221 = arith.constant 1.250000e-02 : f32
    %589 = vector.broadcast %cst_221 : f32 to vector<8x32xf32>
    %590 = arith.mulf %589, %588 : vector<8x32xf32>
    %591 = arith.addf %509, %590 : vector<8x32xf32>
    %cst_222 = arith.constant dense<0.000000e+00> : vector<8x32xf32>
    %592 = tpu.matmul %591, %3, %cst_222 {dimension_numbers = #tpu.dot_dimension_numbers<[1], [0], [0], [1], [0, 0, 1, 1], [], []>} : vector<8x32xf32>, vector<32x32xf32>, vector<8x32xf32> -> vector<8x32xf32>
    %593 = arith.addf %592, %15 : vector<8x32xf32>
    %cst_223 = arith.constant 0.000000e+00 : f32
    %594 = vector.broadcast %cst_223 : f32 to vector<8x32xf32>
    %595 = arith.subf %594, %593 : vector<8x32xf32>
    %596 = math.exp %595 : vector<8x32xf32>
    %cst_224 = arith.constant 1.000000e+00 : f32
    %597 = vector.broadcast %cst_224 : f32 to vector<8x32xf32>
    %598 = arith.addf %597, %596 : vector<8x32xf32>
    %599 = tpu.reciprocal %598 {approx = true} : vector<8x32xf32> -> vector<8x32xf32>
    %600 = arith.mulf %593, %599 : vector<8x32xf32>
    %cst_225 = arith.constant dense<0.000000e+00> : vector<8x32xf32>
    %601 = tpu.matmul %600, %5, %cst_225 {dimension_numbers = #tpu.dot_dimension_numbers<[1], [0], [0], [1], [0, 0, 1, 1], [], []>} : vector<8x32xf32>, vector<32x32xf32>, vector<8x32xf32> -> vector<8x32xf32>
    %602 = arith.addf %601, %17 : vector<8x32xf32>
    %cst_226 = arith.constant -1.000000e+01 : f32
    %cst_227 = arith.constant 1.000000e+01 : f32
    %603 = vector.broadcast %cst_226 : f32 to vector<8x32xf32>
    %604 = arith.maximumf %603, %602 : vector<8x32xf32>
    %605 = vector.broadcast %cst_227 : f32 to vector<8x32xf32>
    %606 = arith.minimumf %605, %604 : vector<8x32xf32>
    %cst_228 = arith.constant 0.0333333351 : f32
    %607 = vector.broadcast %cst_228 : f32 to vector<8x32xf32>
    %608 = arith.mulf %607, %606 : vector<8x32xf32>
    %609 = arith.addf %591, %608 : vector<8x32xf32>
    %cst_229 = arith.constant dense<0.000000e+00> : vector<8x32xf32>
    %610 = tpu.matmul %609, %3, %cst_229 {dimension_numbers = #tpu.dot_dimension_numbers<[1], [0], [0], [1], [0, 0, 1, 1], [], []>} : vector<8x32xf32>, vector<32x32xf32>, vector<8x32xf32> -> vector<8x32xf32>
    %611 = arith.addf %610, %15 : vector<8x32xf32>
    %cst_230 = arith.constant 0.000000e+00 : f32
    %612 = vector.broadcast %cst_230 : f32 to vector<8x32xf32>
    %613 = arith.subf %612, %611 : vector<8x32xf32>
    %614 = math.exp %613 : vector<8x32xf32>
    %cst_231 = arith.constant 1.000000e+00 : f32
    %615 = vector.broadcast %cst_231 : f32 to vector<8x32xf32>
    %616 = arith.addf %615, %614 : vector<8x32xf32>
    %617 = tpu.reciprocal %616 {approx = true} : vector<8x32xf32> -> vector<8x32xf32>
    %618 = arith.mulf %611, %617 : vector<8x32xf32>
    %cst_232 = arith.constant dense<0.000000e+00> : vector<8x32xf32>
    %619 = tpu.matmul %618, %5, %cst_232 {dimension_numbers = #tpu.dot_dimension_numbers<[1], [0], [0], [1], [0, 0, 1, 1], [], []>} : vector<8x32xf32>, vector<32x32xf32>, vector<8x32xf32> -> vector<8x32xf32>
    %620 = arith.addf %619, %17 : vector<8x32xf32>
    %cst_233 = arith.constant -1.000000e+01 : f32
    %cst_234 = arith.constant 1.000000e+01 : f32
    %621 = vector.broadcast %cst_233 : f32 to vector<8x32xf32>
    %622 = arith.maximumf %621, %620 : vector<8x32xf32>
    %623 = vector.broadcast %cst_234 : f32 to vector<8x32xf32>
    %624 = arith.minimumf %623, %622 : vector<8x32xf32>
    %cst_235 = arith.constant 0.333333343 : f32
    %625 = vector.broadcast %cst_235 : f32 to vector<8x32xf32>
    %626 = arith.mulf %625, %606 : vector<8x32xf32>
    %627 = arith.subf %624, %626 : vector<8x32xf32>
    %cst_236 = arith.constant 1.000000e-01 : f32
    %628 = vector.broadcast %cst_236 : f32 to vector<8x32xf32>
    %629 = arith.mulf %628, %627 : vector<8x32xf32>
    %630 = arith.addf %591, %629 : vector<8x32xf32>
    %cst_237 = arith.constant dense<0.000000e+00> : vector<8x32xf32>
    %631 = tpu.matmul %630, %3, %cst_237 {dimension_numbers = #tpu.dot_dimension_numbers<[1], [0], [0], [1], [0, 0, 1, 1], [], []>} : vector<8x32xf32>, vector<32x32xf32>, vector<8x32xf32> -> vector<8x32xf32>
    %632 = arith.addf %631, %15 : vector<8x32xf32>
    %cst_238 = arith.constant 0.000000e+00 : f32
    %633 = vector.broadcast %cst_238 : f32 to vector<8x32xf32>
    %634 = arith.subf %633, %632 : vector<8x32xf32>
    %635 = math.exp %634 : vector<8x32xf32>
    %cst_239 = arith.constant 1.000000e+00 : f32
    %636 = vector.broadcast %cst_239 : f32 to vector<8x32xf32>
    %637 = arith.addf %636, %635 : vector<8x32xf32>
    %638 = tpu.reciprocal %637 {approx = true} : vector<8x32xf32> -> vector<8x32xf32>
    %639 = arith.mulf %632, %638 : vector<8x32xf32>
    %cst_240 = arith.constant dense<0.000000e+00> : vector<8x32xf32>
    %640 = tpu.matmul %639, %5, %cst_240 {dimension_numbers = #tpu.dot_dimension_numbers<[1], [0], [0], [1], [0, 0, 1, 1], [], []>} : vector<8x32xf32>, vector<32x32xf32>, vector<8x32xf32> -> vector<8x32xf32>
    %641 = arith.addf %640, %17 : vector<8x32xf32>
    %cst_241 = arith.constant -1.000000e+01 : f32
    %cst_242 = arith.constant 1.000000e+01 : f32
    %642 = vector.broadcast %cst_241 : f32 to vector<8x32xf32>
    %643 = arith.maximumf %642, %641 : vector<8x32xf32>
    %644 = vector.broadcast %cst_242 : f32 to vector<8x32xf32>
    %645 = arith.minimumf %644, %643 : vector<8x32xf32>
    %646 = arith.subf %606, %624 : vector<8x32xf32>
    %647 = arith.addf %646, %645 : vector<8x32xf32>
    %cst_243 = arith.constant 1.000000e-01 : f32
    %648 = vector.broadcast %cst_243 : f32 to vector<8x32xf32>
    %649 = arith.mulf %648, %647 : vector<8x32xf32>
    %650 = arith.addf %591, %649 : vector<8x32xf32>
    %cst_244 = arith.constant dense<0.000000e+00> : vector<8x32xf32>
    %651 = tpu.matmul %650, %3, %cst_244 {dimension_numbers = #tpu.dot_dimension_numbers<[1], [0], [0], [1], [0, 0, 1, 1], [], []>} : vector<8x32xf32>, vector<32x32xf32>, vector<8x32xf32> -> vector<8x32xf32>
    %652 = arith.addf %651, %15 : vector<8x32xf32>
    %cst_245 = arith.constant 0.000000e+00 : f32
    %653 = vector.broadcast %cst_245 : f32 to vector<8x32xf32>
    %654 = arith.subf %653, %652 : vector<8x32xf32>
    %655 = math.exp %654 : vector<8x32xf32>
    %cst_246 = arith.constant 1.000000e+00 : f32
    %656 = vector.broadcast %cst_246 : f32 to vector<8x32xf32>
    %657 = arith.addf %656, %655 : vector<8x32xf32>
    %658 = tpu.reciprocal %657 {approx = true} : vector<8x32xf32> -> vector<8x32xf32>
    %659 = arith.mulf %652, %658 : vector<8x32xf32>
    %cst_247 = arith.constant dense<0.000000e+00> : vector<8x32xf32>
    %660 = tpu.matmul %659, %5, %cst_247 {dimension_numbers = #tpu.dot_dimension_numbers<[1], [0], [0], [1], [0, 0, 1, 1], [], []>} : vector<8x32xf32>, vector<32x32xf32>, vector<8x32xf32> -> vector<8x32xf32>
    %661 = arith.addf %660, %17 : vector<8x32xf32>
    %cst_248 = arith.constant -1.000000e+01 : f32
    %cst_249 = arith.constant 1.000000e+01 : f32
    %662 = vector.broadcast %cst_248 : f32 to vector<8x32xf32>
    %663 = arith.maximumf %662, %661 : vector<8x32xf32>
    %664 = vector.broadcast %cst_249 : f32 to vector<8x32xf32>
    %665 = arith.minimumf %664, %663 : vector<8x32xf32>
    %666 = arith.addf %624, %645 : vector<8x32xf32>
    %cst_250 = arith.constant 3.000000e+00 : f32
    %667 = vector.broadcast %cst_250 : f32 to vector<8x32xf32>
    %668 = arith.mulf %667, %666 : vector<8x32xf32>
    %669 = arith.addf %606, %668 : vector<8x32xf32>
    %670 = arith.addf %669, %665 : vector<8x32xf32>
    %cst_251 = arith.constant 1.250000e-02 : f32
    %671 = vector.broadcast %cst_251 : f32 to vector<8x32xf32>
    %672 = arith.mulf %671, %670 : vector<8x32xf32>
    %673 = arith.addf %591, %672 : vector<8x32xf32>
    %cst_252 = arith.constant dense<0.000000e+00> : vector<8x32xf32>
    %674 = tpu.matmul %673, %3, %cst_252 {dimension_numbers = #tpu.dot_dimension_numbers<[1], [0], [0], [1], [0, 0, 1, 1], [], []>} : vector<8x32xf32>, vector<32x32xf32>, vector<8x32xf32> -> vector<8x32xf32>
    %675 = arith.addf %674, %15 : vector<8x32xf32>
    %cst_253 = arith.constant 0.000000e+00 : f32
    %676 = vector.broadcast %cst_253 : f32 to vector<8x32xf32>
    %677 = arith.subf %676, %675 : vector<8x32xf32>
    %678 = math.exp %677 : vector<8x32xf32>
    %cst_254 = arith.constant 1.000000e+00 : f32
    %679 = vector.broadcast %cst_254 : f32 to vector<8x32xf32>
    %680 = arith.addf %679, %678 : vector<8x32xf32>
    %681 = tpu.reciprocal %680 {approx = true} : vector<8x32xf32> -> vector<8x32xf32>
    %682 = arith.mulf %675, %681 : vector<8x32xf32>
    %cst_255 = arith.constant dense<0.000000e+00> : vector<8x32xf32>
    %683 = tpu.matmul %682, %5, %cst_255 {dimension_numbers = #tpu.dot_dimension_numbers<[1], [0], [0], [1], [0, 0, 1, 1], [], []>} : vector<8x32xf32>, vector<32x32xf32>, vector<8x32xf32> -> vector<8x32xf32>
    %684 = arith.addf %683, %17 : vector<8x32xf32>
    %cst_256 = arith.constant -1.000000e+01 : f32
    %cst_257 = arith.constant 1.000000e+01 : f32
    %685 = vector.broadcast %cst_256 : f32 to vector<8x32xf32>
    %686 = arith.maximumf %685, %684 : vector<8x32xf32>
    %687 = vector.broadcast %cst_257 : f32 to vector<8x32xf32>
    %688 = arith.minimumf %687, %686 : vector<8x32xf32>
    %cst_258 = arith.constant 0.0333333351 : f32
    %689 = vector.broadcast %cst_258 : f32 to vector<8x32xf32>
    %690 = arith.mulf %689, %688 : vector<8x32xf32>
    %691 = arith.addf %673, %690 : vector<8x32xf32>
    %cst_259 = arith.constant dense<0.000000e+00> : vector<8x32xf32>
    %692 = tpu.matmul %691, %3, %cst_259 {dimension_numbers = #tpu.dot_dimension_numbers<[1], [0], [0], [1], [0, 0, 1, 1], [], []>} : vector<8x32xf32>, vector<32x32xf32>, vector<8x32xf32> -> vector<8x32xf32>
    %693 = arith.addf %692, %15 : vector<8x32xf32>
    %cst_260 = arith.constant 0.000000e+00 : f32
    %694 = vector.broadcast %cst_260 : f32 to vector<8x32xf32>
    %695 = arith.subf %694, %693 : vector<8x32xf32>
    %696 = math.exp %695 : vector<8x32xf32>
    %cst_261 = arith.constant 1.000000e+00 : f32
    %697 = vector.broadcast %cst_261 : f32 to vector<8x32xf32>
    %698 = arith.addf %697, %696 : vector<8x32xf32>
    %699 = tpu.reciprocal %698 {approx = true} : vector<8x32xf32> -> vector<8x32xf32>
    %700 = arith.mulf %693, %699 : vector<8x32xf32>
    %cst_262 = arith.constant dense<0.000000e+00> : vector<8x32xf32>
    %701 = tpu.matmul %700, %5, %cst_262 {dimension_numbers = #tpu.dot_dimension_numbers<[1], [0], [0], [1], [0, 0, 1, 1], [], []>} : vector<8x32xf32>, vector<32x32xf32>, vector<8x32xf32> -> vector<8x32xf32>
    %702 = arith.addf %701, %17 : vector<8x32xf32>
    %cst_263 = arith.constant -1.000000e+01 : f32
    %cst_264 = arith.constant 1.000000e+01 : f32
    %703 = vector.broadcast %cst_263 : f32 to vector<8x32xf32>
    %704 = arith.maximumf %703, %702 : vector<8x32xf32>
    %705 = vector.broadcast %cst_264 : f32 to vector<8x32xf32>
    %706 = arith.minimumf %705, %704 : vector<8x32xf32>
    %cst_265 = arith.constant 0.333333343 : f32
    %707 = vector.broadcast %cst_265 : f32 to vector<8x32xf32>
    %708 = arith.mulf %707, %688 : vector<8x32xf32>
    %709 = arith.subf %706, %708 : vector<8x32xf32>
    %cst_266 = arith.constant 1.000000e-01 : f32
    %710 = vector.broadcast %cst_266 : f32 to vector<8x32xf32>
    %711 = arith.mulf %710, %709 : vector<8x32xf32>
    %712 = arith.addf %673, %711 : vector<8x32xf32>
    %cst_267 = arith.constant dense<0.000000e+00> : vector<8x32xf32>
    %713 = tpu.matmul %712, %3, %cst_267 {dimension_numbers = #tpu.dot_dimension_numbers<[1], [0], [0], [1], [0, 0, 1, 1], [], []>} : vector<8x32xf32>, vector<32x32xf32>, vector<8x32xf32> -> vector<8x32xf32>
    %714 = arith.addf %713, %15 : vector<8x32xf32>
    %cst_268 = arith.constant 0.000000e+00 : f32
    %715 = vector.broadcast %cst_268 : f32 to vector<8x32xf32>
    %716 = arith.subf %715, %714 : vector<8x32xf32>
    %717 = math.exp %716 : vector<8x32xf32>
    %cst_269 = arith.constant 1.000000e+00 : f32
    %718 = vector.broadcast %cst_269 : f32 to vector<8x32xf32>
    %719 = arith.addf %718, %717 : vector<8x32xf32>
    %720 = tpu.reciprocal %719 {approx = true} : vector<8x32xf32> -> vector<8x32xf32>
    %721 = arith.mulf %714, %720 : vector<8x32xf32>
    %cst_270 = arith.constant dense<0.000000e+00> : vector<8x32xf32>
    %722 = tpu.matmul %721, %5, %cst_270 {dimension_numbers = #tpu.dot_dimension_numbers<[1], [0], [0], [1], [0, 0, 1, 1], [], []>} : vector<8x32xf32>, vector<32x32xf32>, vector<8x32xf32> -> vector<8x32xf32>
    %723 = arith.addf %722, %17 : vector<8x32xf32>
    %cst_271 = arith.constant -1.000000e+01 : f32
    %cst_272 = arith.constant 1.000000e+01 : f32
    %724 = vector.broadcast %cst_271 : f32 to vector<8x32xf32>
    %725 = arith.maximumf %724, %723 : vector<8x32xf32>
    %726 = vector.broadcast %cst_272 : f32 to vector<8x32xf32>
    %727 = arith.minimumf %726, %725 : vector<8x32xf32>
    %728 = arith.subf %688, %706 : vector<8x32xf32>
    %729 = arith.addf %728, %727 : vector<8x32xf32>
    %cst_273 = arith.constant 1.000000e-01 : f32
    %730 = vector.broadcast %cst_273 : f32 to vector<8x32xf32>
    %731 = arith.mulf %730, %729 : vector<8x32xf32>
    %732 = arith.addf %673, %731 : vector<8x32xf32>
    %cst_274 = arith.constant dense<0.000000e+00> : vector<8x32xf32>
    %733 = tpu.matmul %732, %3, %cst_274 {dimension_numbers = #tpu.dot_dimension_numbers<[1], [0], [0], [1], [0, 0, 1, 1], [], []>} : vector<8x32xf32>, vector<32x32xf32>, vector<8x32xf32> -> vector<8x32xf32>
    %734 = arith.addf %733, %15 : vector<8x32xf32>
    %cst_275 = arith.constant 0.000000e+00 : f32
    %735 = vector.broadcast %cst_275 : f32 to vector<8x32xf32>
    %736 = arith.subf %735, %734 : vector<8x32xf32>
    %737 = math.exp %736 : vector<8x32xf32>
    %cst_276 = arith.constant 1.000000e+00 : f32
    %738 = vector.broadcast %cst_276 : f32 to vector<8x32xf32>
    %739 = arith.addf %738, %737 : vector<8x32xf32>
    %740 = tpu.reciprocal %739 {approx = true} : vector<8x32xf32> -> vector<8x32xf32>
    %741 = arith.mulf %734, %740 : vector<8x32xf32>
    %cst_277 = arith.constant dense<0.000000e+00> : vector<8x32xf32>
    %742 = tpu.matmul %741, %5, %cst_277 {dimension_numbers = #tpu.dot_dimension_numbers<[1], [0], [0], [1], [0, 0, 1, 1], [], []>} : vector<8x32xf32>, vector<32x32xf32>, vector<8x32xf32> -> vector<8x32xf32>
    %743 = arith.addf %742, %17 : vector<8x32xf32>
    %cst_278 = arith.constant -1.000000e+01 : f32
    %cst_279 = arith.constant 1.000000e+01 : f32
    %744 = vector.broadcast %cst_278 : f32 to vector<8x32xf32>
    %745 = arith.maximumf %744, %743 : vector<8x32xf32>
    %746 = vector.broadcast %cst_279 : f32 to vector<8x32xf32>
    %747 = arith.minimumf %746, %745 : vector<8x32xf32>
    %748 = arith.addf %706, %727 : vector<8x32xf32>
    %cst_280 = arith.constant 3.000000e+00 : f32
    %749 = vector.broadcast %cst_280 : f32 to vector<8x32xf32>
    %750 = arith.mulf %749, %748 : vector<8x32xf32>
    %751 = arith.addf %688, %750 : vector<8x32xf32>
    %752 = arith.addf %751, %747 : vector<8x32xf32>
    %cst_281 = arith.constant 1.250000e-02 : f32
    %753 = vector.broadcast %cst_281 : f32 to vector<8x32xf32>
    %754 = arith.mulf %753, %752 : vector<8x32xf32>
    %755 = arith.addf %673, %754 : vector<8x32xf32>
    %cst_282 = arith.constant dense<0.000000e+00> : vector<8x32xf32>
    %756 = tpu.matmul %755, %3, %cst_282 {dimension_numbers = #tpu.dot_dimension_numbers<[1], [0], [0], [1], [0, 0, 1, 1], [], []>} : vector<8x32xf32>, vector<32x32xf32>, vector<8x32xf32> -> vector<8x32xf32>
    %757 = arith.addf %756, %15 : vector<8x32xf32>
    %cst_283 = arith.constant 0.000000e+00 : f32
    %758 = vector.broadcast %cst_283 : f32 to vector<8x32xf32>
    %759 = arith.subf %758, %757 : vector<8x32xf32>
    %760 = math.exp %759 : vector<8x32xf32>
    %cst_284 = arith.constant 1.000000e+00 : f32
    %761 = vector.broadcast %cst_284 : f32 to vector<8x32xf32>
    %762 = arith.addf %761, %760 : vector<8x32xf32>
    %763 = tpu.reciprocal %762 {approx = true} : vector<8x32xf32> -> vector<8x32xf32>
    %764 = arith.mulf %757, %763 : vector<8x32xf32>
    %cst_285 = arith.constant dense<0.000000e+00> : vector<8x32xf32>
    %765 = tpu.matmul %764, %5, %cst_285 {dimension_numbers = #tpu.dot_dimension_numbers<[1], [0], [0], [1], [0, 0, 1, 1], [], []>} : vector<8x32xf32>, vector<32x32xf32>, vector<8x32xf32> -> vector<8x32xf32>
    %766 = arith.addf %765, %17 : vector<8x32xf32>
    %cst_286 = arith.constant -1.000000e+01 : f32
    %cst_287 = arith.constant 1.000000e+01 : f32
    %767 = vector.broadcast %cst_286 : f32 to vector<8x32xf32>
    %768 = arith.maximumf %767, %766 : vector<8x32xf32>
    %769 = vector.broadcast %cst_287 : f32 to vector<8x32xf32>
    %770 = arith.minimumf %769, %768 : vector<8x32xf32>
    %cst_288 = arith.constant 0.0333333351 : f32
    %771 = vector.broadcast %cst_288 : f32 to vector<8x32xf32>
    %772 = arith.mulf %771, %770 : vector<8x32xf32>
    %773 = arith.addf %755, %772 : vector<8x32xf32>
    %cst_289 = arith.constant dense<0.000000e+00> : vector<8x32xf32>
    %774 = tpu.matmul %773, %3, %cst_289 {dimension_numbers = #tpu.dot_dimension_numbers<[1], [0], [0], [1], [0, 0, 1, 1], [], []>} : vector<8x32xf32>, vector<32x32xf32>, vector<8x32xf32> -> vector<8x32xf32>
    %775 = arith.addf %774, %15 : vector<8x32xf32>
    %cst_290 = arith.constant 0.000000e+00 : f32
    %776 = vector.broadcast %cst_290 : f32 to vector<8x32xf32>
    %777 = arith.subf %776, %775 : vector<8x32xf32>
    %778 = math.exp %777 : vector<8x32xf32>
    %cst_291 = arith.constant 1.000000e+00 : f32
    %779 = vector.broadcast %cst_291 : f32 to vector<8x32xf32>
    %780 = arith.addf %779, %778 : vector<8x32xf32>
    %781 = tpu.reciprocal %780 {approx = true} : vector<8x32xf32> -> vector<8x32xf32>
    %782 = arith.mulf %775, %781 : vector<8x32xf32>
    %cst_292 = arith.constant dense<0.000000e+00> : vector<8x32xf32>
    %783 = tpu.matmul %782, %5, %cst_292 {dimension_numbers = #tpu.dot_dimension_numbers<[1], [0], [0], [1], [0, 0, 1, 1], [], []>} : vector<8x32xf32>, vector<32x32xf32>, vector<8x32xf32> -> vector<8x32xf32>
    %784 = arith.addf %783, %17 : vector<8x32xf32>
    %cst_293 = arith.constant -1.000000e+01 : f32
    %cst_294 = arith.constant 1.000000e+01 : f32
    %785 = vector.broadcast %cst_293 : f32 to vector<8x32xf32>
    %786 = arith.maximumf %785, %784 : vector<8x32xf32>
    %787 = vector.broadcast %cst_294 : f32 to vector<8x32xf32>
    %788 = arith.minimumf %787, %786 : vector<8x32xf32>
    %cst_295 = arith.constant 0.333333343 : f32
    %789 = vector.broadcast %cst_295 : f32 to vector<8x32xf32>
    %790 = arith.mulf %789, %770 : vector<8x32xf32>
    %791 = arith.subf %788, %790 : vector<8x32xf32>
    %cst_296 = arith.constant 1.000000e-01 : f32
    %792 = vector.broadcast %cst_296 : f32 to vector<8x32xf32>
    %793 = arith.mulf %792, %791 : vector<8x32xf32>
    %794 = arith.addf %755, %793 : vector<8x32xf32>
    %cst_297 = arith.constant dense<0.000000e+00> : vector<8x32xf32>
    %795 = tpu.matmul %794, %3, %cst_297 {dimension_numbers = #tpu.dot_dimension_numbers<[1], [0], [0], [1], [0, 0, 1, 1], [], []>} : vector<8x32xf32>, vector<32x32xf32>, vector<8x32xf32> -> vector<8x32xf32>
    %796 = arith.addf %795, %15 : vector<8x32xf32>
    %cst_298 = arith.constant 0.000000e+00 : f32
    %797 = vector.broadcast %cst_298 : f32 to vector<8x32xf32>
    %798 = arith.subf %797, %796 : vector<8x32xf32>
    %799 = math.exp %798 : vector<8x32xf32>
    %cst_299 = arith.constant 1.000000e+00 : f32
    %800 = vector.broadcast %cst_299 : f32 to vector<8x32xf32>
    %801 = arith.addf %800, %799 : vector<8x32xf32>
    %802 = tpu.reciprocal %801 {approx = true} : vector<8x32xf32> -> vector<8x32xf32>
    %803 = arith.mulf %796, %802 : vector<8x32xf32>
    %cst_300 = arith.constant dense<0.000000e+00> : vector<8x32xf32>
    %804 = tpu.matmul %803, %5, %cst_300 {dimension_numbers = #tpu.dot_dimension_numbers<[1], [0], [0], [1], [0, 0, 1, 1], [], []>} : vector<8x32xf32>, vector<32x32xf32>, vector<8x32xf32> -> vector<8x32xf32>
    %805 = arith.addf %804, %17 : vector<8x32xf32>
    %cst_301 = arith.constant -1.000000e+01 : f32
    %cst_302 = arith.constant 1.000000e+01 : f32
    %806 = vector.broadcast %cst_301 : f32 to vector<8x32xf32>
    %807 = arith.maximumf %806, %805 : vector<8x32xf32>
    %808 = vector.broadcast %cst_302 : f32 to vector<8x32xf32>
    %809 = arith.minimumf %808, %807 : vector<8x32xf32>
    %810 = arith.subf %770, %788 : vector<8x32xf32>
    %811 = arith.addf %810, %809 : vector<8x32xf32>
    %cst_303 = arith.constant 1.000000e-01 : f32
    %812 = vector.broadcast %cst_303 : f32 to vector<8x32xf32>
    %813 = arith.mulf %812, %811 : vector<8x32xf32>
    %814 = arith.addf %755, %813 : vector<8x32xf32>
    %cst_304 = arith.constant dense<0.000000e+00> : vector<8x32xf32>
    %815 = tpu.matmul %814, %3, %cst_304 {dimension_numbers = #tpu.dot_dimension_numbers<[1], [0], [0], [1], [0, 0, 1, 1], [], []>} : vector<8x32xf32>, vector<32x32xf32>, vector<8x32xf32> -> vector<8x32xf32>
    %816 = arith.addf %815, %15 : vector<8x32xf32>
    %cst_305 = arith.constant 0.000000e+00 : f32
    %817 = vector.broadcast %cst_305 : f32 to vector<8x32xf32>
    %818 = arith.subf %817, %816 : vector<8x32xf32>
    %819 = math.exp %818 : vector<8x32xf32>
    %cst_306 = arith.constant 1.000000e+00 : f32
    %820 = vector.broadcast %cst_306 : f32 to vector<8x32xf32>
    %821 = arith.addf %820, %819 : vector<8x32xf32>
    %822 = tpu.reciprocal %821 {approx = true} : vector<8x32xf32> -> vector<8x32xf32>
    %823 = arith.mulf %816, %822 : vector<8x32xf32>
    %cst_307 = arith.constant dense<0.000000e+00> : vector<8x32xf32>
    %824 = tpu.matmul %823, %5, %cst_307 {dimension_numbers = #tpu.dot_dimension_numbers<[1], [0], [0], [1], [0, 0, 1, 1], [], []>} : vector<8x32xf32>, vector<32x32xf32>, vector<8x32xf32> -> vector<8x32xf32>
    %825 = arith.addf %824, %17 : vector<8x32xf32>
    %cst_308 = arith.constant -1.000000e+01 : f32
    %cst_309 = arith.constant 1.000000e+01 : f32
    %826 = vector.broadcast %cst_308 : f32 to vector<8x32xf32>
    %827 = arith.maximumf %826, %825 : vector<8x32xf32>
    %828 = vector.broadcast %cst_309 : f32 to vector<8x32xf32>
    %829 = arith.minimumf %828, %827 : vector<8x32xf32>
    %830 = arith.addf %788, %809 : vector<8x32xf32>
    %cst_310 = arith.constant 3.000000e+00 : f32
    %831 = vector.broadcast %cst_310 : f32 to vector<8x32xf32>
    %832 = arith.mulf %831, %830 : vector<8x32xf32>
    %833 = arith.addf %770, %832 : vector<8x32xf32>
    %834 = arith.addf %833, %829 : vector<8x32xf32>
    %cst_311 = arith.constant 1.250000e-02 : f32
    %835 = vector.broadcast %cst_311 : f32 to vector<8x32xf32>
    %836 = arith.mulf %835, %834 : vector<8x32xf32>
    %837 = arith.addf %755, %836 : vector<8x32xf32>
    %cst_312 = arith.constant dense<0.000000e+00> : vector<8x16xf32>
    %838 = tpu.matmul %837, %7, %cst_312 {dimension_numbers = #tpu.dot_dimension_numbers<[1], [0], [0], [1], [0, 0, 1, 1], [], []>} : vector<8x32xf32>, vector<32x16xf32>, vector<8x16xf32> -> vector<8x16xf32>
    %839 = vector.broadcast %8 : vector<1x16xf32> to vector<8x16xf32>
    %840 = arith.addf %838, %839 : vector<8x16xf32>
    %cst_313 = arith.constant 0.000000e+00 : f32
    %841 = vector.broadcast %cst_313 : f32 to vector<8x16xf32>
    %842 = arith.maximumf %840, %841 : vector<8x16xf32>
    %cst_314 = arith.constant dense<0.000000e+00> : vector<8x1xf32>
    %843 = tpu.matmul %842, %9, %cst_314 {dimension_numbers = #tpu.dot_dimension_numbers<[1], [0], [0], [1], [0, 0, 1, 1], [], []>} : vector<8x16xf32>, vector<16x1xf32>, vector<8x1xf32> -> vector<8x1xf32>
    %844 = vector.broadcast %10 : vector<1x1xf32> to vector<8x1xf32>
    %845 = arith.addf %843, %844 : vector<8x1xf32>
    %846 = vector.shape_cast %845 : vector<8x1xf32> to vector<8x1xf32>
    %847 = vector.broadcast %846 : vector<8x1xf32> to vector<8x128xf32>
    %c0_315 = arith.constant 0 : index
    %c0_316 = arith.constant 0 : index
    %848 = vector.load %arg2[%c0_315, %c0_316] : memref<8x128xf32, #tpu.memory_space<vmem>>, vector<8x128xf32>
    tpu.vector_store %arg2[%c0_315, %c0_316], %847 {strides = array<i32>} : memref<8x128xf32, #tpu.memory_space<vmem>>, vector<8x128xf32>,
    return
  }
}

</mosaic_0001>

<bundles_post_ra>
// kernel: tpu_custom_call.1
= control target key start
LH: loop header
LB: loop body
LE: loop exit
PB: predicated region body
PF: predicated region fallthrough
CT: control target
= control target key end

     0   :  { %v8319_v1 = vmov 0.0   ;;  %vm8320_vm0 = vmmov 0   ;;  %s9738_s0 = inlined_call_operand.vmem [shape: f32[8,128], index: 0, kind: input, shape index: {}]   ;;  %s9739_s1 = inlined_call_operand.vmem [shape: f32[280,32], index: 1, kind: input, shape index: {}]   ;;  %s9740_s2 = inlined_call_operand.hbm [shape: f32[8,128], index: 2, kind: output, shape index: {}]  }
   0x1   :  { %v28_v0 = vld [vmem:[%s9739_s1 + $0x78] sm:$0xff]  ;;  %7179 = vmatprep.subr.mxu0 %v8319_v1  ;;  %v27_v2 = vld [vmem:[%s9739_s1 + $0x70] sm:$0xff]  ;;  %7211 = vmatprep.mubr.msk.f32.mxu0 %vm8320_vm0, %v8319_v1  ;;  %v26_v3 = vld [vmem:[%s9739_s1 + $0x68] sm:$0xff] }
   0x2   :  { %7180 = vmatpush3.msra.mxu0 %v28_v0  ;;  %7214 = vmatprep.subr.mxu1 %v8319_v1  ;;  %v25_v4 = vld [vmem:[%s9739_s1 + $0x60] sm:$0xff]  ;;  %v8367_v6 = vld [vmem:[%s9739_s1 + $0x98] sm:$0xff] }
   0x3   :  { %7181 = vmatprep.subr.mxu0 %v8319_v1  ;;  %7222 = vmatprep.mubr.msk.f32.mxu1 %vm8320_vm0, %v8319_v1  ;;  %v8361_v5 = vld [vmem:[%s9739_s1 + $0xa0] sm:$0xff] }
   0x4   :  { %7182 = vmatpush3.msra.mxu0 %v27_v2  ;;  %7215 = vmatpush3.msra.mxu1 %v8361_v5 }
   0x5   :  { %7183 = vmatprep.subr.mxu0 %v8319_v1 }
   0x6   :  { %7184 = vmatpush3.msra.mxu0 %v26_v3 }
   0x7   :  { %7 = vsyncpa [#allocation3], 0  ;;  %7185 = vmatprep.subr.mxu0 %v8319_v1  ;;  %v24_v7 = vld [vmem:[%s9739_s1 + $0x58] sm:$0xff]  ;;  %7216 = vmatprep.subr.mxu1 %v8319_v1  ;;  %v23_v8 = vld [vmem:[%s9739_s1 + $0x50] sm:$0xff]  ;;  %vm130_vm1 = vcmask 261120   ;;  %vm6533_vm2 = vcmask 130048  }
   0x8   :  { %7186 = vmatpush3.msra.mxu0 %v25_v4  ;;  %7217 = vmatpush3.msra.mxu1 %v8367_v6  ;;  %v22_v9 = vld [vmem:[%s9739_s1 + $0x48] sm:$0xff]  ;;  %v21_v10 = vld [vmem:[%s9739_s1 + $0x40] sm:$0xff]  ;;  %v20_v11 = vld [vmem:[%s9739_s1 + $0x38] sm:$0xff]  ;;  %s8322_s6 = smov [#allocation2]  }
   0x9   :  { %7187 = vmatprep.subr.mxu0 %v8319_v1  ;;  %7218 = vmatprep.subr.mxu1 %v8319_v1  ;;  %v19_v12 = vld [vmem:[%s9739_s1 + $0x30] sm:$0xff]  ;;  %v18_v13 = vld [vmem:[%s9739_s1 + $0x28] sm:$0xff]  ;;  %v17_v14 = vld [vmem:[%s9739_s1 + $0x20] sm:$0xff]  ;;  %s6619_s7 = sshll.u32 %s8322_s6, 4  ;;  %s6620_s7 = int_to_ptr.vmem [resolvable:$true] %s6619_s7 }
   0xa   :  { %7188 = vmatpush3.msra.mxu0 %v24_v7  ;;  %v16_v15 = vld [vmem:[%s9739_s1 + $0x18] sm:$0xff]  ;;  %v15_v16 = vld [vmem:[%s9739_s1 + $0x10] sm:$0xff]  ;;  %v14_v17 = vld [vmem:[%s9739_s1 + $0x8] sm:$0xff]  ;;  %s8297_s8 = scalar_lea.vmem %s6620_s7, 128  ;;  %p8302_p1 = scmp.lt.s32.totalorder %s6620_s7, %s6620_s7 }
   0xb   :  { %7189 = vmatprep.subr.mxu0 %v8319_v1  ;;  %v13_v18 = vld [vmem:[%s9739_s1] sm:$0xff]  ;;  %v8434_v20 = vld [vmem:[%s9739_s1 + $0x90] sm:$0xff]  ;;  %v8442_v21 = vld [vmem:[%s9739_s1 + $0x88] sm:$0xff]  ;;  %p8298_p0 = scmp.ne.s32.totalorder %s6620_s7, %s8297_s8  ;;  %p8303_p2 = scmp.lt.s32.totalorder %s8297_s8, %s8297_s8 }
   0xc   :  { %7190 = vmatpush3.msra.mxu0 %v23_v8  ;;  %v12_v19 = vld [vmem:[%s9738_s0] sm:$0xff]  ;;  %7219 = vmatpush3.msra.mxu1 %v8434_v20  ;;  %v8461_v26 = vld [vmem:[%s9739_s1 + $0xc8] sm:$0xff]  ;;  %v8475_v28 = vld [vmem:[%s9739_s1 + $0xb8] sm:$0xff] }
   0xd   :  { %7191 = vmatprep.subr.mxu0 %v8319_v1  ;;  %7220 = vmatprep.subr.mxu1 %v8319_v1  ;;  %v6627_v22 = vld [vmem:[%s9739_s1 + $0x80] ss:$0 sm:$0xff]  ;;  %v8482_v29 = vld [vmem:[%s9739_s1 + $0xb0] sm:$0xff]  ;;  %v8489_v30 = vld [vmem:[%s9739_s1 + $0xa8] ss:$0 sm:$0xff]  ;;  %p8304_p3 = por %p8303_p2, %p8302_p1 }
   0xe   :  { %7192 = vmatpush3.msra.mxu0 %v22_v9  ;;  %7221 = vmatpush3.msra.mxu1 %v8442_v21  ;;  %v8468_v27 = vld [vmem:[%s9739_s1 + $0xc0] sm:$0xff]  ;;  %v8506_v40 = vld [vmem:[%s9739_s1 + $0xd0] ss:$0 sm:$0xff] }
   0xf   :  { %7193 = vmatprep.subr.mxu0 %v8319_v1  ;;  %7225 = vmatprep.subr.mxu1 %v8319_v1  ;;  %p8305_p4 = pnand %p8304_p3, %p8298_p0 }
  0x10   :  { %7194 = vmatpush3.msra.mxu0 %v21_v10 }
  0x11   :  { %7195 = vmatprep.subr.mxu0 %v8319_v1 }
  0x12   :  { %7196 = vmatpush3.msra.mxu0 %v20_v11 }
  0x13   :  { %7197 = vmatprep.subr.mxu0 %v8319_v1 }
  0x14   :  { %7198 = vmatpush3.msra.mxu0 %v19_v12 }
  0x15   :  { %7199 = vmatprep.subr.mxu0 %v8319_v1 }
  0x16   :  { %7200 = vmatpush3.msra.mxu0 %v18_v13 }
  0x17   :  { %7201 = vmatprep.subr.mxu0 %v8319_v1 }
  0x18   :  { %7202 = vmatpush3.msra.mxu0 %v17_v14 }
  0x19   :  { %7203 = vmatprep.subr.mxu0 %v8319_v1 }
  0x1a   :  { %7204 = vmatpush3.msra.mxu0 %v16_v15 }
  0x1b   :  { %7205 = vmatprep.subr.mxu0 %v8319_v1 }
  0x1c   :  { %7206 = vmatpush3.msra.mxu0 %v15_v16 }
  0x1d   :  { %7207 = vmatprep.subr.mxu0 %v8319_v1 }
  0x1e   :  { %7208 = vmatpush3.msra.mxu0 %v14_v17 }
  0x1f   :  { %7209 = vmatprep.subr.mxu0 %v8319_v1 }
  0x20   :  { %7210 = vmatpush3.msra.mxu0 %v13_v18 }
  0x21   :  { %7212 = vmatmul.mubr.f32.vlgmr.msra.gmra.mxu0 %v12_v19  ;;  %7258 = vmatprep.subr.mxu0 %v8319_v1 }
  0x22   :  { %7259 = vmatpush3.msra.mxu0 %v8361_v5  ;;  %7266 = vmatprep.mubr.msk.f32.mxu0 %vm8320_vm0, %v8319_v1 }
  0x23   :  { %7260 = vmatprep.subr.mxu0 %v8319_v1 }
  0x24   :  { %7261 = vmatpush3.msra.mxu0 %v8367_v6 }
  0x25   :  { %7262 = vmatprep.subr.mxu0 %v8319_v1 }
  0x26   :  { %7263 = vmatpush3.msra.mxu0 %v8434_v20 }
  0x27   :  { %7264 = vmatprep.subr.mxu0 %v8319_v1 }
  0x28   :  { %7265 = vmatpush3.msra.mxu0 %v8442_v21 }
  0x29   :  { %7280 = vmatprep.subr.mxu0 %v8319_v1 }
  0xe1   :  { %v118_v23 = vpop.f32.mrf.mxu0 }
  0xe2   :  { %v8452_v24 = vadd.f32 %v6627_v22, %v118_v23 }
  0xe3   :  { %v7213_v25 = vpop.f32.mrf.mxu0 }
  0xe4   :  { %7223 = vmatmul.mubr.msk.f32.vlgmr.msra.gmra.mxu1 %vm130_vm1, %v8452_v24 }
  0xe5   :  { %7233 = vmatprep.mubr.msk.f32.mxu1 %vm8320_vm0, %v8319_v1  ;;  %7226 = vmatpush3.msra.mxu1 %v8461_v26 }
  0xe6   :  { %7227 = vmatprep.subr.mxu1 %v8319_v1 }
  0xe7   :  { %7228 = vmatpush3.msra.mxu1 %v8468_v27 }
  0xe8   :  { %7229 = vmatprep.subr.mxu1 %v8319_v1 }
  0xe9   :  { %7230 = vmatpush3.msra.mxu1 %v8475_v28 }
  0xea   :  { %7231 = vmatprep.subr.mxu1 %v8319_v1 }
  0xeb   :  { %7232 = vmatpush3.msra.mxu1 %v8482_v29 }
  0xec   :  { %7236 = vmatprep.subr.mxu1 %v8319_v1 }
 0x1a4   :  { %v200_v31 = vpop.f32.mrf.mxu1 }
 0x1a5   :  { %v201_v32 = vadd.f32 %v8489_v30, %v200_v31 }
 0x1a6   :  { %v7224_v33 = vpop.f32.mrf.mxu1 }
 0x1a7   :  { %v204_v34 = vsub.f32 0.0, %v201_v32 }
 0x1a9   :  { %v205_v35 = vmul.f32 1.442695, %v204_v34 }
 0x1ab   :  { %8117 = vpow2.f32 %v205_v35 }
 0x1b8   :  { %v8118_v36 = vpop.eup %8117 }
 0x1b9   :  { %v207_v37 = vadd.f32 1.0, %v8118_v36 }
 0x1bb   :  { %8119 = vrcp.f32 %v207_v37 }
 0x1c8   :  { %v8120_v38 = vpop.eup %8119 }
 0x1c9   :  { %v209_v39 = vmul.f32 %v8120_v38, %v201_v32 }
 0x1cb   :  { %7234 = vmatmul.mubr.msk.f32.vlgmr.msra.gmra.mxu1 %vm130_vm1, %v209_v39 }
 0x1cc   :  { %7237 = vmatpush3.msra.mxu1 %v8361_v5  ;;  %7244 = vmatprep.mubr.msk.f32.mxu1 %vm8320_vm0, %v8319_v1 }
 0x1cd   :  { %7238 = vmatprep.subr.mxu1 %v8319_v1 }
 0x1ce   :  { %7239 = vmatpush3.msra.mxu1 %v8367_v6 }
 0x1cf   :  { %7240 = vmatprep.subr.mxu1 %v8319_v1 }
 0x1d0   :  { %7241 = vmatpush3.msra.mxu1 %v8434_v20 }
 0x1d1   :  { %7242 = vmatprep.subr.mxu1 %v8319_v1 }
 0x1d2   :  { %7243 = vmatpush3.msra.mxu1 %v8442_v21 }
 0x1d3   :  { %7247 = vmatprep.subr.mxu1 %v8319_v1 }
 0x28b   :  { %v279_v41 = vpop.f32.mrf.mxu1 }
 0x28c   :  { %v280_v42 = vadd.f32 %v8506_v40, %v279_v41 }
 0x28d   :  { %v7235_v43 = vpop.f32.mrf.mxu1 }
 0x28e   :  { %v8509_v44 = vclamps-f32 %v280_v42, 10.0 }
 0x290   :  { %v285_v45 = vmul.f32 0.033333335, %v8509_v44  ;;  %v441_v60 = vmul.f32 0.33333334, %v8509_v44 }
 0x292   :  { %v286_v46 = vadd.f32 %v285_v45, %v8452_v24 }
 0x294   :  { %7245 = vmatmul.mubr.msk.f32.vlgmr.msra.gmra.mxu1 %vm130_vm1, %v286_v46 }
 0x295   :  { %7248 = vmatpush3.msra.mxu1 %v8461_v26  ;;  %7255 = vmatprep.mubr.msk.f32.mxu1 %vm8320_vm0, %v8319_v1 }
 0x296   :  { %7249 = vmatprep.subr.mxu1 %v8319_v1 }
 0x297   :  { %7250 = vmatpush3.msra.mxu1 %v8468_v27 }
 0x298   :  { %7251 = vmatprep.subr.mxu1 %v8319_v1 }
 0x299   :  { %7252 = vmatpush3.msra.mxu1 %v8475_v28 }
 0x29a   :  { %7253 = vmatprep.subr.mxu1 %v8319_v1 }
 0x29b   :  { %7254 = vmatpush3.msra.mxu1 %v8482_v29 }
 0x29c   :  { %7269 = vmatprep.subr.mxu1 %v8319_v1 }
 0x354   :  { %v356_v47 = vpop.f32.mrf.mxu1 }
 0x355   :  { %v357_v48 = vadd.f32 %v8489_v30, %v356_v47 }
 0x356   :  { %v7246_v49 = vpop.f32.mrf.mxu1 }
 0x357   :  { %v360_v50 = vsub.f32 0.0, %v357_v48 }
 0x359   :  { %v361_v51 = vmul.f32 1.442695, %v360_v50 }
 0x35b   :  { %8121 = vpow2.f32 %v361_v51 }
 0x368   :  { %v8122_v52 = vpop.eup %8121 }
 0x369   :  { %v363_v53 = vadd.f32 1.0, %v8122_v52 }
 0x36b   :  { %8123 = vrcp.f32 %v363_v53 }
 0x378   :  { %v8124_v54 = vpop.eup %8123 }
 0x379   :  { %v365_v55 = vmul.f32 %v8124_v54, %v357_v48 }
 0x37b   :  { %7256 = vmatmul.mubr.msk.f32.vlgmr.msra.gmra.mxu1 %vm130_vm1, %v365_v55 }
 0x37c   :  { %7270 = vmatpush3.msra.mxu1 %v8461_v26  ;;  %7277 = vmatprep.mubr.msk.f32.mxu1 %vm8320_vm0, %v8319_v1 }
 0x37d   :  { %7271 = vmatprep.subr.mxu1 %v8319_v1 }
 0x37e   :  { %7272 = vmatpush3.msra.mxu1 %v8468_v27 }
 0x37f   :  { %7273 = vmatprep.subr.mxu1 %v8319_v1 }
 0x380   :  { %7274 = vmatpush3.msra.mxu1 %v8475_v28 }
 0x381   :  { %7275 = vmatprep.subr.mxu1 %v8319_v1 }
 0x382   :  { %7276 = vmatpush3.msra.mxu1 %v8482_v29 }
 0x383   :  { %7291 = vmatprep.subr.mxu1 %v8319_v1 }
 0x43b   :  { %v435_v56 = vpop.f32.mrf.mxu1 }
 0x43c   :  { %v436_v57 = vadd.f32 %v8506_v40, %v435_v56 }
 0x43d   :  { %v7257_v58 = vpop.f32.mrf.mxu1 }
 0x43e   :  { %v8537_v59 = vclamps-f32 %v436_v57, 10.0 }
 0x440   :  { %v442_v61 = vsub.f32 %v8537_v59, %v441_v60  ;;  %v599_v16 = vsub.f32 %v8509_v44, %v8537_v59 }
 0x442   :  { %v443_v62 = vmul.f32 0.1, %v442_v61 }
 0x444   :  { %v444_v63 = vadd.f32 %v443_v62, %v8452_v24 }
 0x446   :  { %7267 = vmatmul.mubr.msk.f32.vlgmr.msra.gmra.mxu0 %vm130_vm1, %v444_v63 }
 0x447   :  { %7281 = vmatpush3.msra.mxu0 %v8361_v5  ;;  %7288 = vmatprep.mubr.msk.f32.mxu0 %vm8320_vm0, %v8319_v1 }
 0x448   :  { %7282 = vmatprep.subr.mxu0 %v8319_v1 }
 0x449   :  { %7283 = vmatpush3.msra.mxu0 %v8367_v6 }
 0x44a   :  { %7284 = vmatprep.subr.mxu0 %v8319_v1 }
 0x44b   :  { %7285 = vmatpush3.msra.mxu0 %v8434_v20 }
 0x44c   :  { %7286 = vmatprep.subr.mxu0 %v8319_v1 }
 0x44d   :  { %7287 = vmatpush3.msra.mxu0 %v8442_v21 }
 0x44e   :  { %7302 = vmatprep.subr.mxu0 %v8319_v1 }
 0x506   :  { %v514_v0 = vpop.f32.mrf.mxu0 }
 0x507   :  { %v515_v2 = vadd.f32 %v8489_v30, %v514_v0 }
 0x508   :  { %v7268_v3 = vpop.f32.mrf.mxu0 }
 0x509   :  { %v518_v4 = vsub.f32 0.0, %v515_v2 }
 0x50b   :  { %v519_v7 = vmul.f32 1.442695, %v518_v4 }
 0x50d   :  { %8125 = vpow2.f32 %v519_v7 }
 0x51a   :  { %v8126_v8 = vpop.eup %8125 }
 0x51b   :  { %v521_v9 = vadd.f32 1.0, %v8126_v8 }
 0x51d   :  { %8127 = vrcp.f32 %v521_v9 }
 0x52a   :  { %v8128_v10 = vpop.eup %8127 }
 0x52b   :  { %v523_v11 = vmul.f32 %v8128_v10, %v515_v2 }
 0x52d   :  { %7278 = vmatmul.mubr.msk.f32.vlgmr.msra.gmra.mxu1 %vm130_vm1, %v523_v11 }
 0x52e   :  { %7292 = vmatpush3.msra.mxu1 %v8461_v26  ;;  %7299 = vmatprep.mubr.msk.f32.mxu1 %vm8320_vm0, %v8319_v1 }
 0x52f   :  { %7293 = vmatprep.subr.mxu1 %v8319_v1 }
 0x530   :  { %7294 = vmatpush3.msra.mxu1 %v8468_v27 }
 0x531   :  { %7295 = vmatprep.subr.mxu1 %v8319_v1 }
 0x532   :  { %7296 = vmatpush3.msra.mxu1 %v8475_v28 }
 0x533   :  { %7297 = vmatprep.subr.mxu1 %v8319_v1 }
 0x534   :  { %7298 = vmatpush3.msra.mxu1 %v8482_v29 }
 0x535   :  { %7313 = vmatprep.subr.mxu1 %v8319_v1 }
 0x5ed   :  { %v593_v12 = vpop.f32.mrf.mxu1 }
 0x5ee   :  { %v594_v13 = vadd.f32 %v8506_v40, %v593_v12 }
 0x5ef   :  { %v7279_v14 = vpop.f32.mrf.mxu1 }
 0x5f0   :  { %v6638_v15 = vclamps-f32 %v594_v13, 10.0 }
 0x5f2   :  { %v600_v17 = vadd.f32 %v6638_v15, %v599_v16  ;;  %v757_v37 = vadd.f32 %v6638_v15, %v8537_v59 }
 0x5f4   :  { %v601_v18 = vmul.f32 0.1, %v600_v17  ;;  %v758_v38 = vmul.f32 3.0, %v757_v37 }
 0x5f6   :  { %v602_v19 = vadd.f32 %v601_v18, %v8452_v24  ;;  %v759_v45 = vadd.f32 %v8509_v44, %v758_v38 }
 0x5f8   :  { %7289 = vmatmul.mubr.msk.f32.vlgmr.msra.gmra.mxu0 %vm130_vm1, %v602_v19 }
 0x5f9   :  { %7303 = vmatpush3.msra.mxu0 %v8361_v5  ;;  %7310 = vmatprep.mubr.msk.f32.mxu0 %vm8320_vm0, %v8319_v1 }
 0x5fa   :  { %7304 = vmatprep.subr.mxu0 %v8319_v1 }
 0x5fb   :  { %7305 = vmatpush3.msra.mxu0 %v8367_v6 }
 0x5fc   :  { %7306 = vmatprep.subr.mxu0 %v8319_v1 }
 0x5fd   :  { %7307 = vmatpush3.msra.mxu0 %v8434_v20 }
 0x5fe   :  { %7308 = vmatprep.subr.mxu0 %v8319_v1 }
 0x5ff   :  { %7309 = vmatpush3.msra.mxu0 %v8442_v21 }
 0x600   :  { %7324 = vmatprep.subr.mxu0 %v8319_v1 }
 0x6b8   :  { %v672_v22 = vpop.f32.mrf.mxu0 }
 0x6b9   :  { %v673_v23 = vadd.f32 %v8489_v30, %v672_v22 }
 0x6ba   :  { %v7290_v25 = vpop.f32.mrf.mxu0 }
 0x6bb   :  { %v676_v31 = vsub.f32 0.0, %v673_v23 }
 0x6bd   :  { %v677_v32 = vmul.f32 1.442695, %v676_v31 }
 0x6bf   :  { %8129 = vpow2.f32 %v677_v32 }
 0x6cc   :  { %v8130_v33 = vpop.eup %8129 }
 0x6cd   :  { %v679_v34 = vadd.f32 1.0, %v8130_v33 }
 0x6cf   :  { %8131 = vrcp.f32 %v679_v34 }
 0x6dc   :  { %v8132_v35 = vpop.eup %8131 }
 0x6dd   :  { %v681_v36 = vmul.f32 %v8132_v35, %v673_v23 }
 0x6df   :  { %7300 = vmatmul.mubr.msk.f32.vlgmr.msra.gmra.mxu1 %vm130_vm1, %v681_v36 }
 0x6e0   :  { %7314 = vmatpush3.msra.mxu1 %v8461_v26  ;;  %7321 = vmatprep.mubr.msk.f32.mxu1 %vm8320_vm0, %v8319_v1 }
 0x6e1   :  { %7315 = vmatprep.subr.mxu1 %v8319_v1 }
 0x6e2   :  { %7316 = vmatpush3.msra.mxu1 %v8468_v27 }
 0x6e3   :  { %7317 = vmatprep.subr.mxu1 %v8319_v1 }
 0x6e4   :  { %7318 = vmatpush3.msra.mxu1 %v8475_v28 }
 0x6e5   :  { %7319 = vmatprep.subr.mxu1 %v8319_v1 }
 0x6e6   :  { %7320 = vmatpush3.msra.mxu1 %v8482_v29 }
 0x6e7   :  { %7335 = vmatprep.subr.mxu1 %v8319_v1 }
 0x79f   :  { %v751_v39 = vpop.f32.mrf.mxu1 }
 0x7a0   :  { %v752_v41 = vadd.f32 %v8506_v40, %v751_v39 }
 0x7a1   :  { %v7301_v42 = vpop.f32.mrf.mxu1 }
 0x7a2   :  { %v6641_v43 = vclamps-f32 %v752_v41, 10.0 }
 0x7a4   :  { %v760_v46 = vadd.f32 %v6641_v43, %v759_v45 }
 0x7a6   :  { %v761_v47 = vmul.f32 0.0125, %v760_v46 }
 0x7a8   :  { %v8596_v48 = vadd.f32 %v761_v47, %v8452_v24 }
 0x7aa   :  { %7311 = vmatmul.mubr.msk.f32.vlgmr.msra.gmra.mxu0 %vm130_vm1, %v8596_v48 }
 0x7ab   :  { %7325 = vmatpush3.msra.mxu0 %v8361_v5  ;;  %7332 = vmatprep.mubr.msk.f32.mxu0 %vm8320_vm0, %v8319_v1 }
 0x7ac   :  { %7326 = vmatprep.subr.mxu0 %v8319_v1 }
 0x7ad   :  { %7327 = vmatpush3.msra.mxu0 %v8367_v6 }
 0x7ae   :  { %7328 = vmatprep.subr.mxu0 %v8319_v1 }
 0x7af   :  { %7329 = vmatpush3.msra.mxu0 %v8434_v20 }
 0x7b0   :  { %7330 = vmatprep.subr.mxu0 %v8319_v1 }
 0x7b1   :  { %7331 = vmatpush3.msra.mxu0 %v8442_v21 }
 0x7b2   :  { %7346 = vmatprep.subr.mxu0 %v8319_v1 }
 0x86a   :  { %v832_v24 = vpop.f32.mrf.mxu0 }
 0x86b   :  { %v833_v44 = vadd.f32 %v8489_v30, %v832_v24 }
 0x86c   :  { %v7312_v49 = vpop.f32.mrf.mxu0 }
 0x86d   :  { %v836_v50 = vsub.f32 0.0, %v833_v44 }
 0x86f   :  { %v837_v51 = vmul.f32 1.442695, %v836_v50 }
 0x871   :  { %8133 = vpow2.f32 %v837_v51 }
 0x87e   :  { %v8134_v52 = vpop.eup %8133 }
 0x87f   :  { %v839_v53 = vadd.f32 1.0, %v8134_v52 }
 0x881   :  { %8135 = vrcp.f32 %v839_v53 }
 0x88e   :  { %v8136_v54 = vpop.eup %8135 }
 0x88f   :  { %v841_v55 = vmul.f32 %v8136_v54, %v833_v44 }
 0x891   :  { %7322 = vmatmul.mubr.msk.f32.vlgmr.msra.gmra.mxu1 %vm130_vm1, %v841_v55 }
 0x892   :  { %7336 = vmatpush3.msra.mxu1 %v8461_v26  ;;  %7343 = vmatprep.mubr.msk.f32.mxu1 %vm8320_vm0, %v8319_v1 }
 0x893   :  { %7337 = vmatprep.subr.mxu1 %v8319_v1 }
 0x894   :  { %7338 = vmatpush3.msra.mxu1 %v8468_v27 }
 0x895   :  { %7339 = vmatprep.subr.mxu1 %v8319_v1 }
 0x896   :  { %7340 = vmatpush3.msra.mxu1 %v8475_v28 }
 0x897   :  { %7341 = vmatprep.subr.mxu1 %v8319_v1 }
 0x898   :  { %7342 = vmatpush3.msra.mxu1 %v8482_v29 }
 0x899   :  { %7357 = vmatprep.subr.mxu1 %v8319_v1 }
 0x951   :  { %v911_v56 = vpop.f32.mrf.mxu1 }
 0x952   :  { %v912_v57 = vadd.f32 %v8506_v40, %v911_v56 }
 0x953   :  { %v7323_v58 = vpop.f32.mrf.mxu1 }
 0x954   :  { %v8623_v59 = vclamps-f32 %v912_v57, 10.0 }
 0x956   :  { %v917_v60 = vmul.f32 0.033333335, %v8623_v59  ;;  %v1073_v14 = vmul.f32 0.33333334, %v8623_v59 }
 0x958   :  { %v918_v61 = vadd.f32 %v917_v60, %v8596_v48 }
 0x95a   :  { %7333 = vmatmul.mubr.msk.f32.vlgmr.msra.gmra.mxu0 %vm130_vm1, %v918_v61 }
 0x95b   :  { %7347 = vmatpush3.msra.mxu0 %v8361_v5  ;;  %7354 = vmatprep.mubr.msk.f32.mxu0 %vm8320_vm0, %v8319_v1 }
 0x95c   :  { %7348 = vmatprep.subr.mxu0 %v8319_v1 }
 0x95d   :  { %7349 = vmatpush3.msra.mxu0 %v8367_v6 }
 0x95e   :  { %7350 = vmatprep.subr.mxu0 %v8319_v1 }
 0x95f   :  { %7351 = vmatpush3.msra.mxu0 %v8434_v20 }
 0x960   :  { %7352 = vmatprep.subr.mxu0 %v8319_v1 }
 0x961   :  { %7353 = vmatpush3.msra.mxu0 %v8442_v21 }
 0x962   :  { %7368 = vmatprep.subr.mxu0 %v8319_v1 }
 0xa1a   :  { %v988_v62 = vpop.f32.mrf.mxu0 }
 0xa1b   :  { %v989_v63 = vadd.f32 %v8489_v30, %v988_v62 }
 0xa1c   :  { %v7334_v0 = vpop.f32.mrf.mxu0 }
 0xa1d   :  { %v992_v2 = vsub.f32 0.0, %v989_v63 }
 0xa1f   :  { %v993_v3 = vmul.f32 1.442695, %v992_v2 }
 0xa21   :  { %8137 = vpow2.f32 %v993_v3 }
 0xa2e   :  { %v8138_v4 = vpop.eup %8137 }
 0xa2f   :  { %v995_v7 = vadd.f32 1.0, %v8138_v4 }
 0xa31   :  { %8139 = vrcp.f32 %v995_v7 }
 0xa3e   :  { %v8140_v8 = vpop.eup %8139 }
 0xa3f   :  { %v997_v9 = vmul.f32 %v8140_v8, %v989_v63 }
 0xa41   :  { %7344 = vmatmul.mubr.msk.f32.vlgmr.msra.gmra.mxu1 %vm130_vm1, %v997_v9 }
 0xa42   :  { %7358 = vmatpush3.msra.mxu1 %v8461_v26  ;;  %7365 = vmatprep.mubr.msk.f32.mxu1 %vm8320_vm0, %v8319_v1 }
 0xa43   :  { %7359 = vmatprep.subr.mxu1 %v8319_v1 }
 0xa44   :  { %7360 = vmatpush3.msra.mxu1 %v8468_v27 }
 0xa45   :  { %7361 = vmatprep.subr.mxu1 %v8319_v1 }
 0xa46   :  { %7362 = vmatpush3.msra.mxu1 %v8475_v28 }
 0xa47   :  { %7363 = vmatprep.subr.mxu1 %v8319_v1 }
 0xa48   :  { %7364 = vmatpush3.msra.mxu1 %v8482_v29 }
 0xa49   :  { %7379 = vmatprep.subr.mxu1 %v8319_v1 }
 0xb01   :  { %v1067_v10 = vpop.f32.mrf.mxu1 }
 0xb02   :  { %v1068_v11 = vadd.f32 %v8506_v40, %v1067_v10 }
 0xb03   :  { %v7345_v12 = vpop.f32.mrf.mxu1 }
 0xb04   :  { %v8651_v13 = vclamps-f32 %v1068_v11, 10.0 }
 0xb06   :  { %v1074_v15 = vsub.f32 %v8651_v13, %v1073_v14  ;;  %v1231_v39 = vsub.f32 %v8623_v59, %v8651_v13 }
 0xb08   :  { %v1075_v16 = vmul.f32 0.1, %v1074_v15 }
 0xb0a   :  { %v1076_v17 = vadd.f32 %v1075_v16, %v8596_v48 }
 0xb0c   :  { %7355 = vmatmul.mubr.msk.f32.vlgmr.msra.gmra.mxu0 %vm130_vm1, %v1076_v17 }
 0xb0d   :  { %7369 = vmatpush3.msra.mxu0 %v8361_v5  ;;  %7376 = vmatprep.mubr.msk.f32.mxu0 %vm8320_vm0, %v8319_v1 }
 0xb0e   :  { %7370 = vmatprep.subr.mxu0 %v8319_v1 }
 0xb0f   :  { %7371 = vmatpush3.msra.mxu0 %v8367_v6 }
 0xb10   :  { %7372 = vmatprep.subr.mxu0 %v8319_v1 }
 0xb11   :  { %7373 = vmatpush3.msra.mxu0 %v8434_v20 }
 0xb12   :  { %7374 = vmatprep.subr.mxu0 %v8319_v1 }
 0xb13   :  { %7375 = vmatpush3.msra.mxu0 %v8442_v21 }
 0xb14   :  { %7390 = vmatprep.subr.mxu0 %v8319_v1 }
 0xbcc   :  { %v1146_v18 = vpop.f32.mrf.mxu0 }
 0xbcd   :  { %v1147_v19 = vadd.f32 %v8489_v30, %v1146_v18 }
 0xbce   :  { %v7356_v22 = vpop.f32.mrf.mxu0 }
 0xbcf   :  { %v1150_v23 = vsub.f32 0.0, %v1147_v19 }
 0xbd1   :  { %v1151_v25 = vmul.f32 1.442695, %v1150_v23 }
 0xbd3   :  { %8141 = vpow2.f32 %v1151_v25 }
 0xbe0   :  { %v8142_v31 = vpop.eup %8141 }
 0xbe1   :  { %v1153_v32 = vadd.f32 1.0, %v8142_v31 }
 0xbe3   :  { %8143 = vrcp.f32 %v1153_v32 }
 0xbf0   :  { %v8144_v33 = vpop.eup %8143 }
 0xbf1   :  { %v1155_v34 = vmul.f32 %v8144_v33, %v1147_v19 }
 0xbf3   :  { %7366 = vmatmul.mubr.msk.f32.vlgmr.msra.gmra.mxu1 %vm130_vm1, %v1155_v34 }
 0xbf4   :  { %7380 = vmatpush3.msra.mxu1 %v8461_v26  ;;  %7387 = vmatprep.mubr.msk.f32.mxu1 %vm8320_vm0, %v8319_v1 }
 0xbf5   :  { %7381 = vmatprep.subr.mxu1 %v8319_v1 }
 0xbf6   :  { %7382 = vmatpush3.msra.mxu1 %v8468_v27 }
 0xbf7   :  { %7383 = vmatprep.subr.mxu1 %v8319_v1 }
 0xbf8   :  { %7384 = vmatpush3.msra.mxu1 %v8475_v28 }
 0xbf9   :  { %7385 = vmatprep.subr.mxu1 %v8319_v1 }
 0xbfa   :  { %7386 = vmatpush3.msra.mxu1 %v8482_v29 }
 0xbfb   :  { %7401 = vmatprep.subr.mxu1 %v8319_v1 }
 0xcb3   :  { %v1225_v35 = vpop.f32.mrf.mxu1 }
 0xcb4   :  { %v1226_v36 = vadd.f32 %v8506_v40, %v1225_v35 }
 0xcb5   :  { %v7367_v37 = vpop.f32.mrf.mxu1 }
 0xcb6   :  { %v6650_v38 = vclamps-f32 %v1226_v36, 10.0 }
 0xcb8   :  { %v1232_v41 = vadd.f32 %v6650_v38, %v1231_v39  ;;  %v1389_v53 = vadd.f32 %v6650_v38, %v8651_v13 }
 0xcba   :  { %v1233_v42 = vmul.f32 0.1, %v1232_v41  ;;  %v1390_v54 = vmul.f32 3.0, %v1389_v53 }
 0xcbc   :  { %v1234_v43 = vadd.f32 %v1233_v42, %v8596_v48  ;;  %v1391_v60 = vadd.f32 %v8623_v59, %v1390_v54 }
 0xcbe   :  { %7377 = vmatmul.mubr.msk.f32.vlgmr.msra.gmra.mxu0 %vm130_vm1, %v1234_v43 }
 0xcbf   :  { %7391 = vmatpush3.msra.mxu0 %v8361_v5  ;;  %7398 = vmatprep.mubr.msk.f32.mxu0 %vm8320_vm0, %v8319_v1 }
 0xcc0   :  { %7392 = vmatprep.subr.mxu0 %v8319_v1 }
 0xcc1   :  { %7393 = vmatpush3.msra.mxu0 %v8367_v6 }
 0xcc2   :  { %7394 = vmatprep.subr.mxu0 %v8319_v1 }
 0xcc3   :  { %7395 = vmatpush3.msra.mxu0 %v8434_v20 }
 0xcc4   :  { %7396 = vmatprep.subr.mxu0 %v8319_v1 }
 0xcc5   :  { %7397 = vmatpush3.msra.mxu0 %v8442_v21 }
 0xcc6   :  { %7412 = vmatprep.subr.mxu0 %v8319_v1 }
 0xd7e   :  { %v1304_v45 = vpop.f32.mrf.mxu0 }
 0xd7f   :  { %v1305_v46 = vadd.f32 %v8489_v30, %v1304_v45 }
 0xd80   :  { %v7378_v47 = vpop.f32.mrf.mxu0 }
 0xd81   :  { %v1308_v24 = vsub.f32 0.0, %v1305_v46 }
 0xd83   :  { %v1309_v44 = vmul.f32 1.442695, %v1308_v24 }
 0xd85   :  { %8145 = vpow2.f32 %v1309_v44 }
 0xd92   :  { %v8146_v49 = vpop.eup %8145 }
 0xd93   :  { %v1311_v50 = vadd.f32 1.0, %v8146_v49 }
 0xd95   :  { %8147 = vrcp.f32 %v1311_v50 }
 0xda2   :  { %v8148_v51 = vpop.eup %8147 }
 0xda3   :  { %v1313_v52 = vmul.f32 %v8148_v51, %v1305_v46 }
 0xda5   :  { %7388 = vmatmul.mubr.msk.f32.vlgmr.msra.gmra.mxu1 %vm130_vm1, %v1313_v52 }
 0xda6   :  { %7402 = vmatpush3.msra.mxu1 %v8461_v26  ;;  %7409 = vmatprep.mubr.msk.f32.mxu1 %vm8320_vm0, %v8319_v1 }
 0xda7   :  { %7403 = vmatprep.subr.mxu1 %v8319_v1 }
 0xda8   :  { %7404 = vmatpush3.msra.mxu1 %v8468_v27 }
 0xda9   :  { %7405 = vmatprep.subr.mxu1 %v8319_v1 }
 0xdaa   :  { %7406 = vmatpush3.msra.mxu1 %v8475_v28 }
 0xdab   :  { %7407 = vmatprep.subr.mxu1 %v8319_v1 }
 0xdac   :  { %7408 = vmatpush3.msra.mxu1 %v8482_v29 }
 0xdad   :  { %7423 = vmatprep.subr.mxu1 %v8319_v1 }
 0xe65   :  { %v1383_v55 = vpop.f32.mrf.mxu1 }
 0xe66   :  { %v1384_v56 = vadd.f32 %v8506_v40, %v1383_v55 }
 0xe67   :  { %v7389_v57 = vpop.f32.mrf.mxu1 }
 0xe68   :  { %v6653_v58 = vclamps-f32 %v1384_v56, 10.0 }
 0xe6a   :  { %v1392_v61 = vadd.f32 %v6653_v58, %v1391_v60 }
 0xe6c   :  { %v1393_v62 = vmul.f32 0.0125, %v1392_v61 }
 0xe6e   :  { %v8710_v63 = vadd.f32 %v1393_v62, %v8596_v48 }
 0xe70   :  { %7399 = vmatmul.mubr.msk.f32.vlgmr.msra.gmra.mxu0 %vm130_vm1, %v8710_v63 }
 0xe71   :  { %7413 = vmatpush3.msra.mxu0 %v8361_v5  ;;  %7420 = vmatprep.mubr.msk.f32.mxu0 %vm8320_vm0, %v8319_v1 }
 0xe72   :  { %7414 = vmatprep.subr.mxu0 %v8319_v1 }
 0xe73   :  { %7415 = vmatpush3.msra.mxu0 %v8367_v6 }
 0xe74   :  { %7416 = vmatprep.subr.mxu0 %v8319_v1 }
 0xe75   :  { %7417 = vmatpush3.msra.mxu0 %v8434_v20 }
 0xe76   :  { %7418 = vmatprep.subr.mxu0 %v8319_v1 }
 0xe77   :  { %7419 = vmatpush3.msra.mxu0 %v8442_v21 }
 0xe78   :  { %7434 = vmatprep.subr.mxu0 %v8319_v1 }
 0xf30   :  { %v1464_v48 = vpop.f32.mrf.mxu0 }
 0xf31   :  { %v1465_v59 = vadd.f32 %v8489_v30, %v1464_v48 }
 0xf32   :  { %v7400_v0 = vpop.f32.mrf.mxu0 }
 0xf33   :  { %v1468_v2 = vsub.f32 0.0, %v1465_v59 }
 0xf35   :  { %v1469_v3 = vmul.f32 1.442695, %v1468_v2 }
 0xf37   :  { %8149 = vpow2.f32 %v1469_v3 }
 0xf44   :  { %v8150_v4 = vpop.eup %8149 }
 0xf45   :  { %v1471_v7 = vadd.f32 1.0, %v8150_v4 }
 0xf47   :  { %8151 = vrcp.f32 %v1471_v7 }
 0xf54   :  { %v8152_v8 = vpop.eup %8151 }
 0xf55   :  { %v1473_v9 = vmul.f32 %v8152_v8, %v1465_v59 }
 0xf57   :  { %7410 = vmatmul.mubr.msk.f32.vlgmr.msra.gmra.mxu1 %vm130_vm1, %v1473_v9 }
 0xf58   :  { %7424 = vmatpush3.msra.mxu1 %v8461_v26  ;;  %7431 = vmatprep.mubr.msk.f32.mxu1 %vm8320_vm0, %v8319_v1 }
 0xf59   :  { %7425 = vmatprep.subr.mxu1 %v8319_v1 }
 0xf5a   :  { %7426 = vmatpush3.msra.mxu1 %v8468_v27 }
 0xf5b   :  { %7427 = vmatprep.subr.mxu1 %v8319_v1 }
 0xf5c   :  { %7428 = vmatpush3.msra.mxu1 %v8475_v28 }
 0xf5d   :  { %7429 = vmatprep.subr.mxu1 %v8319_v1 }
 0xf5e   :  { %7430 = vmatpush3.msra.mxu1 %v8482_v29 }
 0xf5f   :  { %7445 = vmatprep.subr.mxu1 %v8319_v1 }
0x1017   :  { %v1543_v10 = vpop.f32.mrf.mxu1 }
0x1018   :  { %v1544_v11 = vadd.f32 %v8506_v40, %v1543_v10 }
0x1019   :  { %v7411_v12 = vpop.f32.mrf.mxu1 }
0x101a   :  { %v8737_v13 = vclamps-f32 %v1544_v11, 10.0 }
0x101c   :  { %v1549_v14 = vmul.f32 0.033333335, %v8737_v13  ;;  %v1705_v37 = vmul.f32 0.33333334, %v8737_v13 }
0x101e   :  { %v1550_v15 = vadd.f32 %v1549_v14, %v8710_v63 }
0x1020   :  { %7421 = vmatmul.mubr.msk.f32.vlgmr.msra.gmra.mxu0 %vm130_vm1, %v1550_v15 }
0x1021   :  { %7435 = vmatpush3.msra.mxu0 %v8361_v5  ;;  %7442 = vmatprep.mubr.msk.f32.mxu0 %vm8320_vm0, %v8319_v1 }
0x1022   :  { %7436 = vmatprep.subr.mxu0 %v8319_v1 }
0x1023   :  { %7437 = vmatpush3.msra.mxu0 %v8367_v6 }
0x1024   :  { %7438 = vmatprep.subr.mxu0 %v8319_v1 }
0x1025   :  { %7439 = vmatpush3.msra.mxu0 %v8434_v20 }
0x1026   :  { %7440 = vmatprep.subr.mxu0 %v8319_v1 }
0x1027   :  { %7441 = vmatpush3.msra.mxu0 %v8442_v21 }
0x1028   :  { %7456 = vmatprep.subr.mxu0 %v8319_v1 }
0x10e0   :  { %v1620_v16 = vpop.f32.mrf.mxu0 }
0x10e1   :  { %v1621_v17 = vadd.f32 %v8489_v30, %v1620_v16  ;;  %v8831_v16 = vld [vmem:[%s9739_s1 + $0xa0] sm:$0xff] }
0x10e2   :  { %v7422_v18 = vpop.f32.mrf.mxu0 }
0x10e3   :  { %v1624_v19 = vsub.f32 0.0, %v1621_v17 }
0x10e5   :  { %v1625_v22 = vmul.f32 1.442695, %v1624_v19 }
0x10e7   :  { %8153 = vpow2.f32 %v1625_v22 }
0x10f4   :  { %v8154_v23 = vpop.eup %8153 }
0x10f5   :  { %v1627_v25 = vadd.f32 1.0, %v8154_v23 }
0x10f7   :  { %8155 = vrcp.f32 %v1627_v25 }
0x1104   :  { %v8156_v31 = vpop.eup %8155 }
0x1105   :  { %v1629_v32 = vmul.f32 %v8156_v31, %v1621_v17 }
0x1107   :  { %7432 = vmatmul.mubr.msk.f32.vlgmr.msra.gmra.mxu1 %vm130_vm1, %v1629_v32 }
0x1108   :  { %7446 = vmatpush3.msra.mxu1 %v8461_v26  ;;  %7453 = vmatprep.mubr.msk.f32.mxu1 %vm8320_vm0, %v8319_v1 }
0x1109   :  { %7447 = vmatprep.subr.mxu1 %v8319_v1 }
0x110a   :  { %7448 = vmatpush3.msra.mxu1 %v8468_v27 }
0x110b   :  { %7449 = vmatprep.subr.mxu1 %v8319_v1 }
0x110c   :  { %7450 = vmatpush3.msra.mxu1 %v8475_v28 }
0x110d   :  { %7451 = vmatprep.subr.mxu1 %v8319_v1 }
0x110e   :  { %7452 = vmatpush3.msra.mxu1 %v8482_v29 }
0x110f   :  { %7467 = vmatprep.subr.mxu1 %v8319_v1 }
0x11c7   :  { %v1699_v33 = vpop.f32.mrf.mxu1 }
0x11c8   :  { %v1700_v34 = vadd.f32 %v8506_v40, %v1699_v33 }
0x11c9   :  { %v7433_v35 = vpop.f32.mrf.mxu1 }
0x11ca   :  { %v8765_v36 = vclamps-f32 %v1700_v34, 10.0 }
0x11cc   :  { %v1706_v38 = vsub.f32 %v8765_v36, %v1705_v37  ;;  %v1863_v55 = vsub.f32 %v8737_v13, %v8765_v36 }
0x11ce   :  { %v1707_v39 = vmul.f32 0.1, %v1706_v38 }
0x11d0   :  { %v1708_v41 = vadd.f32 %v1707_v39, %v8710_v63 }
0x11d2   :  { %7443 = vmatmul.mubr.msk.f32.vlgmr.msra.gmra.mxu0 %vm130_vm1, %v1708_v41 }
0x11d3   :  { %7457 = vmatpush3.msra.mxu0 %v8361_v5  ;;  %7464 = vmatprep.mubr.msk.f32.mxu0 %vm8320_vm0, %v8319_v1 }
0x11d4   :  { %7458 = vmatprep.subr.mxu0 %v8319_v1 }
0x11d5   :  { %7459 = vmatpush3.msra.mxu0 %v8367_v6 }
0x11d6   :  { %7460 = vmatprep.subr.mxu0 %v8319_v1 }
0x11d7   :  { %7461 = vmatpush3.msra.mxu0 %v8434_v20 }
0x11d8   :  { %7462 = vmatprep.subr.mxu0 %v8319_v1 }
0x11d9   :  { %7463 = vmatpush3.msra.mxu0 %v8442_v21 }
0x11da   :  { %7478 = vmatprep.subr.mxu0 %v8319_v1 }
0x1292   :  { %v1778_v42 = vpop.f32.mrf.mxu0 }
0x1293   :  { %v1779_v43 = vadd.f32 %v8489_v30, %v1778_v42 }
0x1294   :  { %v7444_v45 = vpop.f32.mrf.mxu0 }
0x1295   :  { %v1782_v46 = vsub.f32 0.0, %v1779_v43 }
0x1297   :  { %v1783_v47 = vmul.f32 1.442695, %v1782_v46  ;;  %v8891_v46 = vld [vmem:[%s9739_s1 + $0xc8] sm:$0xff] }
0x1299   :  { %8157 = vpow2.f32 %v1783_v47  ;;  %v8907_v47 = vld [vmem:[%s9739_s1 + $0xb8] sm:$0xff] }
0x12a6   :  { %v8158_v24 = vpop.eup %8157 }
0x12a7   :  { %v1785_v44 = vadd.f32 1.0, %v8158_v24  ;;  %v8914_v24 = vld [vmem:[%s9739_s1 + $0xb0] sm:$0xff] }
0x12a9   :  { %8159 = vrcp.f32 %v1785_v44 }
0x12b6   :  { %v8160_v49 = vpop.eup %8159 }
0x12b7   :  { %v1787_v50 = vmul.f32 %v8160_v49, %v1779_v43 }
0x12b9   :  { %7454 = vmatmul.mubr.msk.f32.vlgmr.msra.gmra.mxu1 %vm130_vm1, %v1787_v50 }
0x12ba   :  { %7468 = vmatpush3.msra.mxu1 %v8461_v26  ;;  %7475 = vmatprep.mubr.msk.f32.mxu1 %vm8320_vm0, %v8319_v1 }
0x12bb   :  { %7469 = vmatprep.subr.mxu1 %v8319_v1 }
0x12bc   :  { %7470 = vmatpush3.msra.mxu1 %v8468_v27 }
0x12bd   :  { %7471 = vmatprep.subr.mxu1 %v8319_v1 }
0x12be   :  { %7472 = vmatpush3.msra.mxu1 %v8475_v28 }
0x12bf   :  { %7473 = vmatprep.subr.mxu1 %v8319_v1 }
0x12c0   :  { %7474 = vmatpush3.msra.mxu1 %v8482_v29 }
0x12c1   :  { %7489 = vmatprep.subr.mxu1 %v8319_v1 }
0x1379   :  { %v1857_v51 = vpop.f32.mrf.mxu1 }
0x137a   :  { %v1858_v52 = vadd.f32 %v8506_v40, %v1857_v51 }
0x137b   :  { %v7455_v53 = vpop.f32.mrf.mxu1 }
0x137c   :  { %v6662_v54 = vclamps-f32 %v1858_v52, 10.0 }
0x137e   :  { %v1864_v56 = vadd.f32 %v6662_v54, %v1863_v55  ;;  %v2021_v3 = vadd.f32 %v6662_v54, %v8765_v36 }
0x1380   :  { %v1865_v57 = vmul.f32 0.1, %v1864_v56  ;;  %v2022_v4 = vmul.f32 3.0, %v2021_v3  ;;  %v8938_v56 = vld [vmem:[%s9739_s1 + $0xa8] ss:$0 sm:$0xff] }
0x1382   :  { %v1866_v58 = vadd.f32 %v1865_v57, %v8710_v63  ;;  %v2023_v11 = vadd.f32 %v8737_v13, %v2022_v4 }
0x1384   :  { %7465 = vmatmul.mubr.msk.f32.vlgmr.msra.gmra.mxu0 %vm130_vm1, %v1866_v58 }
0x1385   :  { %7479 = vmatpush3.msra.mxu0 %v8361_v5  ;;  %7486 = vmatprep.mubr.msk.f32.mxu0 %vm8320_vm0, %v8319_v1 }
0x1386   :  { %7480 = vmatprep.subr.mxu0 %v8319_v1 }
0x1387   :  { %7481 = vmatpush3.msra.mxu0 %v8367_v6 }
0x1388   :  { %7482 = vmatprep.subr.mxu0 %v8319_v1 }
0x1389   :  { %7483 = vmatpush3.msra.mxu0 %v8434_v20 }
0x138a   :  { %7484 = vmatprep.subr.mxu0 %v8319_v1 }
0x138b   :  { %7485 = vmatpush3.msra.mxu0 %v8442_v21 }
0x138c   :  { %7500 = vmatprep.subr.mxu0 %v8319_v1 }
0x1444   :  { %v1936_v60 = vpop.f32.mrf.mxu0 }
0x1445   :  { %v1937_v5 = vadd.f32 %v8489_v30, %v1936_v60 }
0x1446   :  { %v7466_v61 = vpop.f32.mrf.mxu0 }
0x1447   :  { %v1940_v62 = vsub.f32 0.0, %v1937_v5 }
0x1449   :  { %v1941_v48 = vmul.f32 1.442695, %v1940_v62 }
0x144b   :  { %8161 = vpow2.f32 %v1941_v48 }
0x1458   :  { %v8162_v59 = vpop.eup %8161 }
0x1459   :  { %v1943_v0 = vadd.f32 1.0, %v8162_v59 }
0x145b   :  { %8163 = vrcp.f32 %v1943_v0 }
0x1468   :  { %v8164_v6 = vpop.eup %8163 }
0x1469   :  { %v1945_v2 = vmul.f32 %v8164_v6, %v1937_v5  ;;  %v8955_v6 = vld [vmem:[%s9739_s1 + $0xd0] ss:$0 sm:$0xff] }
0x146b   :  { %7476 = vmatmul.mubr.msk.f32.vlgmr.msra.gmra.mxu1 %vm130_vm1, %v1945_v2 }
0x146c   :  { %7490 = vmatpush3.msra.mxu1 %v8461_v26  ;;  %7497 = vmatprep.mubr.msk.f32.mxu1 %vm8320_vm0, %v8319_v1 }
0x146d   :  { %7491 = vmatprep.subr.mxu1 %v8319_v1 }
0x146e   :  { %7492 = vmatpush3.msra.mxu1 %v8468_v27 }
0x146f   :  { %7493 = vmatprep.subr.mxu1 %v8319_v1 }
0x1470   :  { %7494 = vmatpush3.msra.mxu1 %v8475_v28 }
0x1471   :  { %7495 = vmatprep.subr.mxu1 %v8319_v1 }
0x1472   :  { %7496 = vmatpush3.msra.mxu1 %v8482_v29 }
0x1473   :  { %7511 = vmatprep.subr.mxu1 %v8319_v1 }
0x152b   :  { %v2015_v7 = vpop.f32.mrf.mxu1 }
0x152c   :  { %v2016_v8 = vadd.f32 %v8506_v40, %v2015_v7 }
0x152d   :  { %v7477_v9 = vpop.f32.mrf.mxu1 }
0x152e   :  { %v6665_v10 = vclamps-f32 %v2016_v8, 10.0 }
0x1530   :  { %v2024_v12 = vadd.f32 %v6665_v10, %v2023_v11 }
0x1532   :  { %v2025_v14 = vmul.f32 0.0125, %v2024_v12 }
0x1534   :  { %v8824_v15 = vadd.f32 %v2025_v14, %v8710_v63  ;;  %v8840_v63 = vld [vmem:[%s9739_s1 + $0x98] sm:$0xff] }
0x1536   :  { %7487 = vmatmul.mubr.msk.f32.vlgmr.msra.gmra.mxu0 %vm130_vm1, %v8824_v15 }
0x1537   :  { %7501 = vmatpush3.msra.mxu0 %v8831_v16  ;;  %7508 = vmatprep.mubr.msk.f32.mxu0 %vm8320_vm0, %v8319_v1 }
0x1538   :  { %7502 = vmatprep.subr.mxu0 %v8319_v1 }
0x1539   :  { %7503 = vmatpush3.msra.mxu0 %v8840_v63 }
0x153a   :  { %7504 = vmatprep.subr.mxu0 %v8319_v1 }
0x153b   :  { %7505 = vmatpush3.msra.mxu0 %v8434_v20 }
0x153c   :  { %7506 = vmatprep.subr.mxu0 %v8319_v1 }
0x153d   :  { %7507 = vmatpush3.msra.mxu0 %v8442_v21 }
0x153e   :  { %7522 = vmatprep.subr.mxu0 %v8319_v1 }
0x15f6   :  { %v2096_v13 = vpop.f32.mrf.mxu0 }
0x15f7   :  { %v2097_v17 = vadd.f32 %v8489_v30, %v2096_v13 }
0x15f8   :  { %v7488_v18 = vpop.f32.mrf.mxu0 }
0x15f9   :  { %v2100_v19 = vsub.f32 0.0, %v2097_v17 }
0x15fb   :  { %v2101_v22 = vmul.f32 1.442695, %v2100_v19 }
0x15fd   :  { %8165 = vpow2.f32 %v2101_v22 }
0x160a   :  { %v8166_v23 = vpop.eup %8165 }
0x160b   :  { %v2103_v25 = vadd.f32 1.0, %v8166_v23 }
0x160d   :  { %8167 = vrcp.f32 %v2103_v25 }
0x161a   :  { %v8168_v31 = vpop.eup %8167 }
0x161b   :  { %v2105_v32 = vmul.f32 %v8168_v31, %v2097_v17 }
0x161d   :  { %7498 = vmatmul.mubr.msk.f32.vlgmr.msra.gmra.mxu1 %vm130_vm1, %v2105_v32 }
0x161e   :  { %7512 = vmatpush3.msra.mxu1 %v8461_v26  ;;  %7519 = vmatprep.mubr.msk.f32.mxu1 %vm8320_vm0, %v8319_v1 }
0x161f   :  { %7513 = vmatprep.subr.mxu1 %v8319_v1 }
0x1620   :  { %7514 = vmatpush3.msra.mxu1 %v8468_v27 }
0x1621   :  { %7515 = vmatprep.subr.mxu1 %v8319_v1 }
0x1622   :  { %7516 = vmatpush3.msra.mxu1 %v8475_v28  ;;  %v8875_v28 = vld [vmem:[%s9739_s1 + $0x90] sm:$0xff] }
0x1623   :  { %7517 = vmatprep.subr.mxu1 %v8319_v1 }
0x1624   :  { %7518 = vmatpush3.msra.mxu1 %v8482_v29  ;;  %v8882_v29 = vld [vmem:[%s9739_s1 + $0x88] sm:$0xff] }
0x1625   :  { %7533 = vmatprep.subr.mxu1 %v8319_v1 }
0x16dd   :  { %v2175_v20 = vpop.f32.mrf.mxu1 }
0x16de   :  { %v2176_v21 = vadd.f32 %v8506_v40, %v2175_v20 }
0x16df   :  { %v7499_v26 = vpop.f32.mrf.mxu1 }
0x16e0   :  { %v8861_v33 = vclamps-f32 %v2176_v21, 10.0 }
0x16e2   :  { %v2181_v34 = vmul.f32 0.033333335, %v8861_v33  ;;  %v2337_v52 = vmul.f32 0.33333334, %v8861_v33 }
0x16e4   :  { %v2182_v27 = vadd.f32 %v2181_v34, %v8824_v15 }
0x16e6   :  { %7509 = vmatmul.mubr.msk.f32.vlgmr.msra.gmra.mxu0 %vm130_vm1, %v2182_v27 }
0x16e7   :  { %7523 = vmatpush3.msra.mxu0 %v8831_v16  ;;  %7530 = vmatprep.mubr.msk.f32.mxu0 %vm8320_vm0, %v8319_v1 }
0x16e8   :  { %7524 = vmatprep.subr.mxu0 %v8319_v1 }
0x16e9   :  { %7525 = vmatpush3.msra.mxu0 %v8840_v63 }
0x16ea   :  { %7526 = vmatprep.subr.mxu0 %v8319_v1 }
0x16eb   :  { %7527 = vmatpush3.msra.mxu0 %v8875_v28 }
0x16ec   :  { %7528 = vmatprep.subr.mxu0 %v8319_v1 }
0x16ed   :  { %7529 = vmatpush3.msra.mxu0 %v8882_v29 }
0x16ee   :  { %7544 = vmatprep.subr.mxu0 %v8319_v1 }
0x17a6   :  { %v2252_v35 = vpop.f32.mrf.mxu0 }
0x17a7   :  { %v2253_v36 = vadd.f32 %v8489_v30, %v2252_v35  ;;  %v8900_v30 = vld [vmem:[%s9739_s1 + $0xc0] sm:$0xff] }
0x17a8   :  { %v7510_v37 = vpop.f32.mrf.mxu0 }
0x17a9   :  { %v2256_v38 = vsub.f32 0.0, %v2253_v36 }
0x17ab   :  { %v2257_v39 = vmul.f32 1.442695, %v2256_v38 }
0x17ad   :  { %8169 = vpow2.f32 %v2257_v39 }
0x17ba   :  { %v8170_v41 = vpop.eup %8169 }
0x17bb   :  { %v2259_v42 = vadd.f32 1.0, %v8170_v41 }
0x17bd   :  { %8171 = vrcp.f32 %v2259_v42 }
0x17ca   :  { %v8172_v43 = vpop.eup %8171 }
0x17cb   :  { %v2261_v45 = vmul.f32 %v8172_v43, %v2253_v36 }
0x17cd   :  { %7520 = vmatmul.mubr.msk.f32.vlgmr.msra.gmra.mxu1 %vm130_vm1, %v2261_v45 }
0x17ce   :  { %7534 = vmatpush3.msra.mxu1 %v8891_v46  ;;  %7541 = vmatprep.mubr.msk.f32.mxu1 %vm8320_vm0, %v8319_v1 }
0x17cf   :  { %7535 = vmatprep.subr.mxu1 %v8319_v1 }
0x17d0   :  { %7536 = vmatpush3.msra.mxu1 %v8900_v30 }
0x17d1   :  { %7537 = vmatprep.subr.mxu1 %v8319_v1 }
0x17d2   :  { %7538 = vmatpush3.msra.mxu1 %v8907_v47 }
0x17d3   :  { %7539 = vmatprep.subr.mxu1 %v8319_v1 }
0x17d4   :  { %7540 = vmatpush3.msra.mxu1 %v8914_v24 }
0x17d5   :  { %7555 = vmatprep.subr.mxu1 %v8319_v1 }
0x188d   :  { %v2331_v44 = vpop.f32.mrf.mxu1 }
0x188e   :  { %v2332_v49 = vadd.f32 %v8506_v40, %v2331_v44 }
0x188f   :  { %v7521_v50 = vpop.f32.mrf.mxu1 }
0x1890   :  { %v8919_v51 = vclamps-f32 %v2332_v49, 10.0 }
0x1892   :  { %v2338_v53 = vsub.f32 %v8919_v51, %v2337_v52  ;;  %v2495_v7 = vsub.f32 %v8861_v33, %v8919_v51 }
0x1894   :  { %v2339_v54 = vmul.f32 0.1, %v2338_v53 }
0x1896   :  { %v2340_v55 = vadd.f32 %v2339_v54, %v8824_v15 }
0x1898   :  { %7531 = vmatmul.mubr.msk.f32.vlgmr.msra.gmra.mxu0 %vm130_vm1, %v2340_v55 }
0x1899   :  { %7545 = vmatpush3.msra.mxu0 %v8831_v16  ;;  %7552 = vmatprep.mubr.msk.f32.mxu0 %vm8320_vm0, %v8319_v1 }
0x189a   :  { %7546 = vmatprep.subr.mxu0 %v8319_v1 }
0x189b   :  { %7547 = vmatpush3.msra.mxu0 %v8840_v63 }
0x189c   :  { %7548 = vmatprep.subr.mxu0 %v8319_v1 }
0x189d   :  { %7549 = vmatpush3.msra.mxu0 %v8875_v28 }
0x189e   :  { %7550 = vmatprep.subr.mxu0 %v8319_v1 }
0x189f   :  { %7551 = vmatpush3.msra.mxu0 %v8882_v29 }
0x18a0   :  { %7566 = vmatprep.subr.mxu0 %v8319_v1 }
0x1958   :  { %v2410_v40 = vpop.f32.mrf.mxu0 }
0x1959   :  { %v2411_v57 = vadd.f32 %v8938_v56, %v2410_v40 }
0x195a   :  { %v7532_v58 = vpop.f32.mrf.mxu0 }
0x195b   :  { %v2414_v60 = vsub.f32 0.0, %v2411_v57 }
0x195d   :  { %v2415_v5 = vmul.f32 1.442695, %v2414_v60 }
0x195f   :  { %8173 = vpow2.f32 %v2415_v5 }
0x196c   :  { %v8174_v61 = vpop.eup %8173 }
0x196d   :  { %v2417_v62 = vadd.f32 1.0, %v8174_v61 }
0x196f   :  { %8175 = vrcp.f32 %v2417_v62 }
0x197c   :  { %v8176_v48 = vpop.eup %8175 }
0x197d   :  { %v2419_v59 = vmul.f32 %v8176_v48, %v2411_v57 }
0x197f   :  { %7542 = vmatmul.mubr.msk.f32.vlgmr.msra.gmra.mxu1 %vm130_vm1, %v2419_v59 }
0x1980   :  { %7556 = vmatpush3.msra.mxu1 %v8891_v46  ;;  %7563 = vmatprep.mubr.msk.f32.mxu1 %vm8320_vm0, %v8319_v1 }
0x1981   :  { %7557 = vmatprep.subr.mxu1 %v8319_v1 }
0x1982   :  { %7558 = vmatpush3.msra.mxu1 %v8900_v30 }
0x1983   :  { %7559 = vmatprep.subr.mxu1 %v8319_v1 }
0x1984   :  { %7560 = vmatpush3.msra.mxu1 %v8907_v47 }
0x1985   :  { %7561 = vmatprep.subr.mxu1 %v8319_v1 }
0x1986   :  { %7562 = vmatpush3.msra.mxu1 %v8914_v24 }
0x1987   :  { %7577 = vmatprep.subr.mxu1 %v8319_v1 }
0x1a3f   :  { %v2489_v0 = vpop.f32.mrf.mxu1 }
0x1a40   :  { %v2490_v2 = vadd.f32 %v8955_v6, %v2489_v0 }
0x1a41   :  { %v7543_v3 = vpop.f32.mrf.mxu1 }
0x1a42   :  { %v6674_v4 = vclamps-f32 %v2490_v2, 10.0 }
0x1a44   :  { %v2496_v8 = vadd.f32 %v6674_v4, %v2495_v7  ;;  %v2653_v25 = vadd.f32 %v6674_v4, %v8919_v51 }
0x1a46   :  { %v2497_v9 = vmul.f32 0.1, %v2496_v8  ;;  %v2654_v31 = vmul.f32 3.0, %v2653_v25 }
0x1a48   :  { %v2498_v10 = vadd.f32 %v2497_v9, %v8824_v15  ;;  %v2655_v34 = vadd.f32 %v8861_v33, %v2654_v31 }
0x1a4a   :  { %7553 = vmatmul.mubr.msk.f32.vlgmr.msra.gmra.mxu0 %vm130_vm1, %v2498_v10 }
0x1a4b   :  { %7567 = vmatpush3.msra.mxu0 %v8831_v16  ;;  %7574 = vmatprep.mubr.msk.f32.mxu0 %vm8320_vm0, %v8319_v1 }
0x1a4c   :  { %7568 = vmatprep.subr.mxu0 %v8319_v1 }
0x1a4d   :  { %7569 = vmatpush3.msra.mxu0 %v8840_v63 }
0x1a4e   :  { %7570 = vmatprep.subr.mxu0 %v8319_v1 }
0x1a4f   :  { %7571 = vmatpush3.msra.mxu0 %v8875_v28 }
0x1a50   :  { %7572 = vmatprep.subr.mxu0 %v8319_v1 }
0x1a51   :  { %7573 = vmatpush3.msra.mxu0 %v8882_v29 }
0x1a52   :  { %7588 = vmatprep.subr.mxu0 %v8319_v1 }
0x1b0a   :  { %v2568_v11 = vpop.f32.mrf.mxu0 }
0x1b0b   :  { %v2569_v12 = vadd.f32 %v8938_v56, %v2568_v11 }
0x1b0c   :  { %v7554_v14 = vpop.f32.mrf.mxu0 }
0x1b0d   :  { %v2572_v13 = vsub.f32 0.0, %v2569_v12 }
0x1b0f   :  { %v2573_v17 = vmul.f32 1.442695, %v2572_v13 }
0x1b11   :  { %8177 = vpow2.f32 %v2573_v17 }
0x1b1e   :  { %v8178_v18 = vpop.eup %8177 }
0x1b1f   :  { %v2575_v19 = vadd.f32 1.0, %v8178_v18 }
0x1b21   :  { %8179 = vrcp.f32 %v2575_v19 }
0x1b2e   :  { %v8180_v22 = vpop.eup %8179 }
0x1b2f   :  { %v2577_v23 = vmul.f32 %v8180_v22, %v2569_v12 }
0x1b31   :  { %7564 = vmatmul.mubr.msk.f32.vlgmr.msra.gmra.mxu1 %vm130_vm1, %v2577_v23 }
0x1b32   :  { %7578 = vmatpush3.msra.mxu1 %v8891_v46  ;;  %7585 = vmatprep.mubr.msk.f32.mxu1 %vm8320_vm0, %v8319_v1 }
0x1b33   :  { %7579 = vmatprep.subr.mxu1 %v8319_v1 }
0x1b34   :  { %7580 = vmatpush3.msra.mxu1 %v8900_v30 }
0x1b35   :  { %7581 = vmatprep.subr.mxu1 %v8319_v1 }
0x1b36   :  { %7582 = vmatpush3.msra.mxu1 %v8907_v47 }
0x1b37   :  { %7583 = vmatprep.subr.mxu1 %v8319_v1 }
0x1b38   :  { %7584 = vmatpush3.msra.mxu1 %v8914_v24 }
0x1b39   :  { %7599 = vmatprep.subr.mxu1 %v8319_v1 }
0x1bf1   :  { %v2647_v32 = vpop.f32.mrf.mxu1 }
0x1bf2   :  { %v2648_v20 = vadd.f32 %v8955_v6, %v2647_v32 }
0x1bf3   :  { %v7565_v21 = vpop.f32.mrf.mxu1 }
0x1bf4   :  { %v6677_v26 = vclamps-f32 %v2648_v20, 10.0 }
0x1bf6   :  { %v2656_v27 = vadd.f32 %v6677_v26, %v2655_v34 }
0x1bf8   :  { %v2657_v35 = vmul.f32 0.0125, %v2656_v27 }
0x1bfa   :  { %v8988_v36 = vadd.f32 %v2657_v35, %v8824_v15 }
0x1bfc   :  { %7575 = vmatmul.mubr.msk.f32.vlgmr.msra.gmra.mxu0 %vm130_vm1, %v8988_v36 }
0x1bfd   :  { %7589 = vmatpush3.msra.mxu0 %v8831_v16  ;;  %7596 = vmatprep.mubr.msk.f32.mxu0 %vm8320_vm0, %v8319_v1 }
0x1bfe   :  { %7590 = vmatprep.subr.mxu0 %v8319_v1 }
0x1bff   :  { %7591 = vmatpush3.msra.mxu0 %v8840_v63 }
0x1c00   :  { %7592 = vmatprep.subr.mxu0 %v8319_v1 }
0x1c01   :  { %7593 = vmatpush3.msra.mxu0 %v8875_v28 }
0x1c02   :  { %7594 = vmatprep.subr.mxu0 %v8319_v1 }
0x1c03   :  { %7595 = vmatpush3.msra.mxu0 %v8882_v29 }
0x1c04   :  { %7610 = vmatprep.subr.mxu0 %v8319_v1 }
0x1cbc   :  { %v2728_v15 = vpop.f32.mrf.mxu0 }
0x1cbd   :  { %v2729_v33 = vadd.f32 %v8938_v56, %v2728_v15 }
0x1cbe   :  { %v7576_v37 = vpop.f32.mrf.mxu0 }
0x1cbf   :  { %v2732_v38 = vsub.f32 0.0, %v2729_v33 }
0x1cc1   :  { %v2733_v39 = vmul.f32 1.442695, %v2732_v38 }
0x1cc3   :  { %8181 = vpow2.f32 %v2733_v39 }
0x1cd0   :  { %v8182_v41 = vpop.eup %8181 }
0x1cd1   :  { %v2735_v42 = vadd.f32 1.0, %v8182_v41 }
0x1cd3   :  { %8183 = vrcp.f32 %v2735_v42 }
0x1ce0   :  { %v8184_v43 = vpop.eup %8183 }
0x1ce1   :  { %v2737_v45 = vmul.f32 %v8184_v43, %v2729_v33 }
0x1ce3   :  { %7586 = vmatmul.mubr.msk.f32.vlgmr.msra.gmra.mxu1 %vm130_vm1, %v2737_v45 }
0x1ce4   :  { %7600 = vmatpush3.msra.mxu1 %v8891_v46  ;;  %7607 = vmatprep.mubr.msk.f32.mxu1 %vm8320_vm0, %v8319_v1 }
0x1ce5   :  { %7601 = vmatprep.subr.mxu1 %v8319_v1 }
0x1ce6   :  { %7602 = vmatpush3.msra.mxu1 %v8900_v30 }
0x1ce7   :  { %7603 = vmatprep.subr.mxu1 %v8319_v1 }
0x1ce8   :  { %7604 = vmatpush3.msra.mxu1 %v8907_v47 }
0x1ce9   :  { %7605 = vmatprep.subr.mxu1 %v8319_v1 }
0x1cea   :  { %7606 = vmatpush3.msra.mxu1 %v8914_v24 }
0x1ceb   :  { %7621 = vmatprep.subr.mxu1 %v8319_v1 }
0x1da3   :  { %v2807_v44 = vpop.f32.mrf.mxu1 }
0x1da4   :  { %v2808_v49 = vadd.f32 %v8955_v6, %v2807_v44 }
0x1da5   :  { %v7587_v50 = vpop.f32.mrf.mxu1 }
0x1da6   :  { %v9015_v51 = vclamps-f32 %v2808_v49, 10.0 }
0x1da8   :  { %v2813_v52 = vmul.f32 0.033333335, %v9015_v51  ;;  %v2969_v3 = vmul.f32 0.33333334, %v9015_v51 }
0x1daa   :  { %v2814_v53 = vadd.f32 %v2813_v52, %v8988_v36 }
0x1dac   :  { %7597 = vmatmul.mubr.msk.f32.vlgmr.msra.gmra.mxu0 %vm130_vm1, %v2814_v53 }
0x1dad   :  { %7611 = vmatpush3.msra.mxu0 %v8831_v16  ;;  %7618 = vmatprep.mubr.msk.f32.mxu0 %vm8320_vm0, %v8319_v1 }
0x1dae   :  { %7612 = vmatprep.subr.mxu0 %v8319_v1 }
0x1daf   :  { %7613 = vmatpush3.msra.mxu0 %v8840_v63 }
0x1db0   :  { %7614 = vmatprep.subr.mxu0 %v8319_v1 }
0x1db1   :  { %7615 = vmatpush3.msra.mxu0 %v8875_v28 }
0x1db2   :  { %7616 = vmatprep.subr.mxu0 %v8319_v1 }
0x1db3   :  { %7617 = vmatpush3.msra.mxu0 %v8882_v29 }
0x1db4   :  { %7632 = vmatprep.subr.mxu0 %v8319_v1 }
0x1e6c   :  { %v2884_v54 = vpop.f32.mrf.mxu0 }
0x1e6d   :  { %v2885_v55 = vadd.f32 %v8938_v56, %v2884_v54 }
0x1e6e   :  { %v7598_v40 = vpop.f32.mrf.mxu0 }
0x1e6f   :  { %v2888_v57 = vsub.f32 0.0, %v2885_v55 }
0x1e71   :  { %v2889_v58 = vmul.f32 1.442695, %v2888_v57 }
0x1e73   :  { %8185 = vpow2.f32 %v2889_v58 }
0x1e80   :  { %v8186_v60 = vpop.eup %8185 }
0x1e81   :  { %v2891_v5 = vadd.f32 1.0, %v8186_v60 }
0x1e83   :  { %8187 = vrcp.f32 %v2891_v5 }
0x1e90   :  { %v8188_v61 = vpop.eup %8187 }
0x1e91   :  { %v2893_v62 = vmul.f32 %v8188_v61, %v2885_v55 }
0x1e93   :  { %7608 = vmatmul.mubr.msk.f32.vlgmr.msra.gmra.mxu1 %vm130_vm1, %v2893_v62 }
0x1e94   :  { %7622 = vmatpush3.msra.mxu1 %v8891_v46  ;;  %7629 = vmatprep.mubr.msk.f32.mxu1 %vm8320_vm0, %v8319_v1 }
0x1e95   :  { %7623 = vmatprep.subr.mxu1 %v8319_v1 }
0x1e96   :  { %7624 = vmatpush3.msra.mxu1 %v8900_v30 }
0x1e97   :  { %7625 = vmatprep.subr.mxu1 %v8319_v1 }
0x1e98   :  { %7626 = vmatpush3.msra.mxu1 %v8907_v47 }
0x1e99   :  { %7627 = vmatprep.subr.mxu1 %v8319_v1 }
0x1e9a   :  { %7628 = vmatpush3.msra.mxu1 %v8914_v24 }
0x1e9b   :  { %7643 = vmatprep.subr.mxu1 %v8319_v1 }
0x1f53   :  { %v2963_v48 = vpop.f32.mrf.mxu1 }
0x1f54   :  { %v2964_v59 = vadd.f32 %v8955_v6, %v2963_v48 }
0x1f55   :  { %v7609_v0 = vpop.f32.mrf.mxu1 }
0x1f56   :  { %v9043_v2 = vclamps-f32 %v2964_v59, 10.0 }
0x1f58   :  { %v2970_v4 = vsub.f32 %v9043_v2, %v2969_v3  ;;  %v3127_v32 = vsub.f32 %v9015_v51, %v9043_v2 }
0x1f5a   :  { %v2971_v7 = vmul.f32 0.1, %v2970_v4 }
0x1f5c   :  { %v2972_v8 = vadd.f32 %v2971_v7, %v8988_v36 }
0x1f5e   :  { %7619 = vmatmul.mubr.msk.f32.vlgmr.msra.gmra.mxu0 %vm130_vm1, %v2972_v8 }
0x1f5f   :  { %7633 = vmatpush3.msra.mxu0 %v8831_v16  ;;  %7640 = vmatprep.mubr.msk.f32.mxu0 %vm8320_vm0, %v8319_v1 }
0x1f60   :  { %7634 = vmatprep.subr.mxu0 %v8319_v1 }
0x1f61   :  { %7635 = vmatpush3.msra.mxu0 %v8840_v63 }
0x1f62   :  { %7636 = vmatprep.subr.mxu0 %v8319_v1 }
0x1f63   :  { %7637 = vmatpush3.msra.mxu0 %v8875_v28 }
0x1f64   :  { %7638 = vmatprep.subr.mxu0 %v8319_v1 }
0x1f65   :  { %7639 = vmatpush3.msra.mxu0 %v8882_v29 }
0x1f66   :  { %7654 = vmatprep.subr.mxu0 %v8319_v1 }
0x201e   :  { %v3042_v9 = vpop.f32.mrf.mxu0 }
0x201f   :  { %v3043_v10 = vadd.f32 %v8938_v56, %v3042_v9 }
0x2020   :  { %v7620_v11 = vpop.f32.mrf.mxu0 }
0x2021   :  { %v3046_v12 = vsub.f32 0.0, %v3043_v10 }
0x2023   :  { %v3047_v14 = vmul.f32 1.442695, %v3046_v12 }
0x2025   :  { %8189 = vpow2.f32 %v3047_v14 }
0x2032   :  { %v8190_v13 = vpop.eup %8189 }
0x2033   :  { %v3049_v17 = vadd.f32 1.0, %v8190_v13 }
0x2035   :  { %8191 = vrcp.f32 %v3049_v17 }
0x2042   :  { %v8192_v18 = vpop.eup %8191 }
0x2043   :  { %v3051_v19 = vmul.f32 %v8192_v18, %v3043_v10 }
0x2045   :  { %7630 = vmatmul.mubr.msk.f32.vlgmr.msra.gmra.mxu1 %vm130_vm1, %v3051_v19 }
0x2046   :  { %7644 = vmatpush3.msra.mxu1 %v8891_v46  ;;  %7651 = vmatprep.mubr.msk.f32.mxu1 %vm8320_vm0, %v8319_v1 }
0x2047   :  { %7645 = vmatprep.subr.mxu1 %v8319_v1 }
0x2048   :  { %7646 = vmatpush3.msra.mxu1 %v8900_v30 }
0x2049   :  { %7647 = vmatprep.subr.mxu1 %v8319_v1 }
0x204a   :  { %7648 = vmatpush3.msra.mxu1 %v8907_v47 }
0x204b   :  { %7649 = vmatprep.subr.mxu1 %v8319_v1 }
0x204c   :  { %7650 = vmatpush3.msra.mxu1 %v8914_v24 }
0x204d   :  { %7665 = vmatprep.subr.mxu1 %v8319_v1 }
0x2105   :  { %v3121_v22 = vpop.f32.mrf.mxu1 }
0x2106   :  { %v3122_v23 = vadd.f32 %v8955_v6, %v3121_v22 }
0x2107   :  { %v7631_v25 = vpop.f32.mrf.mxu1 }
0x2108   :  { %v6686_v31 = vclamps-f32 %v3122_v23, 10.0 }
0x210a   :  { %v3128_v20 = vadd.f32 %v6686_v31, %v3127_v32  ;;  %v3285_v42 = vadd.f32 %v6686_v31, %v9043_v2 }
0x210c   :  { %v3129_v21 = vmul.f32 0.1, %v3128_v20  ;;  %v3286_v43 = vmul.f32 3.0, %v3285_v42 }
0x210e   :  { %v3130_v26 = vadd.f32 %v3129_v21, %v8988_v36  ;;  %v3287_v52 = vadd.f32 %v9015_v51, %v3286_v43 }
0x2110   :  { %7641 = vmatmul.mubr.msk.f32.vlgmr.msra.gmra.mxu0 %vm130_vm1, %v3130_v26 }
0x2111   :  { %7655 = vmatpush3.msra.mxu0 %v8831_v16  ;;  %7662 = vmatprep.mubr.msk.f32.mxu0 %vm8320_vm0, %v8319_v1 }
0x2112   :  { %7656 = vmatprep.subr.mxu0 %v8319_v1 }
0x2113   :  { %7657 = vmatpush3.msra.mxu0 %v8840_v63 }
0x2114   :  { %7658 = vmatprep.subr.mxu0 %v8319_v1 }
0x2115   :  { %7659 = vmatpush3.msra.mxu0 %v8875_v28 }
0x2116   :  { %7660 = vmatprep.subr.mxu0 %v8319_v1 }
0x2117   :  { %7661 = vmatpush3.msra.mxu0 %v8882_v29 }
0x2118   :  { %7676 = vmatprep.subr.mxu0 %v8319_v1 }
0x21d0   :  { %v3200_v34 = vpop.f32.mrf.mxu0 }
0x21d1   :  { %v3201_v27 = vadd.f32 %v8938_v56, %v3200_v34 }
0x21d2   :  { %v7642_v35 = vpop.f32.mrf.mxu0 }
0x21d3   :  { %v3204_v15 = vsub.f32 0.0, %v3201_v27 }
0x21d5   :  { %v3205_v33 = vmul.f32 1.442695, %v3204_v15 }
0x21d7   :  { %8193 = vpow2.f32 %v3205_v33 }
0x21e4   :  { %v8194_v37 = vpop.eup %8193 }
0x21e5   :  { %v3207_v38 = vadd.f32 1.0, %v8194_v37 }
0x21e7   :  { %8195 = vrcp.f32 %v3207_v38 }
0x21f4   :  { %v8196_v39 = vpop.eup %8195 }
0x21f5   :  { %v3209_v41 = vmul.f32 %v8196_v39, %v3201_v27 }
0x21f7   :  { %7652 = vmatmul.mubr.msk.f32.vlgmr.msra.gmra.mxu1 %vm130_vm1, %v3209_v41 }
0x21f8   :  { %7666 = vmatpush3.msra.mxu1 %v8891_v46  ;;  %7673 = vmatprep.mubr.msk.f32.mxu1 %vm8320_vm0, %v8319_v1 }
0x21f9   :  { %7667 = vmatprep.subr.mxu1 %v8319_v1 }
0x21fa   :  { %7668 = vmatpush3.msra.mxu1 %v8900_v30 }
0x21fb   :  { %7669 = vmatprep.subr.mxu1 %v8319_v1 }
0x21fc   :  { %7670 = vmatpush3.msra.mxu1 %v8907_v47 }
0x21fd   :  { %7671 = vmatprep.subr.mxu1 %v8319_v1 }
0x21fe   :  { %7672 = vmatpush3.msra.mxu1 %v8914_v24 }
0x21ff   :  { %7687 = vmatprep.subr.mxu1 %v8319_v1 }
0x22b7   :  { %v3279_v45 = vpop.f32.mrf.mxu1 }
0x22b8   :  { %v3280_v44 = vadd.f32 %v8955_v6, %v3279_v45 }
0x22b9   :  { %v7653_v49 = vpop.f32.mrf.mxu1 }
0x22ba   :  { %v6689_v50 = vclamps-f32 %v3280_v44, 10.0 }
0x22bc   :  { %v3288_v53 = vadd.f32 %v6689_v50, %v3287_v52 }
0x22be   :  { %v3289_v54 = vmul.f32 0.0125, %v3288_v53 }
0x22c0   :  { %v9102_v55 = vadd.f32 %v3289_v54, %v8988_v36 }
0x22c2   :  { %7663 = vmatmul.mubr.msk.f32.vlgmr.msra.gmra.mxu0 %vm130_vm1, %v9102_v55 }
0x22c3   :  { %7677 = vmatpush3.msra.mxu0 %v8831_v16  ;;  %7684 = vmatprep.mubr.msk.f32.mxu0 %vm8320_vm0, %v8319_v1 }
0x22c4   :  { %7678 = vmatprep.subr.mxu0 %v8319_v1 }
0x22c5   :  { %7679 = vmatpush3.msra.mxu0 %v8840_v63 }
0x22c6   :  { %7680 = vmatprep.subr.mxu0 %v8319_v1 }
0x22c7   :  { %7681 = vmatpush3.msra.mxu0 %v8875_v28 }
0x22c8   :  { %7682 = vmatprep.subr.mxu0 %v8319_v1 }
0x22c9   :  { %7683 = vmatpush3.msra.mxu0 %v8882_v29 }
0x22ca   :  { %7698 = vmatprep.subr.mxu0 %v8319_v1 }
0x2382   :  { %v3360_v36 = vpop.f32.mrf.mxu0 }
0x2383   :  { %v3361_v51 = vadd.f32 %v8938_v56, %v3360_v36 }
0x2384   :  { %v7664_v40 = vpop.f32.mrf.mxu0 }
0x2385   :  { %v3364_v57 = vsub.f32 0.0, %v3361_v51 }
0x2387   :  { %v3365_v58 = vmul.f32 1.442695, %v3364_v57 }
0x2389   :  { %8197 = vpow2.f32 %v3365_v58 }
0x2396   :  { %v8198_v60 = vpop.eup %8197 }
0x2397   :  { %v3367_v5 = vadd.f32 1.0, %v8198_v60 }
0x2399   :  { %8199 = vrcp.f32 %v3367_v5 }
0x23a6   :  { %v8200_v61 = vpop.eup %8199 }
0x23a7   :  { %v3369_v62 = vmul.f32 %v8200_v61, %v3361_v51 }
0x23a9   :  { %7674 = vmatmul.mubr.msk.f32.vlgmr.msra.gmra.mxu1 %vm130_vm1, %v3369_v62 }
0x23aa   :  { %7688 = vmatpush3.msra.mxu1 %v8891_v46  ;;  %7695 = vmatprep.mubr.msk.f32.mxu1 %vm8320_vm0, %v8319_v1 }
0x23ab   :  { %7689 = vmatprep.subr.mxu1 %v8319_v1 }
0x23ac   :  { %7690 = vmatpush3.msra.mxu1 %v8900_v30 }
0x23ad   :  { %7691 = vmatprep.subr.mxu1 %v8319_v1 }
0x23ae   :  { %7692 = vmatpush3.msra.mxu1 %v8907_v47 }
0x23af   :  { %7693 = vmatprep.subr.mxu1 %v8319_v1 }
0x23b0   :  { %7694 = vmatpush3.msra.mxu1 %v8914_v24 }
0x23b1   :  { %7709 = vmatprep.subr.mxu1 %v8319_v1 }
0x2469   :  { %v3439_v48 = vpop.f32.mrf.mxu1 }
0x246a   :  { %v3440_v59 = vadd.f32 %v8955_v6, %v3439_v48 }
0x246b   :  { %v7675_v0 = vpop.f32.mrf.mxu1 }
0x246c   :  { %v9129_v2 = vclamps-f32 %v3440_v59, 10.0 }
0x246e   :  { %v3445_v3 = vmul.f32 0.033333335, %v9129_v2  ;;  %v3601_v25 = vmul.f32 0.33333334, %v9129_v2 }
0x2470   :  { %v3446_v4 = vadd.f32 %v3445_v3, %v9102_v55 }
0x2472   :  { %7685 = vmatmul.mubr.msk.f32.vlgmr.msra.gmra.mxu0 %vm130_vm1, %v3446_v4 }
0x2473   :  { %7699 = vmatpush3.msra.mxu0 %v8831_v16  ;;  %7706 = vmatprep.mubr.msk.f32.mxu0 %vm8320_vm0, %v8319_v1 }
0x2474   :  { %7700 = vmatprep.subr.mxu0 %v8319_v1 }
0x2475   :  { %7701 = vmatpush3.msra.mxu0 %v8840_v63 }
0x2476   :  { %7702 = vmatprep.subr.mxu0 %v8319_v1 }
0x2477   :  { %7703 = vmatpush3.msra.mxu0 %v8875_v28 }
0x2478   :  { %7704 = vmatprep.subr.mxu0 %v8319_v1 }
0x2479   :  { %7705 = vmatpush3.msra.mxu0 %v8882_v29 }
0x247a   :  { %7720 = vmatprep.subr.mxu0 %v8319_v1 }
0x2532   :  { %v3516_v7 = vpop.f32.mrf.mxu0 }
0x2533   :  { %v3517_v8 = vadd.f32 %v8938_v56, %v3516_v7 }
0x2534   :  { %v7686_v9 = vpop.f32.mrf.mxu0 }
0x2535   :  { %v3520_v10 = vsub.f32 0.0, %v3517_v8 }
0x2537   :  { %v3521_v11 = vmul.f32 1.442695, %v3520_v10 }
0x2539   :  { %8201 = vpow2.f32 %v3521_v11 }
0x2546   :  { %v8202_v12 = vpop.eup %8201 }
0x2547   :  { %v3523_v14 = vadd.f32 1.0, %v8202_v12 }
0x2549   :  { %8203 = vrcp.f32 %v3523_v14 }
0x2556   :  { %v8204_v13 = vpop.eup %8203 }
0x2557   :  { %v3525_v17 = vmul.f32 %v8204_v13, %v3517_v8 }
0x2559   :  { %7696 = vmatmul.mubr.msk.f32.vlgmr.msra.gmra.mxu1 %vm130_vm1, %v3525_v17 }
0x255a   :  { %7710 = vmatpush3.msra.mxu1 %v8891_v46  ;;  %7717 = vmatprep.mubr.msk.f32.mxu1 %vm8320_vm0, %v8319_v1 }
0x255b   :  { %7711 = vmatprep.subr.mxu1 %v8319_v1 }
0x255c   :  { %7712 = vmatpush3.msra.mxu1 %v8900_v30 }
0x255d   :  { %7713 = vmatprep.subr.mxu1 %v8319_v1 }
0x255e   :  { %7714 = vmatpush3.msra.mxu1 %v8907_v47 }
0x255f   :  { %7715 = vmatprep.subr.mxu1 %v8319_v1 }
0x2560   :  { %7716 = vmatpush3.msra.mxu1 %v8914_v24 }
0x2561   :  { %7731 = vmatprep.subr.mxu1 %v8319_v1 }
0x2619   :  { %v3595_v18 = vpop.f32.mrf.mxu1 }
0x261a   :  { %v3596_v19 = vadd.f32 %v8955_v6, %v3595_v18 }
0x261b   :  { %v7697_v22 = vpop.f32.mrf.mxu1 }
0x261c   :  { %v9157_v23 = vclamps-f32 %v3596_v19, 10.0 }
0x261e   :  { %v3602_v31 = vsub.f32 %v9157_v23, %v3601_v25  ;;  %v3759_v45 = vsub.f32 %v9129_v2, %v9157_v23 }
0x2620   :  { %v3603_v32 = vmul.f32 0.1, %v3602_v31 }
0x2622   :  { %v3604_v20 = vadd.f32 %v3603_v32, %v9102_v55 }
0x2624   :  { %7707 = vmatmul.mubr.msk.f32.vlgmr.msra.gmra.mxu0 %vm130_vm1, %v3604_v20 }
0x2625   :  { %7721 = vmatpush3.msra.mxu0 %v8831_v16  ;;  %7728 = vmatprep.mubr.msk.f32.mxu0 %vm8320_vm0, %v8319_v1 }
0x2626   :  { %7722 = vmatprep.subr.mxu0 %v8319_v1 }
0x2627   :  { %7723 = vmatpush3.msra.mxu0 %v8840_v63 }
0x2628   :  { %7724 = vmatprep.subr.mxu0 %v8319_v1 }
0x2629   :  { %7725 = vmatpush3.msra.mxu0 %v8875_v28 }
0x262a   :  { %7726 = vmatprep.subr.mxu0 %v8319_v1 }
0x262b   :  { %7727 = vmatpush3.msra.mxu0 %v8882_v29 }
0x262c   :  { %7742 = vmatprep.subr.mxu0 %v8319_v1 }
0x26e4   :  { %v3674_v21 = vpop.f32.mrf.mxu0 }
0x26e5   :  { %v3675_v26 = vadd.f32 %v8938_v56, %v3674_v21 }
0x26e6   :  { %v7708_v34 = vpop.f32.mrf.mxu0 }
0x26e7   :  { %v3678_v27 = vsub.f32 0.0, %v3675_v26 }
0x26e9   :  { %v3679_v35 = vmul.f32 1.442695, %v3678_v27 }
0x26eb   :  { %8205 = vpow2.f32 %v3679_v35 }
0x26f8   :  { %v8206_v15 = vpop.eup %8205 }
0x26f9   :  { %v3681_v33 = vadd.f32 1.0, %v8206_v15 }
0x26fb   :  { %8207 = vrcp.f32 %v3681_v33 }
0x2708   :  { %v8208_v37 = vpop.eup %8207 }
0x2709   :  { %v3683_v38 = vmul.f32 %v8208_v37, %v3675_v26 }
0x270b   :  { %7718 = vmatmul.mubr.msk.f32.vlgmr.msra.gmra.mxu1 %vm130_vm1, %v3683_v38 }
0x270c   :  { %7732 = vmatpush3.msra.mxu1 %v8891_v46  ;;  %7739 = vmatprep.mubr.msk.f32.mxu1 %vm8320_vm0, %v8319_v1 }
0x270d   :  { %7733 = vmatprep.subr.mxu1 %v8319_v1 }
0x270e   :  { %7734 = vmatpush3.msra.mxu1 %v8900_v30 }
0x270f   :  { %7735 = vmatprep.subr.mxu1 %v8319_v1 }
0x2710   :  { %7736 = vmatpush3.msra.mxu1 %v8907_v47 }
0x2711   :  { %7737 = vmatprep.subr.mxu1 %v8319_v1 }
0x2712   :  { %7738 = vmatpush3.msra.mxu1 %v8914_v24 }
0x2713   :  { %7753 = vmatprep.subr.mxu1 %v8319_v1 }
0x27cb   :  { %v3753_v39 = vpop.f32.mrf.mxu1 }
0x27cc   :  { %v3754_v41 = vadd.f32 %v8955_v6, %v3753_v39 }
0x27cd   :  { %v7719_v42 = vpop.f32.mrf.mxu1 }
0x27ce   :  { %v6698_v43 = vclamps-f32 %v3754_v41, 10.0 }
0x27d0   :  { %v3760_v44 = vadd.f32 %v6698_v43, %v3759_v45  ;;  %v3917_v5 = vadd.f32 %v6698_v43, %v9157_v23  ;;  %v9280_v45 = vld [vmem:[%s9739_s1 + $0xa0] sm:$0xff] }
0x27d2   :  { %v3761_v49 = vmul.f32 0.1, %v3760_v44  ;;  %v3918_v61 = vmul.f32 3.0, %v3917_v5  ;;  %v9289_v44 = vld [vmem:[%s9739_s1 + $0x98] sm:$0xff] }
0x27d4   :  { %v3762_v50 = vadd.f32 %v3761_v49, %v9102_v55  ;;  %v3919_v3 = vadd.f32 %v9129_v2, %v3918_v61 }
0x27d6   :  { %7729 = vmatmul.mubr.msk.f32.vlgmr.msra.gmra.mxu0 %vm130_vm1, %v3762_v50 }
0x27d7   :  { %7743 = vmatpush3.msra.mxu0 %v8831_v16  ;;  %7750 = vmatprep.mubr.msk.f32.mxu0 %vm8320_vm0, %v8319_v1 }
0x27d8   :  { %7744 = vmatprep.subr.mxu0 %v8319_v1 }
0x27d9   :  { %7745 = vmatpush3.msra.mxu0 %v8840_v63 }
0x27da   :  { %7746 = vmatprep.subr.mxu0 %v8319_v1 }
0x27db   :  { %7747 = vmatpush3.msra.mxu0 %v8875_v28 }
0x27dc   :  { %7748 = vmatprep.subr.mxu0 %v8319_v1 }
0x27dd   :  { %7749 = vmatpush3.msra.mxu0 %v8882_v29 }
0x27de   :  { %7764 = vmatprep.subr.mxu0 %v8319_v1 }
0x2896   :  { %v3832_v52 = vpop.f32.mrf.mxu0 }
0x2897   :  { %v3833_v53 = vadd.f32 %v8938_v56, %v3832_v52 }
0x2898   :  { %v7730_v54 = vpop.f32.mrf.mxu0 }
0x2899   :  { %v3836_v36 = vsub.f32 0.0, %v3833_v53 }
0x289b   :  { %v3837_v51 = vmul.f32 1.442695, %v3836_v36 }
0x289d   :  { %8209 = vpow2.f32 %v3837_v51 }
0x28aa   :  { %v8210_v40 = vpop.eup %8209 }
0x28ab   :  { %v3839_v57 = vadd.f32 1.0, %v8210_v40 }
0x28ad   :  { %8211 = vrcp.f32 %v3839_v57 }
0x28ba   :  { %v8212_v58 = vpop.eup %8211 }
0x28bb   :  { %v3841_v60 = vmul.f32 %v8212_v58, %v3833_v53 }
0x28bd   :  { %7740 = vmatmul.mubr.msk.f32.vlgmr.msra.gmra.mxu1 %vm130_vm1, %v3841_v60 }
0x28be   :  { %7754 = vmatpush3.msra.mxu1 %v8891_v46  ;;  %7761 = vmatprep.mubr.msk.f32.mxu1 %vm8320_vm0, %v8319_v1 }
0x28bf   :  { %7755 = vmatprep.subr.mxu1 %v8319_v1 }
0x28c0   :  { %7756 = vmatpush3.msra.mxu1 %v8900_v30 }
0x28c1   :  { %7757 = vmatprep.subr.mxu1 %v8319_v1 }
0x28c2   :  { %7758 = vmatpush3.msra.mxu1 %v8907_v47 }
0x28c3   :  { %7759 = vmatprep.subr.mxu1 %v8319_v1 }
0x28c4   :  { %7760 = vmatpush3.msra.mxu1 %v8914_v24 }
0x28c5   :  { %7775 = vmatprep.subr.mxu1 %v8319_v1 }
0x297d   :  { %v3911_v62 = vpop.f32.mrf.mxu1 }
0x297e   :  { %v3912_v48 = vadd.f32 %v8955_v6, %v3911_v62 }
0x297f   :  { %v7741_v59 = vpop.f32.mrf.mxu1 }
0x2980   :  { %v6701_v0 = vclamps-f32 %v3912_v48, 10.0 }
0x2982   :  { %v3920_v4 = vadd.f32 %v6701_v0, %v3919_v3 }
0x2984   :  { %v3921_v7 = vmul.f32 0.0125, %v3920_v4 }
0x2986   :  { %v9216_v8 = vadd.f32 %v3921_v7, %v9102_v55 }
0x2988   :  { %7751 = vmatmul.mubr.msk.f32.vlgmr.msra.gmra.mxu0 %vm130_vm1, %v9216_v8 }
0x2989   :  { %7765 = vmatpush3.msra.mxu0 %v8831_v16  ;;  %7772 = vmatprep.mubr.msk.f32.mxu0 %vm8320_vm0, %v8319_v1 }
0x298a   :  { %7766 = vmatprep.subr.mxu0 %v8319_v1 }
0x298b   :  { %7767 = vmatpush3.msra.mxu0 %v8840_v63 }
0x298c   :  { %7768 = vmatprep.subr.mxu0 %v8319_v1 }
0x298d   :  { %7769 = vmatpush3.msra.mxu0 %v8875_v28 }
0x298e   :  { %7770 = vmatprep.subr.mxu0 %v8319_v1 }
0x298f   :  { %7771 = vmatpush3.msra.mxu0 %v8882_v29 }
0x2990   :  { %7786 = vmatprep.subr.mxu0 %v8319_v1 }
0x2a48   :  { %v3992_v55 = vpop.f32.mrf.mxu0 }
0x2a49   :  { %v3993_v2 = vadd.f32 %v8938_v56, %v3992_v55 }
0x2a4a   :  { %v7752_v9 = vpop.f32.mrf.mxu0 }
0x2a4b   :  { %v3996_v10 = vsub.f32 0.0, %v3993_v2  ;;  %v9339_v9 = vld [vmem:[%s9739_s1 + $0xc8] sm:$0xff] }
0x2a4d   :  { %v3997_v11 = vmul.f32 1.442695, %v3996_v10  ;;  %v9355_v10 = vld [vmem:[%s9739_s1 + $0xb8] sm:$0xff] }
0x2a4f   :  { %8213 = vpow2.f32 %v3997_v11  ;;  %v9362_v11 = vld [vmem:[%s9739_s1 + $0xb0] sm:$0xff] }
0x2a5c   :  { %v8214_v12 = vpop.eup %8213 }
0x2a5d   :  { %v3999_v14 = vadd.f32 1.0, %v8214_v12 }
0x2a5f   :  { %8215 = vrcp.f32 %v3999_v14 }
0x2a6c   :  { %v8216_v13 = vpop.eup %8215 }
0x2a6d   :  { %v4001_v17 = vmul.f32 %v8216_v13, %v3993_v2 }
0x2a6f   :  { %7762 = vmatmul.mubr.msk.f32.vlgmr.msra.gmra.mxu1 %vm130_vm1, %v4001_v17 }
0x2a70   :  { %7776 = vmatpush3.msra.mxu1 %v8891_v46  ;;  %7783 = vmatprep.mubr.msk.f32.mxu1 %vm8320_vm0, %v8319_v1 }
0x2a71   :  { %7777 = vmatprep.subr.mxu1 %v8319_v1 }
0x2a72   :  { %7778 = vmatpush3.msra.mxu1 %v8900_v30 }
0x2a73   :  { %7779 = vmatprep.subr.mxu1 %v8319_v1 }
0x2a74   :  { %7780 = vmatpush3.msra.mxu1 %v8907_v47 }
0x2a75   :  { %7781 = vmatprep.subr.mxu1 %v8319_v1 }
0x2a76   :  { %7782 = vmatpush3.msra.mxu1 %v8914_v24 }
0x2a77   :  { %7797 = vmatprep.subr.mxu1 %v8319_v1 }
0x2b2f   :  { %v4071_v18 = vpop.f32.mrf.mxu1 }
0x2b30   :  { %v4072_v19 = vadd.f32 %v8955_v6, %v4071_v18 }
0x2b31   :  { %v7763_v22 = vpop.f32.mrf.mxu1 }
0x2b32   :  { %v9243_v23 = vclamps-f32 %v4072_v19, 10.0 }
0x2b34   :  { %v4077_v25 = vmul.f32 0.033333335, %v9243_v23  ;;  %v4233_v39 = vmul.f32 0.33333334, %v9243_v23 }
0x2b36   :  { %v4078_v31 = vadd.f32 %v4077_v25, %v9216_v8 }
0x2b38   :  { %7773 = vmatmul.mubr.msk.f32.vlgmr.msra.gmra.mxu0 %vm130_vm1, %v4078_v31 }
0x2b39   :  { %7787 = vmatpush3.msra.mxu0 %v8831_v16  ;;  %7794 = vmatprep.mubr.msk.f32.mxu0 %vm8320_vm0, %v8319_v1 }
0x2b3a   :  { %7788 = vmatprep.subr.mxu0 %v8319_v1 }
0x2b3b   :  { %7789 = vmatpush3.msra.mxu0 %v8840_v63 }
0x2b3c   :  { %7790 = vmatprep.subr.mxu0 %v8319_v1 }
0x2b3d   :  { %7791 = vmatpush3.msra.mxu0 %v8875_v28 }
0x2b3e   :  { %7792 = vmatprep.subr.mxu0 %v8319_v1 }
0x2b3f   :  { %7793 = vmatpush3.msra.mxu0 %v8882_v29 }
0x2b40   :  { %7808 = vmatprep.subr.mxu0 %v8319_v1 }
0x2bf8   :  { %v4148_v32 = vpop.f32.mrf.mxu0 }
0x2bf9   :  { %v4149_v16 = vadd.f32 %v8938_v56, %v4148_v32 }
0x2bfa   :  { %v7774_v20 = vpop.f32.mrf.mxu0 }
0x2bfb   :  { %v4152_v21 = vsub.f32 0.0, %v4149_v16 }
0x2bfd   :  { %v4153_v26 = vmul.f32 1.442695, %v4152_v21 }
0x2bff   :  { %8217 = vpow2.f32 %v4153_v26 }
0x2c0c   :  { %v8218_v34 = vpop.eup %8217 }
0x2c0d   :  { %v4155_v27 = vadd.f32 1.0, %v8218_v34 }
0x2c0f   :  { %8219 = vrcp.f32 %v4155_v27 }
0x2c1c   :  { %v8220_v63 = vpop.eup %8219 }
0x2c1d   :  { %v4157_v35 = vmul.f32 %v8220_v63, %v4149_v16 }
0x2c1f   :  { %7784 = vmatmul.mubr.msk.f32.vlgmr.msra.gmra.mxu1 %vm130_vm1, %v4157_v35 }
0x2c20   :  { %7798 = vmatpush3.msra.mxu1 %v8891_v46  ;;  %7805 = vmatprep.mubr.msk.f32.mxu1 %vm8320_vm0, %v8319_v1 }
0x2c21   :  { %7799 = vmatprep.subr.mxu1 %v8319_v1 }
0x2c22   :  { %7800 = vmatpush3.msra.mxu1 %v8900_v30 }
0x2c23   :  { %7801 = vmatprep.subr.mxu1 %v8319_v1 }
0x2c24   :  { %7802 = vmatpush3.msra.mxu1 %v8907_v47 }
0x2c25   :  { %7803 = vmatprep.subr.mxu1 %v8319_v1 }
0x2c26   :  { %7804 = vmatpush3.msra.mxu1 %v8914_v24 }
0x2c27   :  { %7819 = vmatprep.subr.mxu1 %v8319_v1 }
0x2cdf   :  { %v4227_v15 = vpop.f32.mrf.mxu1 }
0x2ce0   :  { %v4228_v33 = vadd.f32 %v8955_v6, %v4227_v15  ;;  %v9404_v15 = vld [vmem:[%s9739_s1 + $0xd0] ss:$0 sm:$0xff] }
0x2ce1   :  { %v7785_v37 = vpop.f32.mrf.mxu1 }
0x2ce2   :  { %v9271_v38 = vclamps-f32 %v4228_v33, 10.0 }
0x2ce4   :  { %v4234_v41 = vsub.f32 %v9271_v38, %v4233_v39  ;;  %v4391_v60 = vsub.f32 %v9243_v23, %v9271_v38 }
0x2ce6   :  { %v4235_v42 = vmul.f32 0.1, %v4234_v41 }
0x2ce8   :  { %v4236_v43 = vadd.f32 %v4235_v42, %v9216_v8 }
0x2cea   :  { %7795 = vmatmul.mubr.msk.f32.vlgmr.msra.gmra.mxu0 %vm130_vm1, %v4236_v43 }
0x2ceb   :  { %7809 = vmatpush3.msra.mxu0 %v9280_v45  ;;  %7816 = vmatprep.mubr.msk.f32.mxu0 %vm8320_vm0, %v8319_v1 }
0x2cec   :  { %7810 = vmatprep.subr.mxu0 %v8319_v1 }
0x2ced   :  { %7811 = vmatpush3.msra.mxu0 %v9289_v44 }
0x2cee   :  { %7812 = vmatprep.subr.mxu0 %v8319_v1 }
0x2cef   :  { %7813 = vmatpush3.msra.mxu0 %v8875_v28 }
0x2cf0   :  { %7814 = vmatprep.subr.mxu0 %v8319_v1 }
0x2cf1   :  { %7815 = vmatpush3.msra.mxu0 %v8882_v29 }
0x2cf2   :  { %7830 = vmatprep.subr.mxu0 %v8319_v1 }
0x2daa   :  { %v4306_v49 = vpop.f32.mrf.mxu0 }
0x2dab   :  { %v4307_v50 = vadd.f32 %v8938_v56, %v4306_v49 }
0x2dac   :  { %v7796_v52 = vpop.f32.mrf.mxu0 }
0x2dad   :  { %v4310_v53 = vsub.f32 0.0, %v4307_v50 }
0x2daf   :  { %v4311_v54 = vmul.f32 1.442695, %v4310_v53 }
0x2db1   :  { %8221 = vpow2.f32 %v4311_v54 }
0x2dbe   :  { %v8222_v36 = vpop.eup %8221 }
0x2dbf   :  { %v4313_v51 = vadd.f32 1.0, %v8222_v36 }
0x2dc1   :  { %8223 = vrcp.f32 %v4313_v51 }
0x2dce   :  { %v8224_v40 = vpop.eup %8223 }
0x2dcf   :  { %v4315_v57 = vmul.f32 %v8224_v40, %v4307_v50 }
0x2dd1   :  { %7806 = vmatmul.mubr.msk.f32.vlgmr.msra.gmra.mxu1 %vm130_vm1, %v4315_v57 }
0x2dd2   :  { %7820 = vmatpush3.msra.mxu1 %v8891_v46  ;;  %7827 = vmatprep.mubr.msk.f32.mxu1 %vm8320_vm0, %v8319_v1 }
0x2dd3   :  { %7821 = vmatprep.subr.mxu1 %v8319_v1 }
0x2dd4   :  { %7822 = vmatpush3.msra.mxu1 %v8900_v30 }
0x2dd5   :  { %7823 = vmatprep.subr.mxu1 %v8319_v1 }
0x2dd6   :  { %7824 = vmatpush3.msra.mxu1 %v8907_v47  ;;  %v9323_v47 = vld [vmem:[%s9739_s1 + $0x90] sm:$0xff] }
0x2dd7   :  { %7825 = vmatprep.subr.mxu1 %v8319_v1 }
0x2dd8   :  { %7826 = vmatpush3.msra.mxu1 %v8914_v24  ;;  %v9330_v24 = vld [vmem:[%s9739_s1 + $0x88] sm:$0xff] }
0x2dd9   :  { %7841 = vmatprep.subr.mxu1 %v8319_v1 }
0x2e91   :  { %v4385_v28 = vpop.f32.mrf.mxu1 }
0x2e92   :  { %v4386_v29 = vadd.f32 %v8955_v6, %v4385_v28 }
0x2e93   :  { %v7807_v46 = vpop.f32.mrf.mxu1 }
0x2e94   :  { %v6710_v58 = vclamps-f32 %v4386_v29, 10.0 }
0x2e96   :  { %v4392_v5 = vadd.f32 %v6710_v58, %v4391_v60  ;;  %v4549_v12 = vadd.f32 %v6710_v58, %v9271_v38 }
0x2e98   :  { %v4393_v30 = vmul.f32 0.1, %v4392_v5  ;;  %v4550_v14 = vmul.f32 3.0, %v4549_v12 }
0x2e9a   :  { %v4394_v61 = vadd.f32 %v4393_v30, %v9216_v8  ;;  %v4551_v22 = vadd.f32 %v9243_v23, %v4550_v14 }
0x2e9c   :  { %7817 = vmatmul.mubr.msk.f32.vlgmr.msra.gmra.mxu0 %vm130_vm1, %v4394_v61 }
0x2e9d   :  { %7831 = vmatpush3.msra.mxu0 %v9280_v45  ;;  %7838 = vmatprep.mubr.msk.f32.mxu0 %vm8320_vm0, %v8319_v1 }
0x2e9e   :  { %7832 = vmatprep.subr.mxu0 %v8319_v1 }
0x2e9f   :  { %7833 = vmatpush3.msra.mxu0 %v9289_v44 }
0x2ea0   :  { %7834 = vmatprep.subr.mxu0 %v8319_v1 }
0x2ea1   :  { %7835 = vmatpush3.msra.mxu0 %v9323_v47 }
0x2ea2   :  { %7836 = vmatprep.subr.mxu0 %v8319_v1 }
0x2ea3   :  { %7837 = vmatpush3.msra.mxu0 %v9330_v24 }
0x2ea4   :  { %7852 = vmatprep.subr.mxu0 %v8319_v1 }
0x2f5c   :  { %v4464_v62 = vpop.f32.mrf.mxu0 }
0x2f5d   :  { %v4465_v48 = vadd.f32 %v8938_v56, %v4464_v62  ;;  %v9348_v56 = vld [vmem:[%s9739_s1 + $0xc0] sm:$0xff] }
0x2f5e   :  { %v7818_v59 = vpop.f32.mrf.mxu0 }
0x2f5f   :  { %v4468_v0 = vsub.f32 0.0, %v4465_v48 }
0x2f61   :  { %v4469_v3 = vmul.f32 1.442695, %v4468_v0 }
0x2f63   :  { %8225 = vpow2.f32 %v4469_v3 }
0x2f70   :  { %v8226_v4 = vpop.eup %8225 }
0x2f71   :  { %v4471_v7 = vadd.f32 1.0, %v8226_v4 }
0x2f73   :  { %8227 = vrcp.f32 %v4471_v7 }
0x2f80   :  { %v8228_v55 = vpop.eup %8227 }
0x2f81   :  { %v4473_v2 = vmul.f32 %v8228_v55, %v4465_v48 }
0x2f83   :  { %7828 = vmatmul.mubr.msk.f32.vlgmr.msra.gmra.mxu1 %vm130_vm1, %v4473_v2 }
0x2f84   :  { %7842 = vmatpush3.msra.mxu1 %v9339_v9  ;;  %7849 = vmatprep.mubr.msk.f32.mxu1 %vm8320_vm0, %v8319_v1 }
0x2f85   :  { %7843 = vmatprep.subr.mxu1 %v8319_v1 }
0x2f86   :  { %7844 = vmatpush3.msra.mxu1 %v9348_v56 }
0x2f87   :  { %7845 = vmatprep.subr.mxu1 %v8319_v1 }
0x2f88   :  { %7846 = vmatpush3.msra.mxu1 %v9355_v10 }
0x2f89   :  { %7847 = vmatprep.subr.mxu1 %v8319_v1 }
0x2f8a   :  { %7848 = vmatpush3.msra.mxu1 %v9362_v11 }
0x2f8b   :  { %7863 = vmatprep.subr.mxu1 %v8319_v1 }
0x3043   :  { %v4543_v13 = vpop.f32.mrf.mxu1 }
0x3044   :  { %v4544_v17 = vadd.f32 %v8955_v6, %v4543_v13 }
0x3045   :  { %v7829_v18 = vpop.f32.mrf.mxu1 }
0x3046   :  { %v6713_v19 = vclamps-f32 %v4544_v17, 10.0 }
0x3048   :  { %v4552_v25 = vadd.f32 %v6713_v19, %v4551_v22 }
0x304a   :  { %v4553_v31 = vmul.f32 0.0125, %v4552_v25 }
0x304c   :  { %v9370_v32 = vadd.f32 %v4553_v31, %v9216_v8  ;;  %v9387_v8 = vld [vmem:[%s9739_s1 + $0xa8] ss:$0 sm:$0xff] }
0x304e   :  { %7839 = vmatmul.mubr.msk.f32.vlgmr.msra.gmra.mxu0 %vm130_vm1, %v9370_v32 }
0x304f   :  { %7853 = vmatpush3.msra.mxu0 %v9280_v45  ;;  %7860 = vmatprep.mubr.msk.f32.mxu0 %vm8320_vm0, %v8319_v1 }
0x3050   :  { %7854 = vmatprep.subr.mxu0 %v8319_v1 }
0x3051   :  { %7855 = vmatpush3.msra.mxu0 %v9289_v44 }
0x3052   :  { %7856 = vmatprep.subr.mxu0 %v8319_v1 }
0x3053   :  { %7857 = vmatpush3.msra.mxu0 %v9323_v47 }
0x3054   :  { %7858 = vmatprep.subr.mxu0 %v8319_v1 }
0x3055   :  { %7859 = vmatpush3.msra.mxu0 %v9330_v24 }
0x3056   :  { %7874 = vmatprep.subr.mxu0 %v8319_v1 }
0x310e   :  { %v4624_v6 = vpop.f32.mrf.mxu0 }
0x310f   :  { %v4625_v23 = vadd.f32 %v9387_v8, %v4624_v6 }
0x3110   :  { %v7840_v16 = vpop.f32.mrf.mxu0 }
0x3111   :  { %v4628_v20 = vsub.f32 0.0, %v4625_v23 }
0x3113   :  { %v4629_v21 = vmul.f32 1.442695, %v4628_v20 }
0x3115   :  { %8229 = vpow2.f32 %v4629_v21 }
0x3122   :  { %v8230_v26 = vpop.eup %8229 }
0x3123   :  { %v4631_v34 = vadd.f32 1.0, %v8230_v26 }
0x3125   :  { %8231 = vrcp.f32 %v4631_v34 }
0x3132   :  { %v8232_v27 = vpop.eup %8231 }
0x3133   :  { %v4633_v63 = vmul.f32 %v8232_v27, %v4625_v23 }
0x3135   :  { %7850 = vmatmul.mubr.msk.f32.vlgmr.msra.gmra.mxu1 %vm130_vm1, %v4633_v63 }
0x3136   :  { %7864 = vmatpush3.msra.mxu1 %v9339_v9  ;;  %7871 = vmatprep.mubr.msk.f32.mxu1 %vm8320_vm0, %v8319_v1 }
0x3137   :  { %7865 = vmatprep.subr.mxu1 %v8319_v1 }
0x3138   :  { %7866 = vmatpush3.msra.mxu1 %v9348_v56 }
0x3139   :  { %7867 = vmatprep.subr.mxu1 %v8319_v1 }
0x313a   :  { %7868 = vmatpush3.msra.mxu1 %v9355_v10 }
0x313b   :  { %7869 = vmatprep.subr.mxu1 %v8319_v1 }
0x313c   :  { %7870 = vmatpush3.msra.mxu1 %v9362_v11 }
0x313d   :  { %7885 = vmatprep.subr.mxu1 %v8319_v1 }
0x31f5   :  { %v4703_v35 = vpop.f32.mrf.mxu1 }
0x31f6   :  { %v4704_v33 = vadd.f32 %v9404_v15, %v4703_v35 }
0x31f7   :  { %v7851_v37 = vpop.f32.mrf.mxu1 }
0x31f8   :  { %v9407_v38 = vclamps-f32 %v4704_v33, 10.0 }
0x31fa   :  { %v4709_v39 = vmul.f32 0.033333335, %v9407_v38  ;;  %v4865_v46 = vmul.f32 0.33333334, %v9407_v38 }
0x31fc   :  { %v4710_v41 = vadd.f32 %v4709_v39, %v9370_v32 }
0x31fe   :  { %7861 = vmatmul.mubr.msk.f32.vlgmr.msra.gmra.mxu0 %vm130_vm1, %v4710_v41 }
0x31ff   :  { %7875 = vmatpush3.msra.mxu0 %v9280_v45  ;;  %7882 = vmatprep.mubr.msk.f32.mxu0 %vm8320_vm0, %v8319_v1 }
0x3200   :  { %7876 = vmatprep.subr.mxu0 %v8319_v1 }
0x3201   :  { %7877 = vmatpush3.msra.mxu0 %v9289_v44 }
0x3202   :  { %7878 = vmatprep.subr.mxu0 %v8319_v1 }
0x3203   :  { %7879 = vmatpush3.msra.mxu0 %v9323_v47 }
0x3204   :  { %7880 = vmatprep.subr.mxu0 %v8319_v1 }
0x3205   :  { %7881 = vmatpush3.msra.mxu0 %v9330_v24 }
0x3206   :  { %7896 = vmatprep.subr.mxu0 %v8319_v1 }
0x32be   :  { %v4780_v42 = vpop.f32.mrf.mxu0 }
0x32bf   :  { %v4781_v43 = vadd.f32 %v9387_v8, %v4780_v42 }
0x32c0   :  { %v7862_v49 = vpop.f32.mrf.mxu0 }
0x32c1   :  { %v4784_v50 = vsub.f32 0.0, %v4781_v43 }
0x32c3   :  { %v4785_v52 = vmul.f32 1.442695, %v4784_v50 }
0x32c5   :  { %8233 = vpow2.f32 %v4785_v52 }
0x32d2   :  { %v8234_v53 = vpop.eup %8233 }
0x32d3   :  { %v4787_v54 = vadd.f32 1.0, %v8234_v53 }
0x32d5   :  { %8235 = vrcp.f32 %v4787_v54 }
0x32e2   :  { %v8236_v36 = vpop.eup %8235 }
0x32e3   :  { %v4789_v51 = vmul.f32 %v8236_v36, %v4781_v43 }
0x32e5   :  { %7872 = vmatmul.mubr.msk.f32.vlgmr.msra.gmra.mxu1 %vm130_vm1, %v4789_v51 }
0x32e6   :  { %7886 = vmatpush3.msra.mxu1 %v9339_v9  ;;  %7893 = vmatprep.mubr.msk.f32.mxu1 %vm8320_vm0, %v8319_v1 }
0x32e7   :  { %7887 = vmatprep.subr.mxu1 %v8319_v1 }
0x32e8   :  { %7888 = vmatpush3.msra.mxu1 %v9348_v56 }
0x32e9   :  { %7889 = vmatprep.subr.mxu1 %v8319_v1 }
0x32ea   :  { %7890 = vmatpush3.msra.mxu1 %v9355_v10 }
0x32eb   :  { %7891 = vmatprep.subr.mxu1 %v8319_v1 }
0x32ec   :  { %7892 = vmatpush3.msra.mxu1 %v9362_v11 }
0x32ed   :  { %7907 = vmatprep.subr.mxu1 %v8319_v1 }
0x33a5   :  { %v4859_v40 = vpop.f32.mrf.mxu1 }
0x33a6   :  { %v4860_v57 = vadd.f32 %v9404_v15, %v4859_v40 }
0x33a7   :  { %v7873_v28 = vpop.f32.mrf.mxu1 }
0x33a8   :  { %v9435_v29 = vclamps-f32 %v4860_v57, 10.0 }
0x33aa   :  { %v4866_v58 = vsub.f32 %v9435_v29, %v4865_v46  ;;  %v5023_v13 = vsub.f32 %v9407_v38, %v9435_v29 }
0x33ac   :  { %v4867_v60 = vmul.f32 0.1, %v4866_v58 }
0x33ae   :  { %v4868_v5 = vadd.f32 %v4867_v60, %v9370_v32 }
0x33b0   :  { %7883 = vmatmul.mubr.msk.f32.vlgmr.msra.gmra.mxu0 %vm130_vm1, %v4868_v5 }
0x33b1   :  { %7897 = vmatpush3.msra.mxu0 %v9280_v45  ;;  %7904 = vmatprep.mubr.msk.f32.mxu0 %vm8320_vm0, %v8319_v1 }
0x33b2   :  { %7898 = vmatprep.subr.mxu0 %v8319_v1 }
0x33b3   :  { %7899 = vmatpush3.msra.mxu0 %v9289_v44 }
0x33b4   :  { %7900 = vmatprep.subr.mxu0 %v8319_v1 }
0x33b5   :  { %7901 = vmatpush3.msra.mxu0 %v9323_v47 }
0x33b6   :  { %7902 = vmatprep.subr.mxu0 %v8319_v1 }
0x33b7   :  { %7903 = vmatpush3.msra.mxu0 %v9330_v24 }
0x33b8   :  { %7918 = vmatprep.subr.mxu0 %v8319_v1 }
0x3470   :  { %v4938_v30 = vpop.f32.mrf.mxu0 }
0x3471   :  { %v4939_v61 = vadd.f32 %v9387_v8, %v4938_v30 }
0x3472   :  { %v7884_v62 = vpop.f32.mrf.mxu0 }
0x3473   :  { %v4942_v48 = vsub.f32 0.0, %v4939_v61 }
0x3475   :  { %v4943_v59 = vmul.f32 1.442695, %v4942_v48 }
0x3477   :  { %8237 = vpow2.f32 %v4943_v59 }
0x3484   :  { %v8238_v0 = vpop.eup %8237 }
0x3485   :  { %v4945_v3 = vadd.f32 1.0, %v8238_v0 }
0x3487   :  { %8239 = vrcp.f32 %v4945_v3 }
0x3494   :  { %v8240_v4 = vpop.eup %8239 }
0x3495   :  { %v4947_v7 = vmul.f32 %v8240_v4, %v4939_v61 }
0x3497   :  { %7894 = vmatmul.mubr.msk.f32.vlgmr.msra.gmra.mxu1 %vm130_vm1, %v4947_v7 }
0x3498   :  { %7908 = vmatpush3.msra.mxu1 %v9339_v9  ;;  %7915 = vmatprep.mubr.msk.f32.mxu1 %vm8320_vm0, %v8319_v1 }
0x3499   :  { %7909 = vmatprep.subr.mxu1 %v8319_v1 }
0x349a   :  { %7910 = vmatpush3.msra.mxu1 %v9348_v56 }
0x349b   :  { %7911 = vmatprep.subr.mxu1 %v8319_v1 }
0x349c   :  { %7912 = vmatpush3.msra.mxu1 %v9355_v10 }
0x349d   :  { %7913 = vmatprep.subr.mxu1 %v8319_v1 }
0x349e   :  { %7914 = vmatpush3.msra.mxu1 %v9362_v11 }
0x349f   :  { %7929 = vmatprep.subr.mxu1 %v8319_v1 }
0x3557   :  { %v5017_v55 = vpop.f32.mrf.mxu1 }
0x3558   :  { %v5018_v2 = vadd.f32 %v9404_v15, %v5017_v55 }
0x3559   :  { %v7895_v12 = vpop.f32.mrf.mxu1 }
0x355a   :  { %v6722_v14 = vclamps-f32 %v5018_v2, 10.0 }
0x355c   :  { %v5024_v17 = vadd.f32 %v6722_v14, %v5023_v13  ;;  %v5181_v34 = vadd.f32 %v6722_v14, %v9435_v29 }
0x355e   :  { %v5025_v18 = vmul.f32 0.1, %v5024_v17  ;;  %v5182_v27 = vmul.f32 3.0, %v5181_v34 }
0x3560   :  { %v5026_v19 = vadd.f32 %v5025_v18, %v9370_v32  ;;  %v5183_v39 = vadd.f32 %v9407_v38, %v5182_v27 }
0x3562   :  { %7905 = vmatmul.mubr.msk.f32.vlgmr.msra.gmra.mxu0 %vm130_vm1, %v5026_v19 }
0x3563   :  { %7919 = vmatpush3.msra.mxu0 %v9280_v45  ;;  %7926 = vmatprep.mubr.msk.f32.mxu0 %vm8320_vm0, %v8319_v1 }
0x3564   :  { %7920 = vmatprep.subr.mxu0 %v8319_v1 }
0x3565   :  { %7921 = vmatpush3.msra.mxu0 %v9289_v44 }
0x3566   :  { %7922 = vmatprep.subr.mxu0 %v8319_v1 }
0x3567   :  { %7923 = vmatpush3.msra.mxu0 %v9323_v47 }
0x3568   :  { %7924 = vmatprep.subr.mxu0 %v8319_v1 }
0x3569   :  { %7925 = vmatpush3.msra.mxu0 %v9330_v24 }
0x356a   :  { %7940 = vmatprep.subr.mxu0 %v8319_v1 }
0x3622   :  { %v5096_v22 = vpop.f32.mrf.mxu0 }
0x3623   :  { %v5097_v25 = vadd.f32 %v9387_v8, %v5096_v22 }
0x3624   :  { %v7906_v31 = vpop.f32.mrf.mxu0 }
0x3625   :  { %v5100_v6 = vsub.f32 0.0, %v5097_v25 }
0x3627   :  { %v5101_v23 = vmul.f32 1.442695, %v5100_v6 }
0x3629   :  { %8241 = vpow2.f32 %v5101_v23 }
0x3636   :  { %v8242_v16 = vpop.eup %8241 }
0x3637   :  { %v5103_v20 = vadd.f32 1.0, %v8242_v16 }
0x3639   :  { %8243 = vrcp.f32 %v5103_v20 }
0x3646   :  { %v8244_v21 = vpop.eup %8243 }
0x3647   :  { %v5105_v26 = vmul.f32 %v8244_v21, %v5097_v25 }
0x3649   :  { %7916 = vmatmul.mubr.msk.f32.vlgmr.msra.gmra.mxu1 %vm130_vm1, %v5105_v26 }
0x364a   :  { %7930 = vmatpush3.msra.mxu1 %v9339_v9  ;;  %7937 = vmatprep.mubr.msk.f32.mxu1 %vm8320_vm0, %v8319_v1 }
0x364b   :  { %7931 = vmatprep.subr.mxu1 %v8319_v1 }
0x364c   :  { %7932 = vmatpush3.msra.mxu1 %v9348_v56 }
0x364d   :  { %7933 = vmatprep.subr.mxu1 %v8319_v1 }
0x364e   :  { %7934 = vmatpush3.msra.mxu1 %v9355_v10 }
0x364f   :  { %7935 = vmatprep.subr.mxu1 %v8319_v1 }
0x3650   :  { %7936 = vmatpush3.msra.mxu1 %v9362_v11 }
0x3651   :  { %7951 = vmatprep.subr.mxu1 %v8319_v1 }
0x3709   :  { %v5175_v63 = vpop.f32.mrf.mxu1 }
0x370a   :  { %v5176_v35 = vadd.f32 %v9404_v15, %v5175_v63 }
0x370b   :  { %v7917_v33 = vpop.f32.mrf.mxu1 }
0x370c   :  { %v6725_v37 = vclamps-f32 %v5176_v35, 10.0 }
0x370e   :  { %v5184_v41 = vadd.f32 %v6725_v37, %v5183_v39 }
0x3710   :  { %v5185_v42 = vmul.f32 0.0125, %v5184_v41 }
0x3712   :  { %v9494_v43 = vadd.f32 %v5185_v42, %v9370_v32 }
0x3714   :  { %7927 = vmatmul.mubr.msk.f32.vlgmr.msra.gmra.mxu0 %vm130_vm1, %v9494_v43 }
0x3715   :  { %7941 = vmatpush3.msra.mxu0 %v9280_v45  ;;  %7948 = vmatprep.mubr.msk.f32.mxu0 %vm8320_vm0, %v8319_v1 }
0x3716   :  { %7942 = vmatprep.subr.mxu0 %v8319_v1 }
0x3717   :  { %7943 = vmatpush3.msra.mxu0 %v9289_v44 }
0x3718   :  { %7944 = vmatprep.subr.mxu0 %v8319_v1 }
0x3719   :  { %7945 = vmatpush3.msra.mxu0 %v9323_v47 }
0x371a   :  { %7946 = vmatprep.subr.mxu0 %v8319_v1 }
0x371b   :  { %7947 = vmatpush3.msra.mxu0 %v9330_v24 }
0x371c   :  { %7962 = vmatprep.subr.mxu0 %v8319_v1 }
0x37d4   :  { %v5256_v32 = vpop.f32.mrf.mxu0 }
0x37d5   :  { %v5257_v38 = vadd.f32 %v9387_v8, %v5256_v32 }
0x37d6   :  { %v7928_v49 = vpop.f32.mrf.mxu0 }
0x37d7   :  { %v5260_v50 = vsub.f32 0.0, %v5257_v38 }
0x37d9   :  { %v5261_v52 = vmul.f32 1.442695, %v5260_v50 }
0x37db   :  { %8245 = vpow2.f32 %v5261_v52 }
0x37e8   :  { %v8246_v53 = vpop.eup %8245 }
0x37e9   :  { %v5263_v54 = vadd.f32 1.0, %v8246_v53 }
0x37eb   :  { %8247 = vrcp.f32 %v5263_v54 }
0x37f8   :  { %v8248_v36 = vpop.eup %8247 }
0x37f9   :  { %v5265_v51 = vmul.f32 %v8248_v36, %v5257_v38 }
0x37fb   :  { %7938 = vmatmul.mubr.msk.f32.vlgmr.msra.gmra.mxu1 %vm130_vm1, %v5265_v51 }
0x37fc   :  { %7952 = vmatpush3.msra.mxu1 %v9339_v9  ;;  %7959 = vmatprep.mubr.msk.f32.mxu1 %vm8320_vm0, %v8319_v1 }
0x37fd   :  { %7953 = vmatprep.subr.mxu1 %v8319_v1 }
0x37fe   :  { %7954 = vmatpush3.msra.mxu1 %v9348_v56 }
0x37ff   :  { %7955 = vmatprep.subr.mxu1 %v8319_v1 }
0x3800   :  { %7956 = vmatpush3.msra.mxu1 %v9355_v10 }
0x3801   :  { %7957 = vmatprep.subr.mxu1 %v8319_v1 }
0x3802   :  { %7958 = vmatpush3.msra.mxu1 %v9362_v11 }
0x3803   :  { %7973 = vmatprep.subr.mxu1 %v8319_v1 }
0x38bb   :  { %v5335_v40 = vpop.f32.mrf.mxu1 }
0x38bc   :  { %v5336_v57 = vadd.f32 %v9404_v15, %v5335_v40 }
0x38bd   :  { %v7939_v28 = vpop.f32.mrf.mxu1 }
0x38be   :  { %v9521_v29 = vclamps-f32 %v5336_v57, 10.0 }
0x38c0   :  { %v5341_v46 = vmul.f32 0.033333335, %v9521_v29  ;;  %v5497_v12 = vmul.f32 0.33333334, %v9521_v29 }
0x38c2   :  { %v5342_v58 = vadd.f32 %v5341_v46, %v9494_v43 }
0x38c4   :  { %7949 = vmatmul.mubr.msk.f32.vlgmr.msra.gmra.mxu0 %vm130_vm1, %v5342_v58 }
0x38c5   :  { %7963 = vmatpush3.msra.mxu0 %v9280_v45  ;;  %7970 = vmatprep.mubr.msk.f32.mxu0 %vm8320_vm0, %v8319_v1 }
0x38c6   :  { %7964 = vmatprep.subr.mxu0 %v8319_v1 }
0x38c7   :  { %7965 = vmatpush3.msra.mxu0 %v9289_v44 }
0x38c8   :  { %7966 = vmatprep.subr.mxu0 %v8319_v1 }
0x38c9   :  { %7967 = vmatpush3.msra.mxu0 %v9323_v47 }
0x38ca   :  { %7968 = vmatprep.subr.mxu0 %v8319_v1 }
0x38cb   :  { %7969 = vmatpush3.msra.mxu0 %v9330_v24 }
0x38cc   :  { %7984 = vmatprep.subr.mxu0 %v8319_v1 }
0x3984   :  { %v5412_v60 = vpop.f32.mrf.mxu0 }
0x3985   :  { %v5413_v5 = vadd.f32 %v9387_v8, %v5412_v60 }
0x3986   :  { %v7950_v30 = vpop.f32.mrf.mxu0 }
0x3987   :  { %v5416_v61 = vsub.f32 0.0, %v5413_v5 }
0x3989   :  { %v5417_v62 = vmul.f32 1.442695, %v5416_v61 }
0x398b   :  { %8249 = vpow2.f32 %v5417_v62 }
0x3998   :  { %v8250_v48 = vpop.eup %8249 }
0x3999   :  { %v5419_v59 = vadd.f32 1.0, %v8250_v48 }
0x399b   :  { %8251 = vrcp.f32 %v5419_v59 }
0x39a8   :  { %v8252_v0 = vpop.eup %8251 }
0x39a9   :  { %v5421_v3 = vmul.f32 %v8252_v0, %v5413_v5 }
0x39ab   :  { %7960 = vmatmul.mubr.msk.f32.vlgmr.msra.gmra.mxu1 %vm130_vm1, %v5421_v3 }
0x39ac   :  { %7974 = vmatpush3.msra.mxu1 %v9339_v9  ;;  %7981 = vmatprep.mubr.msk.f32.mxu1 %vm8320_vm0, %v8319_v1 }
0x39ad   :  { %7975 = vmatprep.subr.mxu1 %v8319_v1 }
0x39ae   :  { %7976 = vmatpush3.msra.mxu1 %v9348_v56 }
0x39af   :  { %7977 = vmatprep.subr.mxu1 %v8319_v1 }
0x39b0   :  { %7978 = vmatpush3.msra.mxu1 %v9355_v10 }
0x39b1   :  { %7979 = vmatprep.subr.mxu1 %v8319_v1 }
0x39b2   :  { %7980 = vmatpush3.msra.mxu1 %v9362_v11 }
0x39b3   :  { %7995 = vmatprep.subr.mxu1 %v8319_v1 }
0x3a6b   :  { %v5491_v4 = vpop.f32.mrf.mxu1 }
0x3a6c   :  { %v5492_v7 = vadd.f32 %v9404_v15, %v5491_v4 }
0x3a6d   :  { %v7961_v55 = vpop.f32.mrf.mxu1 }
0x3a6e   :  { %v9549_v2 = vclamps-f32 %v5492_v7, 10.0 }
0x3a70   :  { %v5498_v14 = vsub.f32 %v9549_v2, %v5497_v12  ;;  %v5655_v63 = vsub.f32 %v9521_v29, %v9549_v2 }
0x3a72   :  { %v5499_v13 = vmul.f32 0.1, %v5498_v14 }
0x3a74   :  { %v5500_v17 = vadd.f32 %v5499_v13, %v9494_v43 }
0x3a76   :  { %7971 = vmatmul.mubr.msk.f32.vlgmr.msra.gmra.mxu0 %vm130_vm1, %v5500_v17 }
0x3a77   :  { %7985 = vmatpush3.msra.mxu0 %v9280_v45  ;;  %7992 = vmatprep.mubr.msk.f32.mxu0 %vm8320_vm0, %v8319_v1 }
0x3a78   :  { %7986 = vmatprep.subr.mxu0 %v8319_v1 }
0x3a79   :  { %7987 = vmatpush3.msra.mxu0 %v9289_v44 }
0x3a7a   :  { %7988 = vmatprep.subr.mxu0 %v8319_v1 }
0x3a7b   :  { %7989 = vmatpush3.msra.mxu0 %v9323_v47 }
0x3a7c   :  { %7990 = vmatprep.subr.mxu0 %v8319_v1 }
0x3a7d   :  { %7991 = vmatpush3.msra.mxu0 %v9330_v24 }
0x3a7e   :  { %8006 = vmatprep.subr.mxu0 %v8319_v1 }
0x3b36   :  { %v5570_v18 = vpop.f32.mrf.mxu0 }
0x3b37   :  { %v5571_v19 = vadd.f32 %v9387_v8, %v5570_v18 }
0x3b38   :  { %v7972_v22 = vpop.f32.mrf.mxu0 }
0x3b39   :  { %v5574_v25 = vsub.f32 0.0, %v5571_v19 }
0x3b3b   :  { %v5575_v31 = vmul.f32 1.442695, %v5574_v25 }
0x3b3d   :  { %8253 = vpow2.f32 %v5575_v31 }
0x3b4a   :  { %v8254_v6 = vpop.eup %8253 }
0x3b4b   :  { %v5577_v23 = vadd.f32 1.0, %v8254_v6 }
0x3b4d   :  { %8255 = vrcp.f32 %v5577_v23 }
0x3b5a   :  { %v8256_v16 = vpop.eup %8255 }
0x3b5b   :  { %v5579_v20 = vmul.f32 %v8256_v16, %v5571_v19 }
0x3b5d   :  { %7982 = vmatmul.mubr.msk.f32.vlgmr.msra.gmra.mxu1 %vm130_vm1, %v5579_v20 }
0x3b5e   :  { %7996 = vmatpush3.msra.mxu1 %v9339_v9  ;;  %8003 = vmatprep.mubr.msk.f32.mxu1 %vm8320_vm0, %v8319_v1 }
0x3b5f   :  { %7997 = vmatprep.subr.mxu1 %v8319_v1 }
0x3b60   :  { %7998 = vmatpush3.msra.mxu1 %v9348_v56 }
0x3b61   :  { %7999 = vmatprep.subr.mxu1 %v8319_v1 }
0x3b62   :  { %8000 = vmatpush3.msra.mxu1 %v9355_v10 }
0x3b63   :  { %8001 = vmatprep.subr.mxu1 %v8319_v1 }
0x3b64   :  { %8002 = vmatpush3.msra.mxu1 %v9362_v11 }
0x3b65   :  { %8017 = vmatprep.subr.mxu1 %v8319_v1 }
0x3c1d   :  { %v5649_v21 = vpop.f32.mrf.mxu1 }
0x3c1e   :  { %v5650_v26 = vadd.f32 %v9404_v15, %v5649_v21 }
0x3c1f   :  { %v7983_v34 = vpop.f32.mrf.mxu1 }
0x3c20   :  { %v6734_v27 = vclamps-f32 %v5650_v26, 10.0 }
0x3c22   :  { %v5656_v35 = vadd.f32 %v6734_v27, %v5655_v63  ;;  %v5813_v54 = vadd.f32 %v6734_v27, %v9549_v2 }
0x3c24   :  { %v5657_v33 = vmul.f32 0.1, %v5656_v35  ;;  %v5814_v36 = vmul.f32 3.0, %v5813_v54 }
0x3c26   :  { %v5658_v37 = vadd.f32 %v5657_v33, %v9494_v43  ;;  %v5815_v46 = vadd.f32 %v9521_v29, %v5814_v36 }
0x3c28   :  { %7993 = vmatmul.mubr.msk.f32.vlgmr.msra.gmra.mxu0 %vm130_vm1, %v5658_v37 }
0x3c29   :  { %8007 = vmatpush3.msra.mxu0 %v9280_v45  ;;  %8014 = vmatprep.mubr.msk.f32.mxu0 %vm8320_vm0, %v8319_v1 }
0x3c2a   :  { %8008 = vmatprep.subr.mxu0 %v8319_v1 }
0x3c2b   :  { %8009 = vmatpush3.msra.mxu0 %v9289_v44 }
0x3c2c   :  { %8010 = vmatprep.subr.mxu0 %v8319_v1 }
0x3c2d   :  { %8011 = vmatpush3.msra.mxu0 %v9323_v47 }
0x3c2e   :  { %8012 = vmatprep.subr.mxu0 %v8319_v1 }
0x3c2f   :  { %8013 = vmatpush3.msra.mxu0 %v9330_v24 }
0x3c30   :  { %8028 = vmatprep.subr.mxu0 %v8319_v1 }
0x3ce8   :  { %v5728_v39 = vpop.f32.mrf.mxu0 }
0x3ce9   :  { %v5729_v41 = vadd.f32 %v9387_v8, %v5728_v39 }
0x3cea   :  { %v7994_v42 = vpop.f32.mrf.mxu0 }
0x3ceb   :  { %v5732_v32 = vsub.f32 0.0, %v5729_v41 }
0x3ced   :  { %v5733_v38 = vmul.f32 1.442695, %v5732_v32 }
0x3cef   :  { %8257 = vpow2.f32 %v5733_v38 }
0x3cfc   :  { %v8258_v49 = vpop.eup %8257 }
0x3cfd   :  { %v5735_v50 = vadd.f32 1.0, %v8258_v49 }
0x3cff   :  { %8259 = vrcp.f32 %v5735_v50 }
0x3d0c   :  { %v8260_v52 = vpop.eup %8259 }
0x3d0d   :  { %v5737_v53 = vmul.f32 %v8260_v52, %v5729_v41 }
0x3d0f   :  { %8004 = vmatmul.mubr.msk.f32.vlgmr.msra.gmra.mxu1 %vm130_vm1, %v5737_v53 }
0x3d10   :  { %8018 = vmatpush3.msra.mxu1 %v9339_v9  ;;  %8025 = vmatprep.mubr.msk.f32.mxu1 %vm8320_vm0, %v8319_v1 }
0x3d11   :  { %8019 = vmatprep.subr.mxu1 %v8319_v1 }
0x3d12   :  { %8020 = vmatpush3.msra.mxu1 %v9348_v56 }
0x3d13   :  { %8021 = vmatprep.subr.mxu1 %v8319_v1 }
0x3d14   :  { %8022 = vmatpush3.msra.mxu1 %v9355_v10 }
0x3d15   :  { %8023 = vmatprep.subr.mxu1 %v8319_v1 }
0x3d16   :  { %8024 = vmatpush3.msra.mxu1 %v9362_v11 }
0x3d17   :  { %8039 = vmatprep.subr.mxu1 %v8319_v1 }
0x3dcf   :  { %v5807_v51 = vpop.f32.mrf.mxu1 }
0x3dd0   :  { %v5808_v40 = vadd.f32 %v9404_v15, %v5807_v51 }
0x3dd1   :  { %v8005_v57 = vpop.f32.mrf.mxu1 }
0x3dd2   :  { %v6737_v28 = vclamps-f32 %v5808_v40, 10.0 }
0x3dd4   :  { %v5816_v58 = vadd.f32 %v6737_v28, %v5815_v46 }
0x3dd6   :  { %v5817_v60 = vmul.f32 0.0125, %v5816_v58  ;;  %v43_v58 = vld [vmem:[%s9739_s1 + $0xf0] sm:$0xff] }
0x3dd8   :  { %v9608_v5 = vadd.f32 %v5817_v60, %v9494_v43  ;;  %v41_v60 = vld [vmem:[%s9739_s1 + $0xe0] sm:$0xff] }
0x3dda   :  { %8015 = vmatmul.mubr.msk.f32.vlgmr.msra.gmra.mxu0 %vm130_vm1, %v9608_v5 }
0x3ddb   :  { %8029 = vmatpush3.msra.mxu0 %v9280_v45  ;;  %8036 = vmatprep.mubr.msk.f32.mxu0 %vm8320_vm0, %v8319_v1 }
0x3ddc   :  { %8030 = vmatprep.subr.mxu0 %v8319_v1 }
0x3ddd   :  { %8031 = vmatpush3.msra.mxu0 %v9289_v44 }
0x3dde   :  { %8032 = vmatprep.subr.mxu0 %v8319_v1 }
0x3ddf   :  { %8033 = vmatpush3.msra.mxu0 %v9323_v47 }
0x3de0   :  { %8034 = vmatprep.subr.mxu0 %v8319_v1 }
0x3de1   :  { %8035 = vmatpush3.msra.mxu0 %v9330_v24 }
0x3de2   :  { %8050 = vmatprep.subr.mxu0 %v8319_v1 }
0x3e9a   :  { %v5888_v43 = vpop.f32.mrf.mxu0 }
0x3e9b   :  { %v5889_v29 = vadd.f32 %v9387_v8, %v5888_v43  ;;  %v40_v43 = vld [vmem:[%s9739_s1 + $0xd8] sm:$0xff] }
0x3e9c   :  { %v8016_v30 = vpop.f32.mrf.mxu0 }
0x3e9d   :  { %v5892_v61 = vsub.f32 0.0, %v5889_v29 }
0x3e9f   :  { %v5893_v62 = vmul.f32 1.442695, %v5892_v61 }
0x3ea1   :  { %8261 = vpow2.f32 %v5893_v62 }
0x3eae   :  { %v8262_v48 = vpop.eup %8261 }
0x3eaf   :  { %v5895_v59 = vadd.f32 1.0, %v8262_v48 }
0x3eb1   :  { %8263 = vrcp.f32 %v5895_v59 }
0x3ebe   :  { %v8264_v0 = vpop.eup %8263 }
0x3ebf   :  { %v5897_v3 = vmul.f32 %v8264_v0, %v5889_v29 }
0x3ec1   :  { %8026 = vmatmul.mubr.msk.f32.vlgmr.msra.gmra.mxu1 %vm130_vm1, %v5897_v3 }
0x3ec2   :  { %8040 = vmatpush3.msra.mxu1 %v9339_v9  ;;  %8047 = vmatprep.mubr.msk.f32.mxu1 %vm8320_vm0, %v8319_v1 }
0x3ec3   :  { %8041 = vmatprep.subr.mxu1 %v8319_v1 }
0x3ec4   :  { %8042 = vmatpush3.msra.mxu1 %v9348_v56 }
0x3ec5   :  { %8043 = vmatprep.subr.mxu1 %v8319_v1 }
0x3ec6   :  { %8044 = vmatpush3.msra.mxu1 %v9355_v10 }
0x3ec7   :  { %8045 = vmatprep.subr.mxu1 %v8319_v1 }
0x3ec8   :  { %8046 = vmatpush3.msra.mxu1 %v9362_v11 }
0x3ec9   :  { %8061 = vmatprep.subr.mxu1 %v8319_v1 }
0x3f81   :  { %v5967_v4 = vpop.f32.mrf.mxu1 }
0x3f82   :  { %v5968_v7 = vadd.f32 %v9404_v15, %v5967_v4 }
0x3f83   :  { %v8027_v55 = vpop.f32.mrf.mxu1 }
0x3f84   :  { %v9635_v2 = vclamps-f32 %v5968_v7, 10.0  ;;  %v46_v55 = vld [vmem:[%s9739_s1 + $0x108] sm:$0xff] }
0x3f86   :  { %v5973_v12 = vmul.f32 0.033333335, %v9635_v2  ;;  %v6129_v34 = vmul.f32 0.33333334, %v9635_v2 }
0x3f88   :  { %v5974_v14 = vadd.f32 %v5973_v12, %v9608_v5 }
0x3f8a   :  { %8037 = vmatmul.mubr.msk.f32.vlgmr.msra.gmra.mxu0 %vm130_vm1, %v5974_v14 }
0x3f8b   :  { %8051 = vmatpush3.msra.mxu0 %v9280_v45  ;;  %8058 = vmatprep.mubr.msk.f32.mxu0 %vm8320_vm0, %v8319_v1 }
0x3f8c   :  { %8052 = vmatprep.subr.mxu0 %v8319_v1 }
0x3f8d   :  { %8053 = vmatpush3.msra.mxu0 %v9289_v44 }
0x3f8e   :  { %8054 = vmatprep.subr.mxu0 %v8319_v1 }
0x3f8f   :  { %8055 = vmatpush3.msra.mxu0 %v9323_v47 }
0x3f90   :  { %8056 = vmatprep.subr.mxu0 %v8319_v1 }
0x3f91   :  { %8057 = vmatpush3.msra.mxu0 %v9330_v24 }
0x3f92   :  { %8072 = vmatprep.subr.mxu0 %v8319_v1 }
0x404a   :  { %v6044_v13 = vpop.f32.mrf.mxu0 }
0x404b   :  { %v6045_v17 = vadd.f32 %v9387_v8, %v6044_v13 }
0x404c   :  { %v8038_v18 = vpop.f32.mrf.mxu0 }
0x404d   :  { %v6048_v19 = vsub.f32 0.0, %v6045_v17 }
0x404f   :  { %v6049_v22 = vmul.f32 1.442695, %v6048_v19 }
0x4051   :  { %8265 = vpow2.f32 %v6049_v22 }
0x405e   :  { %v8266_v25 = vpop.eup %8265 }
0x405f   :  { %v6051_v31 = vadd.f32 1.0, %v8266_v25 }
0x4061   :  { %8267 = vrcp.f32 %v6051_v31 }
0x406e   :  { %v8268_v6 = vpop.eup %8267 }
0x406f   :  { %v6053_v23 = vmul.f32 %v8268_v6, %v6045_v17  ;;  %v8321_v17 = vmov 0  }
0x4070   :  { %8116 = vset.pattern.permute.xlu0 %v8321_v17 }
0x4071   :  { %8048 = vmatmul.mubr.msk.f32.vlgmr.msra.gmra.mxu1 %vm130_vm1, %v6053_v23 }
0x4072   :  { %8062 = vmatpush3.msra.mxu1 %v9339_v9  ;;  %8069 = vmatprep.mubr.msk.f32.mxu1 %vm8320_vm0, %v8319_v1 }
0x4073   :  { %8063 = vmatprep.subr.mxu1 %v8319_v1 }
0x4074   :  { %8064 = vmatpush3.msra.mxu1 %v9348_v56 }
0x4075   :  { %8065 = vmatprep.subr.mxu1 %v8319_v1 }
0x4076   :  { %8066 = vmatpush3.msra.mxu1 %v9355_v10 }
0x4077   :  { %8067 = vmatprep.subr.mxu1 %v8319_v1 }
0x4078   :  { %8068 = vmatpush3.msra.mxu1 %v9362_v11 }
0x4079   :  { %8083 = vmatprep.subr.mxu1 %v8319_v1 }
0x4131   :  { %v6123_v16 = vpop.f32.mrf.mxu1 }
0x4132   :  { %v6124_v20 = vadd.f32 %v9404_v15, %v6123_v16 }
0x4133   :  { %v8049_v21 = vpop.f32.mrf.mxu1 }
0x4134   :  { %v9663_v26 = vclamps-f32 %v6124_v20, 10.0 }
0x4136   :  { %v6130_v27 = vsub.f32 %v9663_v26, %v6129_v34  ;;  %v6287_v50 = vsub.f32 %v9635_v2, %v9663_v26 }
0x4138   :  { %v6131_v63 = vmul.f32 0.1, %v6130_v27 }
0x413a   :  { %v6132_v35 = vadd.f32 %v6131_v63, %v9608_v5 }
0x413c   :  { %8059 = vmatmul.mubr.msk.f32.vlgmr.msra.gmra.mxu0 %vm130_vm1, %v6132_v35 }
0x413d   :  { %8073 = vmatpush3.msra.mxu0 %v9280_v45  ;;  %8080 = vmatprep.mubr.msk.f32.mxu0 %vm8320_vm0, %v8319_v1 }
0x413e   :  { %8074 = vmatprep.subr.mxu0 %v8319_v1 }
0x413f   :  { %8075 = vmatpush3.msra.mxu0 %v9289_v44 }
0x4140   :  { %8076 = vmatprep.subr.mxu0 %v8319_v1 }
0x4141   :  { %8077 = vmatpush3.msra.mxu0 %v9323_v47 }
0x4142   :  { %8078 = vmatprep.subr.mxu0 %v8319_v1 }
0x4143   :  { %8079 = vmatpush3.msra.mxu0 %v9330_v24 }
0x4144   :  { %8094 = vmatprep.subr.mxu0 %v8319_v1 }
0x41fc   :  { %v6202_v33 = vpop.f32.mrf.mxu0 }
0x41fd   :  { %v6203_v45 = vadd.f32 %v9387_v8, %v6202_v33 }
0x41fe   :  { %v8060_v37 = vpop.f32.mrf.mxu0 }
0x41ff   :  { %v6206_v39 = vsub.f32 0.0, %v6203_v45 }
0x4201   :  { %v6207_v41 = vmul.f32 1.442695, %v6206_v39 }
0x4203   :  { %8269 = vpow2.f32 %v6207_v41 }
0x4210   :  { %v8270_v42 = vpop.eup %8269 }
0x4211   :  { %v6209_v32 = vadd.f32 1.0, %v8270_v42 }
0x4213   :  { %8271 = vrcp.f32 %v6209_v32 }
0x4220   :  { %v8272_v44 = vpop.eup %8271 }
0x4221   :  { %v6211_v38 = vmul.f32 %v8272_v44, %v6203_v45 }
0x4223   :  { %8070 = vmatmul.mubr.msk.f32.vlgmr.msra.gmra.mxu1 %vm130_vm1, %v6211_v38 }
0x4224   :  { %8084 = vmatpush3.msra.mxu1 %v9339_v9  ;;  %8091 = vmatprep.mubr.msk.f32.mxu1 %vm8320_vm0, %v8319_v1 }
0x4225   :  { %8085 = vmatprep.subr.mxu1 %v8319_v1 }
0x4226   :  { %8086 = vmatpush3.msra.mxu1 %v9348_v56 }
0x4227   :  { %8087 = vmatprep.subr.mxu1 %v8319_v1 }
0x4228   :  { %8088 = vmatpush3.msra.mxu1 %v9355_v10 }
0x4229   :  { %8089 = vmatprep.subr.mxu1 %v8319_v1 }
0x422a   :  { %8090 = vmatpush3.msra.mxu1 %v9362_v11 }
0x422b   :  { %8105 = vmatprep.subr.mxu1 %v8319_v1 }
0x42e3   :  { %v6281_v47 = vpop.f32.mrf.mxu1 }
0x42e4   :  { %v6282_v24 = vadd.f32 %v9404_v15, %v6281_v47 }
0x42e5   :  { %v8071_v9 = vpop.f32.mrf.mxu1 }
0x42e6   :  { %v6746_v49 = vclamps-f32 %v6282_v24, 10.0 }
0x42e8   :  { %v6288_v52 = vadd.f32 %v6746_v49, %v6287_v50  ;;  %v6445_v29 = vadd.f32 %v6746_v49, %v9663_v26 }
0x42ea   :  { %v6289_v56 = vmul.f32 0.1, %v6288_v52  ;;  %v6446_v30 = vmul.f32 3.0, %v6445_v29 }
0x42ec   :  { %v6290_v53 = vadd.f32 %v6289_v56, %v9608_v5  ;;  %v6447_v0 = vadd.f32 %v9635_v2, %v6446_v30  ;;  %v6750_v2 = vld [vmem:[%s9739_s1 + $0xf8] ss:$0 sm:$0xff] }
0x42ee   :  { %8081 = vmatmul.mubr.msk.f32.vlgmr.msra.gmra.mxu0 %vm130_vm1, %v6290_v53 }
0x42ef   :  { %8102 = vmatprep.mubr.msk.f32.mxu0 %vm8320_vm0, %v8319_v1  ;;  %8095 = vmatpush3.msra.mxu0 %v43_v58 }
0x42f0   :  { %8096 = vmatprep.subr.mxu0 %v8319_v1 }
0x43ae   :  { %v6360_v10 = vpop.f32.mrf.mxu0 }
0x43af   :  { %v6361_v11 = vadd.f32 %v9387_v8, %v6360_v10  ;;  %v42_v8 = vld [vmem:[%s9739_s1 + $0xe8] sm:$0xff] }
0x43b0   :  { %v8082_v54 = vpop.f32.mrf.mxu0  ;;  %8097 = vmatpush3.msra.mxu0 %v42_v8 }
0x43b1   :  { %v6364_v36 = vsub.f32 0.0, %v6361_v11  ;;  %8098 = vmatprep.subr.mxu0 %v8319_v1 }
0x43b2   :  { %8099 = vmatpush3.msra.mxu0 %v41_v60 }
0x43b3   :  { %v6365_v51 = vmul.f32 1.442695, %v6364_v36  ;;  %8100 = vmatprep.subr.mxu0 %v8319_v1 }
0x43b4   :  { %8101 = vmatpush3.msra.mxu0 %v40_v43 }
0x43b5   :  { %8273 = vpow2.f32 %v6365_v51 }
0x43c2   :  { %v8274_v40 = vpop.eup %8273 }
0x43c3   :  { %v6367_v57 = vadd.f32 1.0, %v8274_v40 }
0x43c5   :  { %8275 = vrcp.f32 %v6367_v57 }
0x43d2   :  { %v8276_v28 = vpop.eup %8275 }
0x43d3   :  { %v6369_v46 = vmul.f32 %v8276_v28, %v6361_v11 }
0x43d5   :  { %8092 = vmatmul.mubr.msk.f32.vlgmr.msra.gmra.mxu1 %vm130_vm1, %v6369_v46 }
0x43d6   :  { %8109 = vmatprep.mubr.msk.f32.mxu1 %vm8320_vm0, %v8319_v1  ;;  %8106 = vmatpush3.msra.mxu1 %v46_v55 }
0x43d7   :  { %8107 = vmatprep.subr.mxu1 %v8319_v1  ;;  %v6752_v1 = vld [vmem:[%s9739_s1 + $0x110] ss:$0 sm:$0xff] }
0x4495   :  { %v6439_v61 = vpop.f32.mrf.mxu1 }
0x4496   :  { %v6440_v62 = vadd.f32 %v9404_v15, %v6439_v61  ;;  %v45_v15 = vld [vmem:[%s9739_s1 + $0x100] sm:$0xff] }
0x4497   :  { %v8093_v48 = vpop.f32.mrf.mxu1  ;;  %8108 = vmatpush3.msra.mxu1 %v45_v15 }
0x4498   :  { %v6749_v59 = vclamps-f32 %v6440_v62, 10.0 }
0x449a   :  { %v6448_v3 = vadd.f32 %v6749_v59, %v6447_v0 }
0x449c   :  { %v6449_v4 = vmul.f32 0.0125, %v6448_v3 }
0x449e   :  { %v6450_v7 = vadd.f32 %v6449_v4, %v9608_v5 }
0x44a0   :  { %8103 = vmatmul.mubr.msk.f32.vlgmr.msra.gmra.mxu0 %vm130_vm1, %v6450_v7 }
0x4560   :  { %v6524_v12 = vpop.f32.mrf.mxu0 }
0x4561   :  { %v6525_v5 = vadd.f32 %v6750_v2, %v6524_v12 }
0x4562   :  { %v8104_v14 = vpop.f32.mrf.mxu0 }
0x4563   :  { %v6528_v13 = vmax.f32 %v6525_v5, 0.0 }
0x4565   :  { %8110 = vmatmul.mubr.msk.f32.vlgmr.msra.gmra.mxu1 %vm6533_vm2, %v6528_v13 }
0x4625   :  { %v6603_v18 = vpop.f32.mrf.mxu1 }
0x4626   :  { %v6604_v19 = vadd.f32 %v6752_v1, %v6603_v18 }
0x4627   :  { %v8111_v22 = vpop.f32.mrf.mxu1 }
0x4628   :  { %6609 = vperm.xlu0 %8116, %v6604_v19  }
0x46a3   :  { %v6610_v25 = vpop.permute.xlu0 %6609 }
0x46a4   :  { %6612 = vst [vmem:[#allocation2] sm:$0xff] %v6610_v25 }
0x46a5   :  { %8308 = shalt.err (!%p8305_p4)
}
0x46a6   :  { %6622 = dma.vmem_to_hbm [thread:$0]  %s6620_s7, 128, %s9740_s2, [#allocation3]  }
0x46a7   :  { %8317 = dma.done.wait [#allocation3], 128  }
0x46a8   :  { %8318 = vsyncadd [#allocation3], 4294967168 }
0x46a9   :  { %6626 = vsyncpa [#allocation3], 1 }

</bundles_post_ra>
